<compile_context>
chip_gen: v5e
topology: v5e:2x2
jax: 0.10.0
libtpu: 0.0.40
codegen_flags: <defaults>
</compile_context>

<pallas_src>
import jax
import jax.numpy as jnp
from jax.experimental import pallas as pl
from jax.experimental.pallas import tpu as pltpu

EPS = 1e-5          # PyTorch BatchNorm2d default
LANES = 128
SUBLANES = 8


def _round_up(x, m):
    return (x + m - 1) // m * m


def _vmem_limit_bytes():
    """Generation-aware scoped-VMEM limit, safely below physical capacity."""
    cap = 64 * 1024 * 1024                       # conservative default (v7x/TC)
    try:
        info = pltpu.get_tpu_info()
        cap = int(getattr(info, "vmem_capacity_bytes", cap))
    except Exception:
        pass
    return int(min(cap * 3 // 4, 96 * 1024 * 1024))


def _conv3x3(xp, w_ref, H, W):
    """3x3 / stride-1 conv of a zero-haloed block as 3 accumulating MXU matmuls.

    xp:    (1, H+2, >=W+2, Cin) bf16 value; row 0 / H+1 and col 0 / W+1.. are 0.
    w_ref: (3, 3*Cin, Cout) bf16 ref; w_ref[dw, dh*Cin + cin, co] = W[dh,dw,cin,co].
    Returns (H*W, Cout) f32.

    One slab per dw (K = 3*Cin) instead of one 9*Cin slab: 3x less concat copy
    traffic / slab VMEM while keeping the MXU K-depth filled.  The dw-shifted
    (sublane-offset) view is built once per dw and reused across dh; dh slices
    are major-dim slices (no extra sublane shifts).
    """
    Cin = xp.shape[-1]
    acc = None
    for dw in range(3):
        x_dw = xp[:, :, dw:dw + W, :]                              # (1,H+2,W,Cin)
        slab = jnp.concatenate(
            [x_dw[:, dh:dh + H, :, :] for dh in range(3)], axis=-1)  # (1,H,W,3Cin)
        part = jnp.dot(slab.reshape(H * W, 3 * Cin), w_ref[dw],
                       preferred_element_type=jnp.float32)
        acc = part if acc is None else acc + part
    return acc


def _channel_stats(acc):
    """Per-channel [sum, sum_sq] of an (M, C) f32 tile on VPU/XLU (not MXU)."""
    s = jnp.sum(acc, axis=0, keepdims=True)
    sq = jnp.sum(acc * acc, axis=0, keepdims=True)
    return jnp.concatenate([s, sq], axis=0)[None]                  # (1, 2, C)


# ----------------------------- pass 1: conv1 ----------------------------------
def _conv1_kernel(x_ref, w1_ref, y1_ref, st1_ref):
    _, H, W, Pp = y1_ref.shape
    acc = _conv3x3(x_ref[...], w1_ref, H, W)                       # (H*W, Pp) f32
    st1_ref[...] = _channel_stats(acc)
    y1_ref[...] = acc.astype(y1_ref.dtype).reshape(1, H, W, Pp)


# ----------------------- pass 2: bn1 + relu + conv2 ---------------------------
def _conv2_kernel(y1_ref, sc1_ref, sh1_ref, w2_ref, y2_ref, st2_ref):
    _, H, W, Pp = y1_ref.shape
    sc = sc1_ref[...].reshape(1, 1, 1, Pp)
    sh = sh1_ref[...].reshape(1, 1, 1, Pp)
    a = jnp.maximum(y1_ref[...].astype(jnp.float32) * sc + sh, 0.0)
    a = a.astype(jnp.bfloat16)                                     # (1,H,W,Pp)
    # Zero 1-px spatial halo for conv2 (dependency stays inside the sample).
    zr = jnp.zeros((1, 1, W, Pp), jnp.bfloat16)
    zc = jnp.zeros((1, H + 2, 1, Pp), jnp.bfloat16)
    ap = jnp.concatenate([zr, a, zr], axis=1)
    ap = jnp.concatenate([zc, ap, zc], axis=2)                     # (1,H+2,W+2,Pp)
    acc = _conv3x3(ap, w2_ref, H, W)
    st2_ref[...] = _channel_stats(acc)
    y2_ref[...] = acc.astype(y2_ref.dtype).reshape(1, H, W, Pp)


# ------------------ pass 3: bn2 + residual add + relu -------------------------
def _bn2_add_kernel(y2_ref, sc2_ref, sh2_ref, x_ref, out_ref):
    _, H, W, Pp = y2_ref.shape
    sc = sc2_ref[...].reshape(1, 1, 1, Pp)
    sh = sh2_ref[...].reshape(1, 1, 1, Pp)
    y2 = y2_ref[...].astype(jnp.float32)
    # downsample=None -> identity = x (interior of the spatially padded input).
    identity = x_ref[...][:, 1:H + 1, 1:W + 1, :].astype(jnp.float32)
    out = y2 * sc + sh + identity
    out_ref[...] = jnp.maximum(out, 0.0).astype(out_ref.dtype)


def basic_block_nhwc(x, w1, w2, g1, b1, g2, b2):
    """BasicBlock forward (stride=1, downsample=None), NHWC activations.

    x: (N,H,W,C) f32; w1: (3,3,C,P), w2: (3,3,P,P) HWIO; g*,b*: (P,).
    Returns (N,H,W,P) bfloat16.  BatchNorm uses training-mode batch statistics
    (fresh nn.Module is .train()); running buffers are not updated.
    Note: the residual identity is the bf16-rounded input (conv operands are
    bf16 anyway) — a tiny, documented deviation from PyTorch's f32 add.
    """
    N, H, W, C = x.shape
    P = w1.shape[-1]
    assert w1.shape == (3, 3, C, P) and w2.shape == (3, 3, P, P)
    assert C == P, "BasicBlock with downsample=None requires inplanes == planes"

    Cp = _round_up(C, LANES)     # lane-dense channels; padded weights/gamma/beta
    Pp = _round_up(P, LANES)     # are zero so padded channels stay exactly 0
    Hp2 = H + 2
    Wpd = _round_up(W + 2, SUBLANES)     # sublane-aligned padded width
    nhw = N * H * W

    # One fused bf16-cast + spatial/channel pad of x (read once from HBM by the
    # kernels; no in-kernel halo scratch / VMEM->VMEM copy).
    xb = jnp.pad(x.astype(jnp.bfloat16),
                 ((0, 0), (1, 1), (1, Wpd - W - 1), (0, Cp - C)))

    # Weight layout (dw, dh*Cin + cin, cout): one (3*Cin, Cout) slab per dw.
    def _prep_w(w, cin_p, cout_p):
        wp = jnp.pad(w, ((0, 0), (0, 0), (0, cin_p - w.shape[2]),
                         (0, cout_p - w.shape[3])))
        return jnp.transpose(wp, (1, 0, 2, 3)).reshape(
            3, 3 * cin_p, cout_p).astype(jnp.bfloat16)

    w1_dw = _prep_w(w1, Cp, Pp)
    w2_dw = _prep_w(w2, Pp, Pp)

    g1p = jnp.pad(g1.astype(jnp.float32), (0, Pp - P))
    b1p = jnp.pad(b1.astype(jnp.float32), (0, Pp - P))
    g2p = jnp.pad(g2.astype(jnp.float32), (0, Pp - P))
    b2p = jnp.pad(b2.astype(jnp.float32), (0, Pp - P))

    cparams = pltpu.CompilerParams(
        dimension_semantics=("parallel",),       # shard batch tiles across TCs
        vmem_limit_bytes=_vmem_limit_bytes())

    blk_x   = pl.BlockSpec((1, Hp2, Wpd, Cp), lambda n: (n, 0, 0, 0))
    blk_act = pl.BlockSpec((1, H, W, Pp),     lambda n: (n, 0, 0, 0))
    blk_st  = pl.BlockSpec((1, 2, Pp),        lambda n: (n, 0, 0))
    blk_vec = pl.BlockSpec((1, Pp),           lambda n: (0, 0))
    blk_w1  = pl.BlockSpec((3, 3 * Cp, Pp),   lambda n: (0, 0, 0))
    blk_w2  = pl.BlockSpec((3, 3 * Pp, Pp),   lambda n: (0, 0, 0))

    # ---- pass 1: conv1 + BN1 partial stats -----------------------------------
    y1raw, st1 = pl.pallas_call(
        _conv1_kernel,
        grid=(N,),
        in_specs=[blk_x, blk_w1],
        out_specs=[blk_act, blk_st],
        out_shape=[jax.ShapeDtypeStruct((N, H, W, Pp), jnp.bfloat16),
                   jax.ShapeDtypeStruct((N, 2, Pp), jnp.float32)],
        compiler_params=cparams,
    )(xb, w1_dw)

    def _fold_bn(st, g, b):
        s = jnp.sum(st[:, 0, :], axis=0)
        sq = jnp.sum(st[:, 1, :], axis=0)
        mean = s / nhw
        var = jnp.maximum(sq / nhw - mean * mean, 0.0)   # biased var, clamped
        scale = g * jax.lax.rsqrt(var + EPS)
        shift = b - mean * scale
        return scale.reshape(1, Pp), shift.reshape(1, Pp)

    scale1, shift1 = _fold_bn(st1, g1p, b1p)

    # ---- pass 2: bn1-apply + relu + conv2 + BN2 partial stats ----------------
    y2raw, st2 = pl.pallas_call(
        _conv2_kernel,
        grid=(N,),
        in_specs=[blk_act, blk_vec, blk_vec, blk_w2],
        out_specs=[blk_act, blk_st],
        out_shape=[jax.ShapeDtypeStruct((N, H, W, Pp), jnp.bfloat16),
                   jax.ShapeDtypeStruct((N, 2, Pp), jnp.float32)],
        compiler_params=cparams,
    )(y1raw, scale1, shift1, w2_dw)

    scale2, shift2 = _fold_bn(st2, g2p, b2p)

    # ---- pass 3: bn2-apply + identity add + relu -----------------------------
    out = pl.pallas_call(
        _bn2_add_kernel,
        grid=(N,),
        in_specs=[blk_act, blk_vec, blk_vec, blk_x],
        out_specs=blk_act,
        out_shape=jax.ShapeDtypeStruct((N, H, W, Pp), jnp.bfloat16),
        compiler_params=cparams,
    )(y2raw, scale2, shift2, xb)

    # At real ResNet widths P is already a multiple of 128 and this is a no-op;
    # at the toy width (P=8) slice for API parity.
    return out if P == Pp else out[..., :P]


@jax.jit
def basic_block_nchw(x_nchw, w1, w2, g1, b1, g2, b2):
    """PyTorch-layout convenience wrapper (NCHW in / NCHW out, bf16 output).

    In a full network activations should stay NHWC / bf16 end-to-end so these
    boundary transposes disappear.
    """
    x = jnp.transpose(x_nchw, (0, 2, 3, 1))
    y = basic_block_nhwc(x, w1, w2, g1, b1, g2, b2)
    return jnp.transpose(y, (0, 3, 1, 2))


# --------- pure-JAX reference, numerics-matched to the kernel path ------------
# (bf16 conv operands, f32 accumulation, f32 training-mode BN stats, conv
# outputs rounded to bf16 before BN-apply as the kernel stores them to HBM in
# bf16, bf16 residual identity; final output kept in f32.)
def _reference_nchw(x_nchw, w1, w2, g1, b1, g2, b2):
    x = jnp.transpose(x_nchw, (0, 2, 3, 1))
    xb = x.astype(jnp.bfloat16)

    def conv(inp_bf16, w):
        return jax.lax.conv_general_dilated(
            inp_bf16, w.astype(jnp.bfloat16), (1, 1), 'SAME',
            dimension_numbers=('NHWC', 'HWIO', 'NHWC'),
            preferred_element_type=jnp.float32)

    def bn(acc, g, b):
        m = jnp.mean(acc, axis=(0, 1, 2))
        v = jnp.maximum(jnp.mean(acc * acc, axis=(0, 1, 2)) - m * m, 0.0)
        scale = g * jax.lax.rsqrt(v + EPS)
        shift = b - m * scale
        return acc.astype(jnp.bfloat16).astype(jnp.float32) * scale + shift

    y1 = jax.nn.relu(bn(conv(xb, w1), g1, b1))
    y2 = bn(conv(y1.astype(jnp.bfloat16), w2), g2, b2)
    out = jax.nn.relu(y2 + xb.astype(jnp.float32))
    return jnp.transpose(out, (0, 3, 1, 2))


if __name__ == "__main__":
    # BasicBlock(inplanes=8, planes=8, stride=1, downsample=None)
    N, C, H, W = 2, 8, 16, 16
    P = C

    key = jax.random.PRNGKey(0)
    kx, kw1, kw2, kg1, kb1, kg2, kb2 = jax.random.split(key, 7)

    x_nchw = jax.random.normal(kx, (N, C, H, W), jnp.float32)

    # PyTorch OIHW conv weights -> HWIO
    w1_oihw = 0.1 * jax.random.normal(kw1, (P, C, 3, 3), jnp.float32)
    w2_oihw = 0.1 * jax.random.normal(kw2, (P, P, 3, 3), jnp.float32)
    w1 = jnp.transpose(w1_oihw, (2, 3, 1, 0))
    w2 = jnp.transpose(w2_oihw, (2, 3, 1, 0))

    # BatchNorm affine params (defaults gamma=1, beta=0; perturbed to make the
    # test non-trivial, still deterministic)
    g1 = 1.0 + 0.1 * jax.random.normal(kg1, (P,), jnp.float32)
    b1 = 0.1 * jax.random.normal(kb1, (P,), jnp.float32)
    g2 = 1.0 + 0.1 * jax.random.normal(kg2, (P,), jnp.float32)
    b2 = 0.1 * jax.random.normal(kb2, (P,), jnp.float32)

    out = basic_block_nchw(x_nchw, w1, w2, g1, b1, g2, b2)
    out = jax.block_until_ready(out)
    assert out.shape == (N, P, H, W)

    ref = _reference_nchw(x_nchw, w1, w2, g1, b1, g2, b2)
    out_f32 = out.astype(jnp.float32)
    err = float(jnp.max(jnp.abs(out_f32 - ref)))
    # Any layout / indexing bug produces O(1) errors; the tolerance only absorbs
    # bf16-rounding (including the bf16 output store) and accumulation-order noise.
    assert jnp.allclose(out_f32, ref, atol=2e-2, rtol=2e-2), f"max abs err {err}"

    print("KERNEL_OK")
</pallas_src>

<mosaic_0001>
module attributes {stable_mosaic.version = 11 : i64} {
  func.func @_conv1_kernel(%arg0: i32, %arg1: memref<1x18x24x128xbf16, #tpu.memory_space<vmem>>, %arg2: memref<3x384x128xbf16, #tpu.memory_space<vmem>>, %arg3: memref<1x16x16x128xbf16, #tpu.memory_space<vmem>>, %arg4: memref<1x2x128xf32, #tpu.memory_space<vmem>>) attributes {dimension_semantics = [#tpu.dimension_semantics<parallel>], iteration_bounds = array<i64: 2>, scalar_prefetch = 0 : i64, scratch_operands = 0 : i64, tpu.core_type = #tpu.core_type<tc>, window_params = [{transform_indices = @transform_0, window_bounds = array<i64: 1, 18, 24, 128>}, {pipeline_mode = #tpu.pipeline_mode<synchronous>, transform_indices = @transform_1, window_bounds = array<i64: 3, 384, 128>}, {transform_indices = @transform_2, window_bounds = array<i64: 1, 16, 16, 128>}, {transform_indices = @transform_3, window_bounds = array<i64: 1, 2, 128>}]} {
    %c0 = arith.constant 0 : index
    %c0_0 = arith.constant 0 : index
    %c0_1 = arith.constant 0 : index
    %c0_2 = arith.constant 0 : index
    %0 = vector.load %arg1[%c0, %c0_0, %c0_1, %c0_2] : memref<1x18x24x128xbf16, #tpu.memory_space<vmem>>, vector<1x18x24x128xbf16>
    %1 = vector.extract_strided_slice %0 {offsets = [0, 0, 0, 0], sizes = [1, 18, 16, 128], strides = [1, 1, 1, 1]} : vector<1x18x24x128xbf16> to vector<1x18x16x128xbf16>
    %2 = vector.extract_strided_slice %1 {offsets = [0, 0, 0, 0], sizes = [1, 16, 16, 128], strides = [1, 1, 1, 1]} : vector<1x18x16x128xbf16> to vector<1x16x16x128xbf16>
    %3 = vector.extract_strided_slice %1 {offsets = [0, 1, 0, 0], sizes = [1, 16, 16, 128], strides = [1, 1, 1, 1]} : vector<1x18x16x128xbf16> to vector<1x16x16x128xbf16>
    %4 = vector.extract_strided_slice %1 {offsets = [0, 2, 0, 0], sizes = [1, 16, 16, 128], strides = [1, 1, 1, 1]} : vector<1x18x16x128xbf16> to vector<1x16x16x128xbf16>
    %5 = tpu.concatenate %2, %3, %4 in 3 : vector<1x16x16x128xbf16>, vector<1x16x16x128xbf16>, vector<1x16x16x128xbf16> -> vector<1x16x16x384xbf16>
    %6 = vector.shape_cast %5 : vector<1x16x16x384xbf16> to vector<256x384xbf16>
    %c0_3 = arith.constant 0 : index
    %c0_4 = arith.constant 0 : index
    %c0_5 = arith.constant 0 : index
    %7 = vector.load %arg2[%c0_3, %c0_4, %c0_5] : memref<3x384x128xbf16, #tpu.memory_space<vmem>>, vector<1x384x128xbf16>
    %8 = vector.shape_cast %7 : vector<1x384x128xbf16> to vector<384x128xbf16>
    %cst = arith.constant dense<0.000000e+00> : vector<256x128xf32>
    %9 = tpu.matmul %6, %8, %cst {dimension_numbers = #tpu.dot_dimension_numbers<[1], [0], [0], [1], [0, 0, 1, 1], [], []>} : vector<256x384xbf16>, vector<384x128xbf16>, vector<256x128xf32> -> vector<256x128xf32>
    %10 = vector.extract_strided_slice %0 {offsets = [0, 0, 1, 0], sizes = [1, 18, 16, 128], strides = [1, 1, 1, 1]} : vector<1x18x24x128xbf16> to vector<1x18x16x128xbf16>
    %11 = vector.extract_strided_slice %10 {offsets = [0, 0, 0, 0], sizes = [1, 16, 16, 128], strides = [1, 1, 1, 1]} : vector<1x18x16x128xbf16> to vector<1x16x16x128xbf16>
    %12 = vector.extract_strided_slice %10 {offsets = [0, 1, 0, 0], sizes = [1, 16, 16, 128], strides = [1, 1, 1, 1]} : vector<1x18x16x128xbf16> to vector<1x16x16x128xbf16>
    %13 = vector.extract_strided_slice %10 {offsets = [0, 2, 0, 0], sizes = [1, 16, 16, 128], strides = [1, 1, 1, 1]} : vector<1x18x16x128xbf16> to vector<1x16x16x128xbf16>
    %14 = tpu.concatenate %11, %12, %13 in 3 : vector<1x16x16x128xbf16>, vector<1x16x16x128xbf16>, vector<1x16x16x128xbf16> -> vector<1x16x16x384xbf16>
    %15 = vector.shape_cast %14 : vector<1x16x16x384xbf16> to vector<256x384xbf16>
    %c1 = arith.constant 1 : index
    %c0_6 = arith.constant 0 : index
    %c0_7 = arith.constant 0 : index
    %16 = vector.load %arg2[%c1, %c0_6, %c0_7] : memref<3x384x128xbf16, #tpu.memory_space<vmem>>, vector<1x384x128xbf16>
    %17 = vector.shape_cast %16 : vector<1x384x128xbf16> to vector<384x128xbf16>
    %cst_8 = arith.constant dense<0.000000e+00> : vector<256x128xf32>
    %18 = tpu.matmul %15, %17, %cst_8 {dimension_numbers = #tpu.dot_dimension_numbers<[1], [0], [0], [1], [0, 0, 1, 1], [], []>} : vector<256x384xbf16>, vector<384x128xbf16>, vector<256x128xf32> -> vector<256x128xf32>
    %19 = arith.addf %9, %18 : vector<256x128xf32>
    %20 = vector.extract_strided_slice %0 {offsets = [0, 0, 2, 0], sizes = [1, 18, 16, 128], strides = [1, 1, 1, 1]} : vector<1x18x24x128xbf16> to vector<1x18x16x128xbf16>
    %21 = vector.extract_strided_slice %20 {offsets = [0, 0, 0, 0], sizes = [1, 16, 16, 128], strides = [1, 1, 1, 1]} : vector<1x18x16x128xbf16> to vector<1x16x16x128xbf16>
    %22 = vector.extract_strided_slice %20 {offsets = [0, 1, 0, 0], sizes = [1, 16, 16, 128], strides = [1, 1, 1, 1]} : vector<1x18x16x128xbf16> to vector<1x16x16x128xbf16>
    %23 = vector.extract_strided_slice %20 {offsets = [0, 2, 0, 0], sizes = [1, 16, 16, 128], strides = [1, 1, 1, 1]} : vector<1x18x16x128xbf16> to vector<1x16x16x128xbf16>
    %24 = tpu.concatenate %21, %22, %23 in 3 : vector<1x16x16x128xbf16>, vector<1x16x16x128xbf16>, vector<1x16x16x128xbf16> -> vector<1x16x16x384xbf16>
    %25 = vector.shape_cast %24 : vector<1x16x16x384xbf16> to vector<256x384xbf16>
    %c2 = arith.constant 2 : index
    %c0_9 = arith.constant 0 : index
    %c0_10 = arith.constant 0 : index
    %26 = vector.load %arg2[%c2, %c0_9, %c0_10] : memref<3x384x128xbf16, #tpu.memory_space<vmem>>, vector<1x384x128xbf16>
    %27 = vector.shape_cast %26 : vector<1x384x128xbf16> to vector<384x128xbf16>
    %cst_11 = arith.constant dense<0.000000e+00> : vector<256x128xf32>
    %28 = tpu.matmul %25, %27, %cst_11 {dimension_numbers = #tpu.dot_dimension_numbers<[1], [0], [0], [1], [0, 0, 1, 1], [], []>} : vector<256x384xbf16>, vector<384x128xbf16>, vector<256x128xf32> -> vector<256x128xf32>
    %29 = arith.addf %19, %28 : vector<256x128xf32>
    %cst_12 = arith.constant dense<0.000000e+00> : vector<128xf32>
    %30 = vector.multi_reduction <add>, %29, %cst_12 [0] : vector<256x128xf32> to vector<128xf32>
    %31 = vector.shape_cast %30 : vector<128xf32> to vector<1x128xf32>
    %32 = arith.mulf %29, %29 : vector<256x128xf32>
    %cst_13 = arith.constant dense<0.000000e+00> : vector<128xf32>
    %33 = vector.multi_reduction <add>, %32, %cst_13 [0] : vector<256x128xf32> to vector<128xf32>
    %34 = vector.shape_cast %33 : vector<128xf32> to vector<1x128xf32>
    %35 = tpu.concatenate %31, %34 in 0 : vector<1x128xf32>, vector<1x128xf32> -> vector<2x128xf32>
    %36 = vector.shape_cast %35 : vector<2x128xf32> to vector<1x2x128xf32>
    %c0_14 = arith.constant 0 : index
    %c0_15 = arith.constant 0 : index
    %c0_16 = arith.constant 0 : index
    %37 = vector.load %arg4[%c0_14, %c0_15, %c0_16] : memref<1x2x128xf32, #tpu.memory_space<vmem>>, vector<1x2x128xf32>
    tpu.vector_store %arg4[%c0_14, %c0_15, %c0_16], %36 {strides = array<i32>} : memref<1x2x128xf32, #tpu.memory_space<vmem>>, vector<1x2x128xf32>,
    %38 = arith.truncf %29 : vector<256x128xf32> to vector<256x128xbf16>
    %39 = vector.shape_cast %38 : vector<256x128xbf16> to vector<1x16x16x128xbf16>
    %c0_17 = arith.constant 0 : index
    %c0_18 = arith.constant 0 : index
    %c0_19 = arith.constant 0 : index
    %c0_20 = arith.constant 0 : index
    %40 = vector.load %arg3[%c0_17, %c0_18, %c0_19, %c0_20] : memref<1x16x16x128xbf16, #tpu.memory_space<vmem>>, vector<1x16x16x128xbf16>
    tpu.vector_store %arg3[%c0_17, %c0_18, %c0_19, %c0_20], %39 {strides = array<i32>} : memref<1x16x16x128xbf16, #tpu.memory_space<vmem>>, vector<1x16x16x128xbf16>,
    return
  }
  func.func @transform_0(%arg0: i32) -> (i32, i32, i32, i32) {
    %c0_i32 = arith.constant 0 : i32
    %c0_i32_0 = arith.constant 0 : i32
    %c0_i32_1 = arith.constant 0 : i32
    %c0_i32_2 = arith.constant 0 : i32
    return %arg0, %c0_i32, %c0_i32_0, %c0_i32_1 : i32, i32, i32, i32
  }
  func.func @transform_1(%arg0: i32) -> (i32, i32, i32) {
    %c0_i32 = arith.constant 0 : i32
    %c0_i32_0 = arith.constant 0 : i32
    %c0_i32_1 = arith.constant 0 : i32
    %c0_i32_2 = arith.constant 0 : i32
    return %c0_i32, %c0_i32_0, %c0_i32_1 : i32, i32, i32
  }
  func.func @transform_2(%arg0: i32) -> (i32, i32, i32, i32) {
    %c0_i32 = arith.constant 0 : i32
    %c0_i32_0 = arith.constant 0 : i32
    %c0_i32_1 = arith.constant 0 : i32
    %c0_i32_2 = arith.constant 0 : i32
    return %arg0, %c0_i32, %c0_i32_0, %c0_i32_1 : i32, i32, i32, i32
  }
  func.func @transform_3(%arg0: i32) -> (i32, i32, i32) {
    %c0_i32 = arith.constant 0 : i32
    %c0_i32_0 = arith.constant 0 : i32
    %c0_i32_1 = arith.constant 0 : i32
    return %arg0, %c0_i32, %c0_i32_0 : i32, i32, i32
  }
}

module attributes {stable_mosaic.version = 11 : i64} {
  func.func @_conv2_kernel(%arg0: i32, %arg1: memref<1x16x16x128xbf16, #tpu.memory_space<vmem>>, %arg2: memref<1x128xf32, #tpu.memory_space<vmem>>, %arg3: memref<1x128xf32, #tpu.memory_space<vmem>>, %arg4: memref<3x384x128xbf16, #tpu.memory_space<vmem>>, %arg5: memref<1x16x16x128xbf16, #tpu.memory_space<vmem>>, %arg6: memref<1x2x128xf32, #tpu.memory_space<vmem>>) attributes {dimension_semantics = [#tpu.dimension_semantics<parallel>], iteration_bounds = array<i64: 2>, scalar_prefetch = 0 : i64, scratch_operands = 0 : i64, tpu.core_type = #tpu.core_type<tc>, window_params = [{transform_indices = @transform_0, window_bounds = array<i64: 1, 16, 16, 128>}, {pipeline_mode = #tpu.pipeline_mode<synchronous>, transform_indices = @transform_1, window_bounds = array<i64: 1, 128>}, {pipeline_mode = #tpu.pipeline_mode<synchronous>, transform_indices = @transform_2, window_bounds = array<i64: 1, 128>}, {pipeline_mode = #tpu.pipeline_mode<synchronous>, transform_indices = @transform_3, window_bounds = array<i64: 3, 384, 128>}, {transform_indices = @transform_4, window_bounds = array<i64: 1, 16, 16, 128>}, {transform_indices = @transform_5, window_bounds = array<i64: 1, 2, 128>}]} {
    %c0 = arith.constant 0 : index
    %c0_0 = arith.constant 0 : index
    %0 = vector.load %arg2[%c0, %c0_0] : memref<1x128xf32, #tpu.memory_space<vmem>>, vector<1x128xf32>
    %1 = vector.shape_cast %0 : vector<1x128xf32> to vector<1x1x1x128xf32>
    %c0_1 = arith.constant 0 : index
    %c0_2 = arith.constant 0 : index
    %2 = vector.load %arg3[%c0_1, %c0_2] : memref<1x128xf32, #tpu.memory_space<vmem>>, vector<1x128xf32>
    %3 = vector.shape_cast %2 : vector<1x128xf32> to vector<1x1x1x128xf32>
    %c0_3 = arith.constant 0 : index
    %c0_4 = arith.constant 0 : index
    %c0_5 = arith.constant 0 : index
    %c0_6 = arith.constant 0 : index
    %4 = vector.load %arg1[%c0_3, %c0_4, %c0_5, %c0_6] : memref<1x16x16x128xbf16, #tpu.memory_space<vmem>>, vector<1x16x16x128xbf16>
    %5 = arith.extf %4 : vector<1x16x16x128xbf16> to vector<1x16x16x128xf32>
    %6 = vector.broadcast %1 : vector<1x1x1x128xf32> to vector<1x16x16x128xf32>
    %7 = arith.mulf %5, %6 : vector<1x16x16x128xf32>
    %8 = vector.broadcast %3 : vector<1x1x1x128xf32> to vector<1x16x16x128xf32>
    %9 = arith.addf %7, %8 : vector<1x16x16x128xf32>
    %cst = arith.constant 0.000000e+00 : f32
    %10 = vector.broadcast %cst : f32 to vector<1x16x16x128xf32>
    %11 = arith.maximumf %9, %10 : vector<1x16x16x128xf32>
    %12 = arith.truncf %11 : vector<1x16x16x128xf32> to vector<1x16x16x128xbf16>
    %cst_7 = arith.constant 0.000000e+00 : bf16
    %13 = vector.broadcast %cst_7 : bf16 to vector<1x1x16x128xbf16>
    %cst_8 = arith.constant 0.000000e+00 : bf16
    %14 = vector.broadcast %cst_8 : bf16 to vector<1x18x1x128xbf16>
    %15 = tpu.concatenate %13, %12, %13 in 1 : vector<1x1x16x128xbf16>, vector<1x16x16x128xbf16>, vector<1x1x16x128xbf16> -> vector<1x18x16x128xbf16>
    %16 = tpu.concatenate %14, %15, %14 in 2 : vector<1x18x1x128xbf16>, vector<1x18x16x128xbf16>, vector<1x18x1x128xbf16> -> vector<1x18x18x128xbf16>
    %17 = vector.extract_strided_slice %16 {offsets = [0, 0, 0, 0], sizes = [1, 18, 16, 128], strides = [1, 1, 1, 1]} : vector<1x18x18x128xbf16> to vector<1x18x16x128xbf16>
    %18 = vector.extract_strided_slice %17 {offsets = [0, 0, 0, 0], sizes = [1, 16, 16, 128], strides = [1, 1, 1, 1]} : vector<1x18x16x128xbf16> to vector<1x16x16x128xbf16>
    %19 = vector.extract_strided_slice %17 {offsets = [0, 1, 0, 0], sizes = [1, 16, 16, 128], strides = [1, 1, 1, 1]} : vector<1x18x16x128xbf16> to vector<1x16x16x128xbf16>
    %20 = vector.extract_strided_slice %17 {offsets = [0, 2, 0, 0], sizes = [1, 16, 16, 128], strides = [1, 1, 1, 1]} : vector<1x18x16x128xbf16> to vector<1x16x16x128xbf16>
    %21 = tpu.concatenate %18, %19, %20 in 3 : vector<1x16x16x128xbf16>, vector<1x16x16x128xbf16>, vector<1x16x16x128xbf16> -> vector<1x16x16x384xbf16>
    %22 = vector.shape_cast %21 : vector<1x16x16x384xbf16> to vector<256x384xbf16>
    %c0_9 = arith.constant 0 : index
    %c0_10 = arith.constant 0 : index
    %c0_11 = arith.constant 0 : index
    %23 = vector.load %arg4[%c0_9, %c0_10, %c0_11] : memref<3x384x128xbf16, #tpu.memory_space<vmem>>, vector<1x384x128xbf16>
    %24 = vector.shape_cast %23 : vector<1x384x128xbf16> to vector<384x128xbf16>
    %cst_12 = arith.constant dense<0.000000e+00> : vector<256x128xf32>
    %25 = tpu.matmul %22, %24, %cst_12 {dimension_numbers = #tpu.dot_dimension_numbers<[1], [0], [0], [1], [0, 0, 1, 1], [], []>} : vector<256x384xbf16>, vector<384x128xbf16>, vector<256x128xf32> -> vector<256x128xf32>
    %26 = vector.extract_strided_slice %16 {offsets = [0, 0, 1, 0], sizes = [1, 18, 16, 128], strides = [1, 1, 1, 1]} : vector<1x18x18x128xbf16> to vector<1x18x16x128xbf16>
    %27 = vector.extract_strided_slice %26 {offsets = [0, 0, 0, 0], sizes = [1, 16, 16, 128], strides = [1, 1, 1, 1]} : vector<1x18x16x128xbf16> to vector<1x16x16x128xbf16>
    %28 = vector.extract_strided_slice %26 {offsets = [0, 1, 0, 0], sizes = [1, 16, 16, 128], strides = [1, 1, 1, 1]} : vector<1x18x16x128xbf16> to vector<1x16x16x128xbf16>
    %29 = vector.extract_strided_slice %26 {offsets = [0, 2, 0, 0], sizes = [1, 16, 16, 128], strides = [1, 1, 1, 1]} : vector<1x18x16x128xbf16> to vector<1x16x16x128xbf16>
    %30 = tpu.concatenate %27, %28, %29 in 3 : vector<1x16x16x128xbf16>, vector<1x16x16x128xbf16>, vector<1x16x16x128xbf16> -> vector<1x16x16x384xbf16>
    %31 = vector.shape_cast %30 : vector<1x16x16x384xbf16> to vector<256x384xbf16>
    %c1 = arith.constant 1 : index
    %c0_13 = arith.constant 0 : index
    %c0_14 = arith.constant 0 : index
    %32 = vector.load %arg4[%c1, %c0_13, %c0_14] : memref<3x384x128xbf16, #tpu.memory_space<vmem>>, vector<1x384x128xbf16>
    %33 = vector.shape_cast %32 : vector<1x384x128xbf16> to vector<384x128xbf16>
    %cst_15 = arith.constant dense<0.000000e+00> : vector<256x128xf32>
    %34 = tpu.matmul %31, %33, %cst_15 {dimension_numbers = #tpu.dot_dimension_numbers<[1], [0], [0], [1], [0, 0, 1, 1], [], []>} : vector<256x384xbf16>, vector<384x128xbf16>, vector<256x128xf32> -> vector<256x128xf32>
    %35 = arith.addf %25, %34 : vector<256x128xf32>
    %36 = vector.extract_strided_slice %16 {offsets = [0, 0, 2, 0], sizes = [1, 18, 16, 128], strides = [1, 1, 1, 1]} : vector<1x18x18x128xbf16> to vector<1x18x16x128xbf16>
    %37 = vector.extract_strided_slice %36 {offsets = [0, 0, 0, 0], sizes = [1, 16, 16, 128], strides = [1, 1, 1, 1]} : vector<1x18x16x128xbf16> to vector<1x16x16x128xbf16>
    %38 = vector.extract_strided_slice %36 {offsets = [0, 1, 0, 0], sizes = [1, 16, 16, 128], strides = [1, 1, 1, 1]} : vector<1x18x16x128xbf16> to vector<1x16x16x128xbf16>
    %39 = vector.extract_strided_slice %36 {offsets = [0, 2, 0, 0], sizes = [1, 16, 16, 128], strides = [1, 1, 1, 1]} : vector<1x18x16x128xbf16> to vector<1x16x16x128xbf16>
    %40 = tpu.concatenate %37, %38, %39 in 3 : vector<1x16x16x128xbf16>, vector<1x16x16x128xbf16>, vector<1x16x16x128xbf16> -> vector<1x16x16x384xbf16>
    %41 = vector.shape_cast %40 : vector<1x16x16x384xbf16> to vector<256x384xbf16>
    %c2 = arith.constant 2 : index
    %c0_16 = arith.constant 0 : index
    %c0_17 = arith.constant 0 : index
    %42 = vector.load %arg4[%c2, %c0_16, %c0_17] : memref<3x384x128xbf16, #tpu.memory_space<vmem>>, vector<1x384x128xbf16>
    %43 = vector.shape_cast %42 : vector<1x384x128xbf16> to vector<384x128xbf16>
    %cst_18 = arith.constant dense<0.000000e+00> : vector<256x128xf32>
    %44 = tpu.matmul %41, %43, %cst_18 {dimension_numbers = #tpu.dot_dimension_numbers<[1], [0], [0], [1], [0, 0, 1, 1], [], []>} : vector<256x384xbf16>, vector<384x128xbf16>, vector<256x128xf32> -> vector<256x128xf32>
    %45 = arith.addf %35, %44 : vector<256x128xf32>
    %cst_19 = arith.constant dense<0.000000e+00> : vector<128xf32>
    %46 = vector.multi_reduction <add>, %45, %cst_19 [0] : vector<256x128xf32> to vector<128xf32>
    %47 = vector.shape_cast %46 : vector<128xf32> to vector<1x128xf32>
    %48 = arith.mulf %45, %45 : vector<256x128xf32>
    %cst_20 = arith.constant dense<0.000000e+00> : vector<128xf32>
    %49 = vector.multi_reduction <add>, %48, %cst_20 [0] : vector<256x128xf32> to vector<128xf32>
    %50 = vector.shape_cast %49 : vector<128xf32> to vector<1x128xf32>
    %51 = tpu.concatenate %47, %50 in 0 : vector<1x128xf32>, vector<1x128xf32> -> vector<2x128xf32>
    %52 = vector.shape_cast %51 : vector<2x128xf32> to vector<1x2x128xf32>
    %c0_21 = arith.constant 0 : index
    %c0_22 = arith.constant 0 : index
    %c0_23 = arith.constant 0 : index
    %53 = vector.load %arg6[%c0_21, %c0_22, %c0_23] : memref<1x2x128xf32, #tpu.memory_space<vmem>>, vector<1x2x128xf32>
    tpu.vector_store %arg6[%c0_21, %c0_22, %c0_23], %52 {strides = array<i32>} : memref<1x2x128xf32, #tpu.memory_space<vmem>>, vector<1x2x128xf32>,
    %54 = arith.truncf %45 : vector<256x128xf32> to vector<256x128xbf16>
    %55 = vector.shape_cast %54 : vector<256x128xbf16> to vector<1x16x16x128xbf16>
    %c0_24 = arith.constant 0 : index
    %c0_25 = arith.constant 0 : index
    %c0_26 = arith.constant 0 : index
    %c0_27 = arith.constant 0 : index
    %56 = vector.load %arg5[%c0_24, %c0_25, %c0_26, %c0_27] : memref<1x16x16x128xbf16, #tpu.memory_space<vmem>>, vector<1x16x16x128xbf16>
    tpu.vector_store %arg5[%c0_24, %c0_25, %c0_26, %c0_27], %55 {strides = array<i32>} : memref<1x16x16x128xbf16, #tpu.memory_space<vmem>>, vector<1x16x16x128xbf16>,
    return
  }
  func.func @transform_0(%arg0: i32) -> (i32, i32, i32, i32) {
    %c0_i32 = arith.constant 0 : i32
    %c0_i32_0 = arith.constant 0 : i32
    %c0_i32_1 = arith.constant 0 : i32
    %c0_i32_2 = arith.constant 0 : i32
    return %arg0, %c0_i32, %c0_i32_0, %c0_i32_1 : i32, i32, i32, i32
  }
  func.func @transform_1(%arg0: i32) -> (i32, i32) {
    %c0_i32 = arith.constant 0 : i32
    %c0_i32_0 = arith.constant 0 : i32
    %c0_i32_1 = arith.constant 0 : i32
    return %c0_i32, %c0_i32_0 : i32, i32
  }
  func.func @transform_2(%arg0: i32) -> (i32, i32) {
    %c0_i32 = arith.constant 0 : i32
    %c0_i32_0 = arith.constant 0 : i32
    %c0_i32_1 = arith.constant 0 : i32
    return %c0_i32, %c0_i32_0 : i32, i32
  }
  func.func @transform_3(%arg0: i32) -> (i32, i32, i32) {
    %c0_i32 = arith.constant 0 : i32
    %c0_i32_0 = arith.constant 0 : i32
    %c0_i32_1 = arith.constant 0 : i32
    %c0_i32_2 = arith.constant 0 : i32
    return %c0_i32, %c0_i32_0, %c0_i32_1 : i32, i32, i32
  }
  func.func @transform_4(%arg0: i32) -> (i32, i32, i32, i32) {
    %c0_i32 = arith.constant 0 : i32
    %c0_i32_0 = arith.constant 0 : i32
    %c0_i32_1 = arith.constant 0 : i32
    %c0_i32_2 = arith.constant 0 : i32
    return %arg0, %c0_i32, %c0_i32_0, %c0_i32_1 : i32, i32, i32, i32
  }
  func.func @transform_5(%arg0: i32) -> (i32, i32, i32) {
    %c0_i32 = arith.constant 0 : i32
    %c0_i32_0 = arith.constant 0 : i32
    %c0_i32_1 = arith.constant 0 : i32
    return %arg0, %c0_i32, %c0_i32_0 : i32, i32, i32
  }
}

module attributes {stable_mosaic.version = 11 : i64} {
  func.func @_bn2_add_kernel(%arg0: i32, %arg1: memref<1x16x16x128xbf16, #tpu.memory_space<vmem>>, %arg2: memref<1x128xf32, #tpu.memory_space<vmem>>, %arg3: memref<1x128xf32, #tpu.memory_space<vmem>>, %arg4: memref<1x18x24x128xbf16, #tpu.memory_space<vmem>>, %arg5: memref<1x16x16x128xbf16, #tpu.memory_space<vmem>>) attributes {dimension_semantics = [#tpu.dimension_semantics<parallel>], iteration_bounds = array<i64: 2>, scalar_prefetch = 0 : i64, scratch_operands = 0 : i64, tpu.core_type = #tpu.core_type<tc>, window_params = [{transform_indices = @transform_0, window_bounds = array<i64: 1, 16, 16, 128>}, {pipeline_mode = #tpu.pipeline_mode<synchronous>, transform_indices = @transform_1, window_bounds = array<i64: 1, 128>}, {pipeline_mode = #tpu.pipeline_mode<synchronous>, transform_indices = @transform_2, window_bounds = array<i64: 1, 128>}, {transform_indices = @transform_3, window_bounds = array<i64: 1, 18, 24, 128>}, {transform_indices = @transform_4, window_bounds = array<i64: 1, 16, 16, 128>}]} {
    %c0 = arith.constant 0 : index
    %c0_0 = arith.constant 0 : index
    %0 = vector.load %arg2[%c0, %c0_0] : memref<1x128xf32, #tpu.memory_space<vmem>>, vector<1x128xf32>
    %1 = vector.shape_cast %0 : vector<1x128xf32> to vector<1x1x1x128xf32>
    %c0_1 = arith.constant 0 : index
    %c0_2 = arith.constant 0 : index
    %2 = vector.load %arg3[%c0_1, %c0_2] : memref<1x128xf32, #tpu.memory_space<vmem>>, vector<1x128xf32>
    %3 = vector.shape_cast %2 : vector<1x128xf32> to vector<1x1x1x128xf32>
    %c0_3 = arith.constant 0 : index
    %c0_4 = arith.constant 0 : index
    %c0_5 = arith.constant 0 : index
    %c0_6 = arith.constant 0 : index
    %4 = vector.load %arg1[%c0_3, %c0_4, %c0_5, %c0_6] : memref<1x16x16x128xbf16, #tpu.memory_space<vmem>>, vector<1x16x16x128xbf16>
    %5 = arith.extf %4 : vector<1x16x16x128xbf16> to vector<1x16x16x128xf32>
    %c0_7 = arith.constant 0 : index
    %c0_8 = arith.constant 0 : index
    %c0_9 = arith.constant 0 : index
    %c0_10 = arith.constant 0 : index
    %6 = vector.load %arg4[%c0_7, %c0_8, %c0_9, %c0_10] : memref<1x18x24x128xbf16, #tpu.memory_space<vmem>>, vector<1x18x24x128xbf16>
    %7 = vector.extract_strided_slice %6 {offsets = [0, 1, 1, 0], sizes = [1, 16, 16, 128], strides = [1, 1, 1, 1]} : vector<1x18x24x128xbf16> to vector<1x16x16x128xbf16>
    %8 = arith.extf %7 : vector<1x16x16x128xbf16> to vector<1x16x16x128xf32>
    %9 = vector.broadcast %1 : vector<1x1x1x128xf32> to vector<1x16x16x128xf32>
    %10 = arith.mulf %5, %9 : vector<1x16x16x128xf32>
    %11 = vector.broadcast %3 : vector<1x1x1x128xf32> to vector<1x16x16x128xf32>
    %12 = arith.addf %10, %11 : vector<1x16x16x128xf32>
    %13 = arith.addf %12, %8 : vector<1x16x16x128xf32>
    %cst = arith.constant 0.000000e+00 : f32
    %14 = vector.broadcast %cst : f32 to vector<1x16x16x128xf32>
    %15 = arith.maximumf %13, %14 : vector<1x16x16x128xf32>
    %16 = arith.truncf %15 : vector<1x16x16x128xf32> to vector<1x16x16x128xbf16>
    %c0_11 = arith.constant 0 : index
    %c0_12 = arith.constant 0 : index
    %c0_13 = arith.constant 0 : index
    %c0_14 = arith.constant 0 : index
    %17 = vector.load %arg5[%c0_11, %c0_12, %c0_13, %c0_14] : memref<1x16x16x128xbf16, #tpu.memory_space<vmem>>, vector<1x16x16x128xbf16>
    tpu.vector_store %arg5[%c0_11, %c0_12, %c0_13, %c0_14], %16 {strides = array<i32>} : memref<1x16x16x128xbf16, #tpu.memory_space<vmem>>, vector<1x16x16x128xbf16>,
    return
  }
  func.func @transform_0(%arg0: i32) -> (i32, i32, i32, i32) {
    %c0_i32 = arith.constant 0 : i32
    %c0_i32_0 = arith.constant 0 : i32
    %c0_i32_1 = arith.constant 0 : i32
    %c0_i32_2 = arith.constant 0 : i32
    return %arg0, %c0_i32, %c0_i32_0, %c0_i32_1 : i32, i32, i32, i32
  }
  func.func @transform_1(%arg0: i32) -> (i32, i32) {
    %c0_i32 = arith.constant 0 : i32
    %c0_i32_0 = arith.constant 0 : i32
    %c0_i32_1 = arith.constant 0 : i32
    return %c0_i32, %c0_i32_0 : i32, i32
  }
  func.func @transform_2(%arg0: i32) -> (i32, i32) {
    %c0_i32 = arith.constant 0 : i32
    %c0_i32_0 = arith.constant 0 : i32
    %c0_i32_1 = arith.constant 0 : i32
    return %c0_i32, %c0_i32_0 : i32, i32
  }
  func.func @transform_3(%arg0: i32) -> (i32, i32, i32, i32) {
    %c0_i32 = arith.constant 0 : i32
    %c0_i32_0 = arith.constant 0 : i32
    %c0_i32_1 = arith.constant 0 : i32
    %c0_i32_2 = arith.constant 0 : i32
    return %arg0, %c0_i32, %c0_i32_0, %c0_i32_1 : i32, i32, i32, i32
  }
  func.func @transform_4(%arg0: i32) -> (i32, i32, i32, i32) {
    %c0_i32 = arith.constant 0 : i32
    %c0_i32_0 = arith.constant 0 : i32
    %c0_i32_1 = arith.constant 0 : i32
    %c0_i32_2 = arith.constant 0 : i32
    return %arg0, %c0_i32, %c0_i32_0, %c0_i32_1 : i32, i32, i32, i32
  }
}

</mosaic_0001>

<bundles_post_ra>
// kernel: basic_block_nchw.5
= control target key start
LH: loop header
LB: loop body
LE: loop exit
PB: predicated region body
PF: predicated region fallthrough
CT: control target
= control target key end

     0   :  { %s1153_s15 = smov 0   ;;  %s1350_s0 = inlined_call_operand.vmem [shape: bf16[2,16,16,128], index: 0, kind: input, shape index: {}]   ;;  %s1351_s1 = inlined_call_operand.vmem [shape: f32[1,128], index: 1, kind: input, shape index: {}]   ;;  %s1352_s2 = inlined_call_operand.vmem [shape: f32[1,128], index: 2, kind: input, shape index: {}]   ;;  %s1353_s3 = inlined_call_operand.vmem [shape: bf16[2,18,24,128], index: 3, kind: input, shape index: {}]   ;;  %s1354_s4 = inlined_call_operand.vmem [shape: bf16[2,16,16,128], index: 4, kind: output, shape index: {}]  }
   0x1 LB: > { %s806_s16 = sadd.s32 4294967295, %s1126_s15   ;;  %p810_p0 = scmp.ge.s32.totalorder %s1126_s15, 1  ;;  %s1126_s15 = sphi %s1153_s15, %s14_s15  }
   0x2   : > { %p172_p1 = scmp.lt.s32.totalorder %s1126_s15, 3 }
   0x4   : > { %p173_p2 = pnand %p810_p0, %p172_p1 }
   0x5   : > { %p203_p3 = scmp.lt.s32.totalorder (!%p173_p2), %s806_s16, 1 }
   0x6   : > { %176 = sbr.rel (%p173_p2) target bundleno = 98 (0x62), region = 36 }
   0xb   : > { %s1356_s16 = smov (!%p203_p3, %s806_s16), 1  ;;  %v1175_v0 = vld [vmem:[%s1351_s1] ss:$0 sm:$0xff]  ;;  %vm498_vm0 = vcmask 1046528  }
   0xc   : > { %s818_s17 = sshll.u32 %s1356_s16, 7  ;;  %s1109_s18 = smul.u32 216, %s1356_s16  ;;  %v1186_v2 = vld [vmem:[%s1352_s2] ss:$0 sm:$0xff] }
   0xd   : > { %s1170_s21 = scalar_lea.vmem %s1350_s0, %s818_s17  ;;  %s1212_s5 = scalar_lea.vmem %s1354_s4, %s818_s17 }
   0xe   : > { %s1180_s26 = scalar_lea.vmem %s1353_s3, %s1109_s18  ;;  %v821_v1 = vld [vmem:[%s1170_s21] sm:$0xff]   ;;  %v1056_v3 = vld [vmem:[%s1170_s21 + $0x8] sm:$0xff]   ;;  %v1057_v28 = vld [vmem:[%s1170_s21 + $0x10] sm:$0xff]  }
   0xf   : > { %v822_v4 = vunpack.c.l.bf16 %v821_v1  ;;  %v823_v5 = vunpack.c.h.bf16 %v821_v1  ;;  %v284_v6 = vld [vmem:[%s1180_s26 + $0xc] sm:$0xf]  ;;  %v1071_v7 = vld [vmem:[%s1180_s26 + $0x10] sm:$0xff]   ;;  %v826_v8 = vunpack.c.l.bf16 %v1056_v3  ;;  %v827_v9 = vunpack.c.h.bf16 %v1056_v3  ;;  %v1072_v10 = vld [vmem:[%s1180_s26 + $0x18] sm:$0xff]  }
  0x10   : > { %v886_v11 = vunpack.c.l.bf16 %v1071_v7  ;;  %v887_v12 = vunpack.c.h.bf16 %v1071_v7  ;;  %v332_v13 = vunpack.c.l.bf16 %v284_v6  ;;  %v890_v14 = vunpack.c.l.bf16 %v1072_v10  ;;  %v1073_v15 = vld [vmem:[%s1180_s26 + $0x20] sm:$0xff]   ;;  %v1074_v37 = vld [vmem:[%s1180_s26 + $0x28] sm:$0xff]   ;;  %v1058_v50 = vld [vmem:[%s1170_s21 + $0x18] sm:$0xff]  }
  0x11   : > { %v383_v16 = vmul.f32 %v1175_v0, %v822_v4  ;;  %v384_v17 = vmul.f32 %v1175_v0, %v823_v5  ;;  %v891_v18 = vunpack.c.h.bf16 %v1072_v10  ;;  %v894_v19 = vunpack.c.l.bf16 %v1073_v15  ;;  %v1075_v51 = vld [vmem:[%s1180_s26 + $0x30] sm:$0xff]   ;;  %v1076_v60 = vld [vmem:[%s1180_s26 + $0x38] sm:$0xff]   ;;  %v1059_v3 = vld [vmem:[%s1170_s21 + $0x20] sm:$0xff]  }
  0x12   : > { %v499_v20 = vrot.slane %v332_v13, 1  ;;  %v500_v21 = vrot.slane %v886_v11, 1  ;;  %v502_v22 = vrot.slane %v887_v12, 1  ;;  %v385_v23 = vmul.f32 %v1175_v0, %v826_v8 }
  0x13   : > { %v418_v24 = vadd.f32 %v1186_v2, %v383_v16  ;;  %v419_v25 = vadd.f32 %v1186_v2, %v384_v17  ;;  %v386_v26 = vmul.f32 %v1175_v0, %v827_v9  ;;  %v504_v27 = vrot.slane %v890_v14, 1  ;;  %v1077_v16 = vld [vmem:[%s1180_s26 + $0x40] sm:$0xff]  }
  0x14   : > { %v501_v29 = vsel %vm498_vm0, %v499_v20, %v500_v21  ;;  %v503_v30 = vsel %vm498_vm0, %v500_v21, %v502_v22  ;;  %v420_v31 = vadd.f32 %v1186_v2, %v385_v23  ;;  %v505_v32 = vrot.slane %v891_v18, 1 }
  0x15   : > { %v611_v33 = vadd.f32 %v501_v29, %v418_v24  ;;  %v612_v34 = vadd.f32 %v503_v30, %v419_v25  ;;  %v421_v35 = vadd.f32 %v1186_v2, %v386_v26  ;;  %v507_v36 = vrot.slane %v894_v19, 1  ;;  %v1060_v25 = vld [vmem:[%s1170_s21 + $0x28] sm:$0xff]  }
  0x16   : > { %v506_v38 = vsel %vm498_vm0, %v504_v27, %v505_v32  ;;  %v830_v39 = vunpack.c.l.bf16 %v1057_v28  ;;  %v831_v40 = vunpack.c.h.bf16 %v1057_v28  ;;  %v895_v41 = vunpack.c.h.bf16 %v1073_v15 }
  0x17   : > { %v643_v42 = vmax.f32 %v611_v33, 0.0  ;;  %v644_v43 = vmax.f32 %v612_v34, 0.0  ;;  %v508_v44 = vsel %vm498_vm0, %v505_v32, %v507_v36  ;;  %v613_v45 = vadd.f32 %v506_v38, %v420_v31  ;;  %v1078_v34 = vld [vmem:[%s1180_s26 + $0x48] sm:$0xff]  }
  0x18   : > { %v614_v46 = vadd.f32 %v508_v44, %v421_v35  ;;  %v898_v47 = vunpack.c.l.bf16 %v1074_v37  ;;  %v899_v48 = vunpack.c.h.bf16 %v1074_v37  ;;  %v387_v49 = vmul.f32 %v1175_v0, %v830_v39  ;;  %v1079_v39 = vld [vmem:[%s1180_s26 + $0x50] sm:$0xff]  }
  0x19   : > { %v979_v52 = vpack.c.bf16 %v644_v43, %v643_v42  ;;  %v645_v53 = vmax.f32 %v613_v45, 0.0  ;;  %v388_v54 = vmul.f32 %v1175_v0, %v831_v40  ;;  %v509_v55 = vrot.slane %v895_v41, 1 }
  0x1a   : > { %v646_v56 = vmax.f32 %v614_v46, 0.0  ;;  %v422_v57 = vadd.f32 %v1186_v2, %v387_v49  ;;  %v510_v58 = vrot.slane %v898_v47, 1  ;;  %v512_v59 = vrot.slane %v899_v48, 1  ;;  %v1061_v48 = vld [vmem:[%s1170_s21 + $0x30] sm:$0xff]  }
  0x1b   : > { %980 = vst [vmem:[%s1212_s5] sm:$0xff] %v979_v52   ;;  %v423_v61 = vadd.f32 %v1186_v2, %v388_v54  ;;  %v834_v62 = vunpack.c.l.bf16 %v1058_v50  ;;  %v835_v63 = vunpack.c.h.bf16 %v1058_v50  ;;  %v902_v1 = vunpack.c.l.bf16 %v1075_v51 }
  0x1c   : > { %v984_v4 = vpack.c.bf16 %v646_v56, %v645_v53  ;;  %v511_v5 = vsel %vm498_vm0, %v509_v55, %v510_v58  ;;  %v513_v6 = vsel %vm498_vm0, %v510_v58, %v512_v59  ;;  %v903_v7 = vunpack.c.h.bf16 %v1075_v51 }
  0x1d   : > { %v615_v8 = vadd.f32 %v511_v5, %v422_v57  ;;  %v616_v9 = vadd.f32 %v513_v6, %v423_v61  ;;  %v906_v10 = vunpack.c.l.bf16 %v1076_v60  ;;  %v389_v11 = vmul.f32 %v1175_v0, %v834_v62  ;;  %v1080_v57 = vld [vmem:[%s1180_s26 + $0x58] sm:$0xff]  }
  0x1e   : > { %1094 = vst [vmem:[%s1212_s5 + $0x8] sm:$0xff] %v984_v4   ;;  %v390_v12 = vmul.f32 %v1175_v0, %v835_v63  ;;  %v514_v13 = vrot.slane %v902_v1, 1  ;;  %v515_v14 = vrot.slane %v903_v7, 1  ;;  %v838_v15 = vunpack.c.l.bf16 %v1059_v3 }
  0x1f   : > { %v647_v17 = vmax.f32 %v615_v8, 0.0  ;;  %v648_v18 = vmax.f32 %v616_v9, 0.0  ;;  %v424_v19 = vadd.f32 %v1186_v2, %v389_v11  ;;  %v517_v20 = vrot.slane %v906_v10, 1  ;;  %v1062_v8 = vld [vmem:[%s1170_s21 + $0x38] sm:$0xff]  }
  0x20   : > { %v425_v21 = vadd.f32 %v1186_v2, %v390_v12  ;;  %v516_v22 = vsel %vm498_vm0, %v514_v13, %v515_v14  ;;  %v839_v23 = vunpack.c.h.bf16 %v1059_v3  ;;  %v907_v24 = vunpack.c.h.bf16 %v1076_v60 }
  0x21   : > { %v989_v26 = vpack.c.bf16 %v648_v18, %v647_v17  ;;  %v518_v27 = vsel %vm498_vm0, %v515_v14, %v517_v20  ;;  %v617_v28 = vadd.f32 %v516_v22, %v424_v19  ;;  %v910_v29 = vunpack.c.l.bf16 %v1077_v16  ;;  %v1081_v17 = vld [vmem:[%s1180_s26 + $0x60] sm:$0xff]   ;;  %v1082_v22 = vld [vmem:[%s1180_s26 + $0x68] sm:$0xff]  }
  0x22   : > { %v618_v30 = vadd.f32 %v518_v27, %v425_v21  ;;  %v911_v31 = vunpack.c.h.bf16 %v1077_v16  ;;  %v391_v32 = vmul.f32 %v1175_v0, %v838_v15  ;;  %v392_v33 = vmul.f32 %v1175_v0, %v839_v23  ;;  %v1063_v27 = vld [vmem:[%s1170_s21 + $0x40] sm:$0xff]  }
  0x23   : > { %1095 = vst [vmem:[%s1212_s5 + $0x10] sm:$0xff] %v989_v26   ;;  %v649_v35 = vmax.f32 %v617_v28, 0.0  ;;  %v519_v36 = vrot.slane %v907_v24, 1  ;;  %v520_v37 = vrot.slane %v910_v29, 1  ;;  %v842_v38 = vunpack.c.l.bf16 %v1060_v25 }
  0x24   : > { %v650_v40 = vmax.f32 %v618_v30, 0.0  ;;  %v426_v41 = vadd.f32 %v1186_v2, %v391_v32  ;;  %v427_v42 = vadd.f32 %v1186_v2, %v392_v33  ;;  %v522_v43 = vrot.slane %v911_v31, 1 }
  0x25   : > { %v521_v44 = vsel %vm498_vm0, %v519_v36, %v520_v37  ;;  %v843_v45 = vunpack.c.h.bf16 %v1060_v25  ;;  %v914_v46 = vunpack.c.l.bf16 %v1078_v34  ;;  %v915_v47 = vunpack.c.h.bf16 %v1078_v34 }
  0x26   : > { %v994_v49 = vpack.c.bf16 %v650_v40, %v649_v35  ;;  %v523_v50 = vsel %vm498_vm0, %v520_v37, %v522_v43  ;;  %v619_v51 = vadd.f32 %v521_v44, %v426_v41  ;;  %v918_v52 = vunpack.c.l.bf16 %v1079_v39  ;;  %v1083_v40 = vld [vmem:[%s1180_s26 + $0x70] sm:$0xff]  }
  0x27   : > { %v620_v53 = vadd.f32 %v523_v50, %v427_v42  ;;  %v393_v54 = vmul.f32 %v1175_v0, %v842_v38  ;;  %v394_v55 = vmul.f32 %v1175_v0, %v843_v45  ;;  %v524_v56 = vrot.slane %v914_v46, 1 }
  0x28   : > { %1096 = vst [vmem:[%s1212_s5 + $0x18] sm:$0xff] %v994_v49   ;;  %v651_v58 = vmax.f32 %v619_v51, 0.0  ;;  %v525_v59 = vrot.slane %v915_v47, 1  ;;  %v527_v60 = vrot.slane %v918_v52, 1  ;;  %v846_v61 = vunpack.c.l.bf16 %v1061_v48  ;;  %v1064_v49 = vld [vmem:[%s1170_s21 + $0x48] sm:$0xff]  }
  0x29   : > { %v652_v62 = vmax.f32 %v620_v53, 0.0  ;;  %v428_v63 = vadd.f32 %v1186_v2, %v393_v54  ;;  %v429_v1 = vadd.f32 %v1186_v2, %v394_v55  ;;  %v847_v3 = vunpack.c.h.bf16 %v1061_v48 }
  0x2a   : > { %v526_v4 = vsel %vm498_vm0, %v524_v56, %v525_v59  ;;  %v528_v5 = vsel %vm498_vm0, %v525_v59, %v527_v60  ;;  %v919_v6 = vunpack.c.h.bf16 %v1079_v39  ;;  %v922_v7 = vunpack.c.l.bf16 %v1080_v57 }
  0x2b   : > { %v999_v9 = vpack.c.bf16 %v652_v62, %v651_v58  ;;  %v621_v10 = vadd.f32 %v526_v4, %v428_v63  ;;  %v622_v11 = vadd.f32 %v528_v5, %v429_v1  ;;  %v923_v12 = vunpack.c.h.bf16 %v1080_v57  ;;  %v1084_v58 = vld [vmem:[%s1180_s26 + $0x78] sm:$0xff]   ;;  %v1085_v63 = vld [vmem:[%s1180_s26 + $0x80] sm:$0xff]  }
  0x2c   : > { %v395_v13 = vmul.f32 %v1175_v0, %v846_v61  ;;  %v396_v14 = vmul.f32 %v1175_v0, %v847_v3  ;;  %v529_v15 = vrot.slane %v919_v6, 1  ;;  %v530_v16 = vrot.slane %v922_v7, 1 }
  0x2d   : > { %1097 = vst [vmem:[%s1212_s5 + $0x20] sm:$0xff] %v999_v9   ;;  %v653_v18 = vmax.f32 %v621_v10, 0.0  ;;  %v654_v19 = vmax.f32 %v622_v11, 0.0  ;;  %v532_v20 = vrot.slane %v923_v12, 1  ;;  %v850_v21 = vunpack.c.l.bf16 %v1062_v8  ;;  %v1065_v10 = vld [vmem:[%s1170_s21 + $0x50] sm:$0xff]  }
  0x2e   : > { %v430_v23 = vadd.f32 %v1186_v2, %v395_v13  ;;  %v431_v24 = vadd.f32 %v1186_v2, %v396_v14  ;;  %v531_v25 = vsel %vm498_vm0, %v529_v15, %v530_v16  ;;  %v851_v26 = vunpack.c.h.bf16 %v1062_v8 }
  0x2f   : > { %v1004_v28 = vpack.c.bf16 %v654_v19, %v653_v18  ;;  %v533_v29 = vsel %vm498_vm0, %v530_v16, %v532_v20  ;;  %v926_v30 = vunpack.c.l.bf16 %v1081_v17  ;;  %v927_v31 = vunpack.c.h.bf16 %v1081_v17  ;;  %v1086_v19 = vld [vmem:[%s1180_s26 + $0x88] sm:$0xff]  }
  0x30   : > { %v623_v32 = vadd.f32 %v531_v25, %v430_v23  ;;  %v624_v33 = vadd.f32 %v533_v29, %v431_v24  ;;  %v930_v34 = vunpack.c.l.bf16 %v1082_v22  ;;  %v397_v35 = vmul.f32 %v1175_v0, %v850_v21 }
  0x31   : > { %1098 = vst [vmem:[%s1212_s5 + $0x28] sm:$0xff] %v1004_v28   ;;  %v398_v36 = vmul.f32 %v1175_v0, %v851_v26  ;;  %v534_v37 = vrot.slane %v926_v30, 1  ;;  %v535_v38 = vrot.slane %v927_v31, 1  ;;  %v854_v39 = vunpack.c.l.bf16 %v1063_v27 }
  0x32   : > { %v655_v41 = vmax.f32 %v623_v32, 0.0  ;;  %v656_v42 = vmax.f32 %v624_v33, 0.0  ;;  %v432_v43 = vadd.f32 %v1186_v2, %v397_v35  ;;  %v537_v44 = vrot.slane %v930_v34, 1  ;;  %v1066_v32 = vld [vmem:[%s1170_s21 + $0x58] sm:$0xff]  }
  0x33   : > { %v433_v45 = vadd.f32 %v1186_v2, %v398_v36  ;;  %v536_v46 = vsel %vm498_vm0, %v534_v37, %v535_v38  ;;  %v855_v47 = vunpack.c.h.bf16 %v1063_v27  ;;  %v931_v48 = vunpack.c.h.bf16 %v1082_v22 }
  0x34   : > { %v1009_v50 = vpack.c.bf16 %v656_v42, %v655_v41  ;;  %v538_v51 = vsel %vm498_vm0, %v535_v38, %v537_v44  ;;  %v625_v52 = vadd.f32 %v536_v46, %v432_v43  ;;  %v934_v53 = vunpack.c.l.bf16 %v1083_v40  ;;  %v1087_v41 = vld [vmem:[%s1180_s26 + $0x90] sm:$0xff]   ;;  %v1088_v46 = vld [vmem:[%s1180_s26 + $0x98] sm:$0xff]  }
  0x35   : > { %v626_v54 = vadd.f32 %v538_v51, %v433_v45  ;;  %v935_v55 = vunpack.c.h.bf16 %v1083_v40  ;;  %v399_v56 = vmul.f32 %v1175_v0, %v854_v39  ;;  %v400_v57 = vmul.f32 %v1175_v0, %v855_v47  ;;  %v1067_v51 = vld [vmem:[%s1170_s21 + $0x60] sm:$0xff]  }
  0x36   : > { %1099 = vst [vmem:[%s1212_s5 + $0x30] sm:$0xff] %v1009_v50   ;;  %v657_v59 = vmax.f32 %v625_v52, 0.0  ;;  %v539_v60 = vrot.slane %v931_v48, 1  ;;  %v540_v61 = vrot.slane %v934_v53, 1  ;;  %v858_v62 = vunpack.c.l.bf16 %v1064_v49 }
  0x37   : > { %v658_v1 = vmax.f32 %v626_v54, 0.0  ;;  %v434_v3 = vadd.f32 %v1186_v2, %v399_v56  ;;  %v435_v4 = vadd.f32 %v1186_v2, %v400_v57  ;;  %v542_v5 = vrot.slane %v935_v55, 1 }
  0x38   : > { %v541_v6 = vsel %vm498_vm0, %v539_v60, %v540_v61  ;;  %v859_v7 = vunpack.c.h.bf16 %v1064_v49  ;;  %v938_v8 = vunpack.c.l.bf16 %v1084_v58  ;;  %v939_v9 = vunpack.c.h.bf16 %v1084_v58 }
  0x39   : > { %v1014_v11 = vpack.c.bf16 %v658_v1, %v657_v59  ;;  %v543_v12 = vsel %vm498_vm0, %v540_v61, %v542_v5  ;;  %v627_v13 = vadd.f32 %v541_v6, %v434_v3  ;;  %v942_v14 = vunpack.c.l.bf16 %v1085_v63  ;;  %v1089_v1 = vld [vmem:[%s1180_s26 + $0xa0] sm:$0xff]  }
  0x3a   : > { %v628_v15 = vadd.f32 %v543_v12, %v435_v4  ;;  %v401_v16 = vmul.f32 %v1175_v0, %v858_v62  ;;  %v402_v17 = vmul.f32 %v1175_v0, %v859_v7  ;;  %v544_v18 = vrot.slane %v938_v8, 1 }
  0x3b   : > { %1100 = vst [vmem:[%s1212_s5 + $0x38] sm:$0xff] %v1014_v11   ;;  %v659_v20 = vmax.f32 %v627_v13, 0.0  ;;  %v545_v21 = vrot.slane %v939_v9, 1  ;;  %v547_v22 = vrot.slane %v942_v14, 1  ;;  %v862_v23 = vunpack.c.l.bf16 %v1065_v10  ;;  %v1068_v11 = vld [vmem:[%s1170_s21 + $0x68] sm:$0xff]  }
  0x3c   : > { %v660_v24 = vmax.f32 %v628_v15, 0.0  ;;  %v436_v25 = vadd.f32 %v1186_v2, %v401_v16  ;;  %v437_v26 = vadd.f32 %v1186_v2, %v402_v17  ;;  %v863_v27 = vunpack.c.h.bf16 %v1065_v10 }
  0x3d   : > { %v546_v28 = vsel %vm498_vm0, %v544_v18, %v545_v21  ;;  %v548_v29 = vsel %vm498_vm0, %v545_v21, %v547_v22  ;;  %v943_v30 = vunpack.c.h.bf16 %v1085_v63  ;;  %v946_v31 = vunpack.c.l.bf16 %v1086_v19 }
  0x3e   : > { %v1019_v33 = vpack.c.bf16 %v660_v24, %v659_v20  ;;  %v629_v34 = vadd.f32 %v546_v28, %v436_v25  ;;  %v630_v35 = vadd.f32 %v548_v29, %v437_v26  ;;  %v947_v36 = vunpack.c.h.bf16 %v1086_v19  ;;  %v1090_v20 = vld [vmem:[%s1180_s26 + $0xa8] sm:$0xff]   ;;  %v1091_v25 = vld [vmem:[%s1180_s26 + $0xb0] sm:$0xff]  }
  0x3f   : > { %v403_v37 = vmul.f32 %v1175_v0, %v862_v23  ;;  %v404_v38 = vmul.f32 %v1175_v0, %v863_v27  ;;  %v549_v39 = vrot.slane %v943_v30, 1  ;;  %v550_v40 = vrot.slane %v946_v31, 1 }
  0x40   : > { %1101 = vst [vmem:[%s1212_s5 + $0x40] sm:$0xff] %v1019_v33   ;;  %v661_v42 = vmax.f32 %v629_v34, 0.0  ;;  %v662_v43 = vmax.f32 %v630_v35, 0.0  ;;  %v552_v44 = vrot.slane %v947_v36, 1  ;;  %v866_v45 = vunpack.c.l.bf16 %v1066_v32  ;;  %v1069_v34 = vld [vmem:[%s1170_s21 + $0x70] sm:$0xff]  }
  0x41   : > { %v438_v47 = vadd.f32 %v1186_v2, %v403_v37  ;;  %v439_v48 = vadd.f32 %v1186_v2, %v404_v38  ;;  %v551_v49 = vsel %vm498_vm0, %v549_v39, %v550_v40  ;;  %v867_v50 = vunpack.c.h.bf16 %v1066_v32 }
  0x42   : > { %v1024_v52 = vpack.c.bf16 %v662_v43, %v661_v42  ;;  %v553_v53 = vsel %vm498_vm0, %v550_v40, %v552_v44  ;;  %v950_v54 = vunpack.c.l.bf16 %v1087_v41  ;;  %v951_v55 = vunpack.c.h.bf16 %v1087_v41  ;;  %v1092_v43 = vld [vmem:[%s1180_s26 + $0xb8] sm:$0xff]  }
  0x43   : > { %v631_v56 = vadd.f32 %v551_v49, %v438_v47  ;;  %v632_v57 = vadd.f32 %v553_v53, %v439_v48  ;;  %v954_v58 = vunpack.c.l.bf16 %v1088_v46  ;;  %v405_v59 = vmul.f32 %v1175_v0, %v866_v45 }
  0x44   : > { %1102 = vst [vmem:[%s1212_s5 + $0x48] sm:$0xff] %v1024_v52   ;;  %v406_v60 = vmul.f32 %v1175_v0, %v867_v50  ;;  %v554_v61 = vrot.slane %v950_v54, 1  ;;  %v555_v62 = vrot.slane %v951_v55, 1  ;;  %v870_v63 = vunpack.c.l.bf16 %v1067_v51 }
  0x45   : > { %v663_v3 = vmax.f32 %v631_v56, 0.0  ;;  %v664_v4 = vmax.f32 %v632_v57, 0.0  ;;  %v440_v5 = vadd.f32 %v1186_v2, %v405_v59  ;;  %v557_v6 = vrot.slane %v954_v58, 1  ;;  %v1070_v56 = vld [vmem:[%s1170_s21 + $0x78] sm:$0xff]  }
  0x46   : > { %v441_v7 = vadd.f32 %v1186_v2, %v406_v60  ;;  %v556_v8 = vsel %vm498_vm0, %v554_v61, %v555_v62  ;;  %v871_v9 = vunpack.c.h.bf16 %v1067_v51  ;;  %v955_v10 = vunpack.c.h.bf16 %v1088_v46 }
  0x47   : > { %v1029_v12 = vpack.c.bf16 %v664_v4, %v663_v3  ;;  %v558_v13 = vsel %vm498_vm0, %v555_v62, %v557_v6  ;;  %v633_v14 = vadd.f32 %v556_v8, %v440_v5  ;;  %v958_v15 = vunpack.c.l.bf16 %v1089_v1  ;;  %v1093_v3 = vld [vmem:[%s1180_s26 + $0xc0] sm:$0xff]   ;;  %v331_v8 = vld [vmem:[%s1180_s26 + $0xc8] sm:$0xf] }
  0x48   : > { %v634_v16 = vadd.f32 %v558_v13, %v441_v7  ;;  %v959_v17 = vunpack.c.h.bf16 %v1089_v1  ;;  %v407_v18 = vmul.f32 %v1175_v0, %v870_v63  ;;  %v408_v19 = vmul.f32 %v1175_v0, %v871_v9 }
  0x49   : > { %1103 = vst [vmem:[%s1212_s5 + $0x50] sm:$0xff] %v1029_v12   ;;  %v665_v21 = vmax.f32 %v633_v14, 0.0  ;;  %v559_v22 = vrot.slane %v955_v10, 1  ;;  %v560_v23 = vrot.slane %v958_v15, 1  ;;  %v874_v24 = vunpack.c.l.bf16 %v1068_v11 }
  0x4a   : > { %v666_v26 = vmax.f32 %v634_v16, 0.0  ;;  %v442_v27 = vadd.f32 %v1186_v2, %v407_v18  ;;  %v443_v28 = vadd.f32 %v1186_v2, %v408_v19  ;;  %v562_v29 = vrot.slane %v959_v17, 1 }
  0x4b   : > { %v561_v30 = vsel %vm498_vm0, %v559_v22, %v560_v23  ;;  %v875_v31 = vunpack.c.h.bf16 %v1068_v11  ;;  %v962_v32 = vunpack.c.l.bf16 %v1090_v20  ;;  %v963_v33 = vunpack.c.h.bf16 %v1090_v20 }
  0x4c   : > { %v1034_v35 = vpack.c.bf16 %v666_v26, %v665_v21  ;;  %v563_v36 = vsel %vm498_vm0, %v560_v23, %v562_v29  ;;  %v635_v37 = vadd.f32 %v561_v30, %v442_v27  ;;  %v966_v38 = vunpack.c.l.bf16 %v1091_v25 }
  0x4d   : > { %v636_v39 = vadd.f32 %v563_v36, %v443_v28  ;;  %v409_v40 = vmul.f32 %v1175_v0, %v874_v24  ;;  %v410_v41 = vmul.f32 %v1175_v0, %v875_v31  ;;  %v564_v42 = vrot.slane %v962_v32, 1 }
  0x4e   : > { %1104 = vst [vmem:[%s1212_s5 + $0x58] sm:$0xff] %v1034_v35   ;;  %v667_v44 = vmax.f32 %v635_v37, 0.0  ;;  %v565_v45 = vrot.slane %v963_v33, 1  ;;  %v567_v46 = vrot.slane %v966_v38, 1  ;;  %v878_v47 = vunpack.c.l.bf16 %v1069_v34 }
  0x4f   : > { %v668_v48 = vmax.f32 %v636_v39, 0.0  ;;  %v444_v49 = vadd.f32 %v1186_v2, %v409_v40  ;;  %v445_v50 = vadd.f32 %v1186_v2, %v410_v41  ;;  %v879_v51 = vunpack.c.h.bf16 %v1069_v34 }
  0x50   : > { %v566_v52 = vsel %vm498_vm0, %v564_v42, %v565_v45  ;;  %v568_v53 = vsel %vm498_vm0, %v565_v45, %v567_v46  ;;  %v967_v54 = vunpack.c.h.bf16 %v1091_v25  ;;  %v970_v55 = vunpack.c.l.bf16 %v1092_v43 }
  0x51   : > { %v1039_v57 = vpack.c.bf16 %v668_v48, %v667_v44  ;;  %v637_v58 = vadd.f32 %v566_v52, %v444_v49  ;;  %v638_v59 = vadd.f32 %v568_v53, %v445_v50  ;;  %v971_v60 = vunpack.c.h.bf16 %v1092_v43 }
  0x52   : > { %v411_v61 = vmul.f32 %v1175_v0, %v878_v47  ;;  %v412_v62 = vmul.f32 %v1175_v0, %v879_v51  ;;  %v569_v63 = vrot.slane %v967_v54, 1  ;;  %v570_v1 = vrot.slane %v970_v55, 1 }
  0x53   : > { %1105 = vst [vmem:[%s1212_s5 + $0x60] sm:$0xff] %v1039_v57   ;;  %v669_v4 = vmax.f32 %v637_v58, 0.0  ;;  %v670_v5 = vmax.f32 %v638_v59, 0.0  ;;  %v572_v6 = vrot.slane %v971_v60, 1  ;;  %v882_v7 = vunpack.c.l.bf16 %v1070_v56 }
  0x54   : > { %v446_v9 = vadd.f32 %v1186_v2, %v411_v61  ;;  %v447_v10 = vadd.f32 %v1186_v2, %v412_v62  ;;  %v571_v11 = vsel %vm498_vm0, %v569_v63, %v570_v1  ;;  %v883_v12 = vunpack.c.h.bf16 %v1070_v56 }
  0x55   : > { %v1044_v13 = vpack.c.bf16 %v670_v5, %v669_v4  ;;  %v573_v14 = vsel %vm498_vm0, %v570_v1, %v572_v6  ;;  %v974_v15 = vunpack.c.l.bf16 %v1093_v3  ;;  %v975_v16 = vunpack.c.h.bf16 %v1093_v3 }
  0x56   : > { %v639_v17 = vadd.f32 %v571_v11, %v446_v9  ;;  %v640_v18 = vadd.f32 %v573_v14, %v447_v10  ;;  %v379_v19 = vunpack.c.l.bf16 %v331_v8  ;;  %v413_v20 = vmul.f32 %v1175_v0, %v882_v7 }
  0x57   : > { %1106 = vst [vmem:[%s1212_s5 + $0x68] sm:$0xff] %v1044_v13   ;;  %v414_v21 = vmul.f32 %v1175_v0, %v883_v12  ;;  %v574_v22 = vrot.slane %v974_v15, 1  ;;  %v575_v23 = vrot.slane %v975_v16, 1 }
  0x58   : > { %v671_v24 = vmax.f32 %v639_v17, 0.0  ;;  %v672_v25 = vmax.f32 %v640_v18, 0.0  ;;  %v448_v26 = vadd.f32 %v1186_v2, %v413_v20  ;;  %v577_v27 = vrot.slane %v379_v19, 1 }
  0x59   : > { %v449_v28 = vadd.f32 %v1186_v2, %v414_v21  ;;  %v576_v29 = vsel %vm498_vm0, %v574_v22, %v575_v23 }
  0x5a   : > { %v1049_v30 = vpack.c.bf16 %v672_v25, %v671_v24  ;;  %v578_v31 = vsel %vm498_vm0, %v575_v23, %v577_v27  ;;  %v641_v32 = vadd.f32 %v576_v29, %v448_v26 }
  0x5b   : > { %v642_v33 = vadd.f32 %v578_v31, %v449_v28 }
  0x5c   : > { %1107 = vst [vmem:[%s1212_s5 + $0x70] sm:$0xff] %v1049_v30   ;;  %v673_v34 = vmax.f32 %v641_v32, 0.0 }
  0x5d   : > { %v674_v0 = vmax.f32 %v642_v33, 0.0 }
  0x5f   : > { %v1054_v35 = vpack.c.bf16 %v674_v0, %v673_v34 }
  0x61   : > { %1108 = vst [vmem:[%s1212_s5 + $0x78] sm:$0xff] %v1054_v35  }
  0x62 PF: > { %s14_s15 = sadd.s32 1, %s1126_s15  }
  0x63   : > { %p11_p4 = scmp.ge.s32.totalorder %s14_s15, 4  }
  0x65   :  { %13 = sbr.rel (!%p11_p4) target bundleno = 1 (0x1), region = 69 }

// kernel: basic_block_nchw.3
= control target key start
LH: loop header
LB: loop body
LE: loop exit
PB: predicated region body
PF: predicated region fallthrough
CT: control target
= control target key end

     0   :  { %s3103_s12 = smov 0   ;;  %s3926_s0 = inlined_call_operand.vmem [shape: bf16[2,18,24,128], index: 0, kind: input, shape index: {}]   ;;  %s3927_s1 = inlined_call_operand.vmem [shape: bf16[3,384,128], index: 1, kind: input, shape index: {}]   ;;  %s3928_s2 = inlined_call_operand.vmem [shape: bf16[2,16,16,128], index: 2, kind: output, shape index: {0}]   ;;  %s3929_s3 = inlined_call_operand.vmem [shape: f32[2,2,128], index: 3, kind: output, shape index: {1}]  }
   0x1 LB: > { %s2376_s13 = sadd.s32 4294967295, %s3081_s12   ;;  %p2380_p0 = scmp.ge.s32.totalorder %s3081_s12, 1  ;;  %s3081_s12 = sphi %s3103_s12, %s14_s12  }
   0x2   : > { %p140_p1 = scmp.lt.s32.totalorder %s3081_s12, 3 }
   0x4   : > { %p141_p2 = pnand %p2380_p0, %p140_p1 }
   0x6   : > { %144 = sbr.rel (%p141_p2) target bundleno = 768 (0x300), region = 28 }
   0xb   : > { %v2893_v0 = vld [vmem:[%s3927_s1 + $0xf8] sm:$0xff]  ;;  %p168_p3 = scmp.lt.s32.totalorder %s2376_s13, 1  ;;  %v2892_v1 = vld [vmem:[%s3927_s1 + $0xf0] sm:$0xff]  ;;  %v2891_v2 = vld [vmem:[%s3927_s1 + $0xe8] sm:$0xff]  ;;  %vm446_vm0 = vsmask.f32 7424 }
   0xc   : > { %874 = vmatpush.bf16.msra.mxu0 %v2893_v0  ;;  %3029 = vmatpush.bf16.msra.mxu1 %v2893_v0  ;;  %v2890_v3 = vld [vmem:[%s3927_s1 + $0xe0] sm:$0xff]  ;;  %v2889_v9 = vld [vmem:[%s3927_s1 + $0xd8] sm:$0xff]  ;;  %v2888_v18 = vld [vmem:[%s3927_s1 + $0xd0] sm:$0xff]  ;;  %vm1552_vm1 = vcmask 1046528   ;;  %vm2223_vm2 = vcmask 1040384  }
   0xd   : > { %s3971_s13 = smov (!%p168_p3, %s2376_s13), 1  ;;  %3030 = vmatpush.bf16.msra.mxu2 %v2893_v0  ;;  %3031 = vmatpush.bf16.msra.mxu3 %v2893_v0  ;;  %v2887_v30 = vld [vmem:[%s3927_s1 + $0xc8] sm:$0xff]  ;;  %v2886_v39 = vld [vmem:[%s3927_s1 + $0xc0] sm:$0xff]  ;;  %v2909_v51 = vld [vmem:[%s3927_s1 + $0x178] sm:$0xff] }
   0xe   : > { %s3053_s18 = smul.u32 216, %s3971_s13  ;;  %v2869_v52 = vld [vmem:[%s3927_s1 + $0x38] sm:$0xff]  ;;  %s2843_s17 = sshll.u32 %s3971_s13, 7 }
   0xf   : > { %v2901_v58 = vld [vmem:[%s3927_s1 + $0x138] sm:$0xff]  ;;  %s3828_s20 = scalar_lea.vmem %s3928_s2, %s2843_s17 }
  0x10   : > { %875 = vmatpush.bf16.msra.mxu0 %v2892_v1  ;;  %3032 = vmatpush.bf16.msra.mxu1 %v2892_v1  ;;  %s3126_s23 = scalar_lea.vmem %s3926_s0, %s3053_s18  ;;  %v2877_v0 = vld [vmem:[%s3927_s1 + $0x78] sm:$0xff] }
  0x11   : > { %3033 = vmatpush.bf16.msra.mxu2 %v2892_v1  ;;  %3034 = vmatpush.bf16.msra.mxu3 %v2892_v1  ;;  %v184_v4 = vld [vmem:[%s3126_s23 + $0x8] sm:$0xf]  ;;  %v196_v5 = vld [vmem:[%s3126_s23 + $0x38] sm:$0xf]  ;;  %v3136_v8 = vld [vmem:[%s3126_s23] sm:$0xff] }
  0x12   : > { %v208_v6 = vld [vmem:[%s3126_s23 + $0x68] sm:$0xf]  ;;  %v220_v7 = vld [vmem:[%s3126_s23 + $0x98] sm:$0xf]  ;;  %v408_v10 = vunpack.c.l.b16 %v184_v4  ;;  %v3142_v11 = vld [vmem:[%s3126_s23 + $0x30] sm:$0xff]  ;;  %v412_v12 = vunpack.c.l.b16 %v196_v5  ;;  %v450_v17 = vshll.u32 %v3136_v8, 16 }
  0x13   : > { %v3145_v13 = vld [vmem:[%s3126_s23 + $0x60] sm:$0xff]  ;;  %v416_v14 = vunpack.c.l.b16 %v208_v6  ;;  %v3148_v15 = vld [vmem:[%s3126_s23 + $0x90] sm:$0xff]  ;;  %v420_v16 = vunpack.c.l.b16 %v220_v7  ;;  %v498_v21 = vshll.u32 %v3142_v11, 16  ;;  %v448_v26 = vshrl.u32 %v3136_v8, 16 }
  0x14   : > { %876 = vmatpush.bf16.msra.mxu0 %v2891_v2  ;;  %3035 = vmatpush.bf16.msra.mxu1 %v2891_v2  ;;  %v3154_v19 = vpack.c.b16 %v408_v10, %v408_v10  ;;  %v3156_v20 = vpack.c.b16 %v412_v12, %v412_v12  ;;  %v546_v22 = vshll.u32 %v3145_v13, 16  ;;  %v594_v25 = vshll.u32 %v3148_v15, 16  ;;  %v187_v44 = vld [vmem:[%s3126_s23 + $0x14] sm:$0xf]  ;;  %v199_v49 = vld [vmem:[%s3126_s23 + $0x44] sm:$0xf] }
  0x15   : > { %3036 = vmatpush.bf16.msra.mxu2 %v2891_v2  ;;  %3037 = vmatpush.bf16.msra.mxu3 %v2891_v2  ;;  %v3160_v23 = vpack.c.b16 %v416_v14, %v416_v14  ;;  %v3162_v24 = vpack.c.b16 %v420_v16, %v420_v16  ;;  %v452_v27 = vrot.slane %v450_v17, 1  ;;  %v496_v28 = vshrl.u32 %v3142_v11, 16  ;;  %v211_v50 = vld [vmem:[%s3126_s23 + $0x74] sm:$0xf]  ;;  %v223_v53 = vld [vmem:[%s3126_s23 + $0xa4] sm:$0xf] }
  0x16   : > { %v544_v29 = vshrl.u32 %v3145_v13, 16  ;;  %v455_v31 = vshll.u32 %v3154_v19, 16  ;;  %v500_v32 = vrot.slane %v498_v21, 1  ;;  %v503_v33 = vshll.u32 %v3156_v20, 16  ;;  %v3190_v54 = vld [vmem:[%s3126_s23 + $0xc] sm:$0xff]  ;;  %v3200_v59 = vld [vmem:[%s3126_s23 + $0x3c] sm:$0xff] }
  0x17   : > { %3938 = vst [vmem:[#allocation2_spill] sm:$0xff] %v3160_v23  ;;  %v548_v34 = vrot.slane %v546_v22, 1  ;;  %v551_v35 = vshll.u32 %v3160_v23, 16  ;;  %v592_v36 = vshrl.u32 %v3148_v15, 16  ;;  %v596_v37 = vrot.slane %v594_v25, 1  ;;  %v3212_v1 = vld [vmem:[%s3126_s23 + $0x6c] sm:$0xff] }
  0x18   : > { %877 = vmatpush.bf16.msra.mxu0 %v2890_v3  ;;  %3038 = vmatpush.bf16.msra.mxu1 %v2890_v3  ;;  %3939 = vst [vmem:[#allocation3_spill] sm:$0xff] %v3162_v24  ;;  %v599_v38 = vshll.u32 %v3162_v24, 16  ;;  %v453_v40 = vor.u32 %v452_v27, %v448_v26  ;;  %v457_v41 = vrot.slane %v455_v31, 1  ;;  %v501_v42 = vor.u32 %v500_v32, %v496_v28  ;;  %v3215_v2 = vld [vmem:[%s3126_s23 + $0x9c] sm:$0xff]  ;;  %v2908_v4 = vld [vmem:[%s3927_s1 + $0x170] sm:$0xff]  ;;  %v2907_v22 = vld [vmem:[%s3927_s1 + $0x168] sm:$0xff] }
  0x19   : > { %3039 = vmatpush.bf16.msra.mxu2 %v2890_v3  ;;  %3040 = vmatpush.bf16.msra.mxu3 %v2890_v3  ;;  %v505_v43 = vrot.slane %v503_v33, 1  ;;  %v549_v45 = vor.u32 %v548_v34, %v544_v29  ;;  %v553_v46 = vrot.slane %v551_v35, 1  ;;  %v597_v47 = vor.u32 %v596_v37, %v592_v36  ;;  %v2868_v5 = vld [vmem:[%s3927_s1 + $0x30] sm:$0xff]  ;;  %v2867_v25 = vld [vmem:[%s3927_s1 + $0x28] sm:$0xff] }
  0x1a   : > { %v601_v48 = vrot.slane %v599_v38, 1  ;;  %v409_v55 = vunpack.c.l.b16 %v187_v44  ;;  %v458_v56 = vsel %vm446_vm0, %v453_v40, %v457_v41  ;;  %v413_v60 = vunpack.c.l.b16 %v199_v49  ;;  %v2876_v21 = vld [vmem:[%s3927_s1 + $0x70] sm:$0xff]  ;;  %v2899_v38 = vld [vmem:[%s3927_s1 + $0x128] sm:$0xff]  ;;  %v2906_v40 = vld [vmem:[%s3927_s1 + $0x160] sm:$0xff] }
  0x1b   : > { %v3194_v57 = vsel %vm446_vm0, %v501_v42, %v505_v43  ;;  %v417_v61 = vunpack.c.l.b16 %v211_v50  ;;  %v3203_v62 = vsel %vm446_vm0, %v549_v45, %v553_v46  ;;  %v421_v3 = vunpack.c.l.b16 %v223_v53  ;;  %v2866_v41 = vld [vmem:[%s3927_s1 + $0x20] sm:$0xff] }
  0x1c   : > { %878 = vmatpush.bf16.msra.mxu0 %v2889_v9  ;;  %3041 = vmatpush.bf16.msra.mxu1 %v2889_v9  ;;  %v3206_v63 = vsel %vm446_vm0, %v597_v47, %v601_v48  ;;  %v3224_v6 = vpack.c.b16 %v409_v55, %v409_v55  ;;  %v462_v7 = vshll.u32 %v3190_v54, 16  ;;  %v510_v10 = vshll.u32 %v3200_v59, 16  ;;  %v190_v46 = vld [vmem:[%s3126_s23 + $0x20] sm:$0xf]  ;;  %v202_v47 = vld [vmem:[%s3126_s23 + $0x50] sm:$0xf] }
  0x1d   : > { %3042 = vmatpush.bf16.msra.mxu2 %v2889_v9  ;;  %3043 = vmatpush.bf16.msra.mxu3 %v2889_v9  ;;  %v3229_v9 = vpack.c.b16 %v413_v60, %v413_v60  ;;  %v3232_v12 = vpack.c.b16 %v417_v61, %v417_v61  ;;  %v558_v14 = vshll.u32 %v3212_v1, 16  ;;  %v3235_v16 = vpack.c.b16 %v421_v3, %v421_v3  ;;  %v2898_v53 = vld [vmem:[%s3927_s1 + $0x120] sm:$0xff]  ;;  %v2865_v60 = vld [vmem:[%s3927_s1 + $0x18] sm:$0xff] }
  0x1e   : > { %v606_v17 = vshll.u32 %v3215_v2, 16  ;;  %v460_v26 = vshrl.u32 %v3190_v54, 16  ;;  %v464_v27 = vrot.slane %v462_v7, 1  ;;  %v467_v28 = vshll.u32 %v3224_v6, 16  ;;  %v2874_v55 = vld [vmem:[%s3927_s1 + $0x60] sm:$0xff]  ;;  %v3287_v61 = vld [vmem:[%s3126_s23 + $0x18] sm:$0xff] }
  0x1f   : > { %3940 = vst [vmem:[#allocation4_spill] sm:$0xff] %v3232_v12  ;;  %v508_v29 = vshrl.u32 %v3200_v59, 16  ;;  %v515_v31 = vshll.u32 %v3229_v9, 16  ;;  %v556_v32 = vshrl.u32 %v3212_v1, 16  ;;  %v563_v33 = vshll.u32 %v3232_v12, 16 }
  0x20   : > { %879 = vmatpush.bf16.msra.mxu0 %v2888_v18  ;;  %3044 = vmatpush.bf16.msra.mxu1 %v2888_v18  ;;  %3941 = vst [vmem:[#allocation5_spill] sm:$0xff] %v3235_v16  ;;  %v560_v34 = vrot.slane %v558_v14, 1  ;;  %v604_v35 = vshrl.u32 %v3215_v2, 16  ;;  %v608_v36 = vrot.slane %v606_v17, 1  ;;  %v611_v37 = vshll.u32 %v3235_v16, 16 }
  0x21   : > { %3045 = vmatpush.bf16.msra.mxu2 %v2888_v18  ;;  %3046 = vmatpush.bf16.msra.mxu3 %v2888_v18  ;;  %v2900_v18 = vld [vmem:[%s3927_s1 + $0x130] sm:$0xff]  ;;  %v465_v42 = vor.u32 %v464_v27, %v460_v26  ;;  %v469_v43 = vrot.slane %v467_v28, 1  ;;  %v517_v45 = vrot.slane %v515_v31, 1  ;;  %v565_v49 = vrot.slane %v563_v33, 1  ;;  %v2873_v26 = vld [vmem:[%s3927_s1 + $0x58] sm:$0xff] }
  0x22   : > { %v561_v48 = vor.u32 %v560_v34, %v556_v32  ;;  %v609_v50 = vor.u32 %v608_v36, %v604_v35  ;;  %v414_v7 = vunpack.c.l.b16 %v202_v47  ;;  %v2904_v27 = vld [vmem:[%s3927_s1 + $0x150] sm:$0xff] }
  0x23   : > { %v3290_v3 = vsel %vm446_vm0, %v465_v42, %v469_v43  ;;  %v2864_v28 = vld [vmem:[%s3927_s1 + $0x10] sm:$0xff] }
  0x24   : > { %880 = vmatpush.bf16.msra.mxu0 %v2887_v30  ;;  %3047 = vmatpush.bf16.msra.mxu1 %v2887_v30  ;;  %v3302_v17 = vsel %vm446_vm0, %v561_v48, %v565_v49  ;;  %v3329_v31 = vpack.c.b16 %v414_v7, %v414_v7 }
  0x25   : > { %3048 = vmatpush.bf16.msra.mxu2 %v2887_v30  ;;  %3049 = vmatpush.bf16.msra.mxu3 %v2887_v30  ;;  %v512_v30 = vrot.slane %v510_v10, 1  ;;  %v3299_v10 = vld [vmem:[%s3126_s23 + $0x78] sm:$0xff] }
  0x26   : > { %v570_v34 = vshll.u32 %v3299_v10, 16  ;;  %v568_v47 = vshrl.u32 %v3299_v10, 16 }
  0x27   : > { %v513_v44 = vor.u32 %v512_v30, %v508_v29  ;;  %v474_v30 = vshll.u32 %v3287_v61, 16 }
  0x28   : > { %881 = vmatpush.bf16.msra.mxu0 %v2886_v39  ;;  %3050 = vmatpush.bf16.msra.mxu1 %v2886_v39  ;;  %v572_v49 = vrot.slane %v570_v34, 1  ;;  %v2870_v34 = vld [vmem:[%s3927_s1 + $0x40] sm:$0xff] }
  0x29   : > { %3051 = vmatpush.bf16.msra.mxu2 %v2886_v39  ;;  %3052 = vmatpush.bf16.msra.mxu3 %v2886_v39  ;;  %v2875_v39 = vld [vmem:[%s3927_s1 + $0x68] sm:$0xff]  ;;  %v476_v42 = vrot.slane %v474_v30, 1  ;;  %v205_v30 = vld [vmem:[%s3126_s23 + $0x5c] sm:$0xf] }
  0x2b   : > { %882 = vmatmul.bf16.vlgmr.msra.gmra.mxu0 %v458_v56  ;;  %902 = vmatmul.bf16.vlgmr.msra.gmra.mxu1 %v3194_v57  ;;  %v226_v56 = vld [vmem:[%s3126_s23 + $0xb0] sm:$0xf] }
  0x2c   : > { %922 = vmatmul.bf16.vlgmr.msra.gmra.mxu2 %v3203_v62  ;;  %942 = vmatmul.bf16.vlgmr.msra.gmra.mxu3 %v3206_v63 }
  0x2d   : > { %1052 = vmatpush.bf16.msrb.mxu2 %v2909_v51  ;;  %1285 = vmatpush.bf16.msrb.mxu3 %v2869_v52  ;;  %v613_v51 = vrot.slane %v611_v37, 1  ;;  %v214_v52 = vld [vmem:[%s3126_s23 + $0x80] sm:$0xf]  ;;  %v2896_v37 = vld [vmem:[%s3927_s1 + $0x110] sm:$0xff] }
  0x2e   : > { %963 = vmatpush.bf16.msrb.mxu1 %v2901_v58  ;;  %1374 = vmatpush.bf16.msrb.mxu0 %v2877_v0  ;;  %v2905_v58 = vld [vmem:[%s3927_s1 + $0x158] sm:$0xff]  ;;  %v410_v0 = vunpack.c.l.b16 %v190_v46  ;;  %v418_v14 = vunpack.c.l.b16 %v214_v52  ;;  %v527_v46 = vshll.u32 %v3329_v31, 16 }
  0x30   : > { %v3324_v29 = vpack.c.b16 %v410_v0, %v410_v0  ;;  %v3332_v33 = vpack.c.b16 %v418_v14, %v418_v14  ;;  %v529_v14 = vrot.slane %v527_v46, 1 }
  0x31   : > { %1053 = vmatpush.bf16.msrb.mxu2 %v2908_v4  ;;  %1286 = vmatpush.bf16.msrb.mxu3 %v2868_v5  ;;  %v3293_v4 = vsel %vm446_vm0, %v513_v44, %v517_v45  ;;  %v3296_v5 = vld [vmem:[%s3126_s23 + $0x48] sm:$0xff] }
  0x32   : > { %964 = vmatpush.bf16.msrb.mxu1 %v2900_v18  ;;  %1375 = vmatpush.bf16.msrb.mxu0 %v2876_v21  ;;  %v3305_v18 = vsel %vm446_vm0, %v609_v50, %v613_v51  ;;  %v3308_v21 = vld [vmem:[%s3126_s23 + $0xa8] sm:$0xff]  ;;  %v522_v32 = vshll.u32 %v3296_v5, 16  ;;  %3942 = vst [vmem:[#allocation6_spill] sm:$0xff] %v3332_v33  ;;  %v479_v43 = vshll.u32 %v3324_v29, 16  ;;  %v520_v44 = vshrl.u32 %v3296_v5, 16 }
  0x33   : > { %v618_v36 = vshll.u32 %v3308_v21, 16  ;;  %v575_v48 = vshll.u32 %v3332_v33, 16  ;;  %v616_v50 = vshrl.u32 %v3308_v21, 16  ;;  %v2912_v33 = vld [vmem:[%s3927_s1 + $0x190] sm:$0xff] }
  0x34   : > { %v524_v45 = vrot.slane %v522_v32, 1  ;;  %v481_v0 = vrot.slane %v479_v43, 1  ;;  %v2894_v32 = vld [vmem:[%s3927_s1 + $0x100] sm:$0xff]  ;;  %v415_v43 = vunpack.c.l.b16 %v205_v30 }
  0x35   : > { %1054 = vmatpush.bf16.msrb.mxu2 %v2907_v22  ;;  %1287 = vmatpush.bf16.msrb.mxu3 %v2867_v25  ;;  %v422_v22 = vunpack.c.l.b16 %v226_v56  ;;  %v2897_v25 = vld [vmem:[%s3927_s1 + $0x118] sm:$0xff]  ;;  %v620_v51 = vrot.slane %v618_v36, 1  ;;  %v2902_v56 = vld [vmem:[%s3927_s1 + $0x140] sm:$0xff]  ;;  %v217_v36 = vld [vmem:[%s3126_s23 + $0x8c] sm:$0xf] }
  0x36   : > { %965 = vmatpush.bf16.msrb.mxu1 %v2899_v38  ;;  %1376 = vmatpush.bf16.msrb.mxu0 %v2875_v39  ;;  %v2872_v38 = vld [vmem:[%s3927_s1 + $0x50] sm:$0xff]  ;;  %v2903_v39 = vld [vmem:[%s3927_s1 + $0x148] sm:$0xff]  ;;  %v525_v7 = vor.u32 %v524_v45, %v520_v44 }
  0x37   : > { %v3335_v35 = vpack.c.b16 %v422_v22, %v422_v22  ;;  %v193_v22 = vld [vmem:[%s3126_s23 + $0x2c] sm:$0xf]  ;;  %v3393_v44 = vld [vmem:[%s3126_s23 + $0x84] sm:$0xff] }
  0x39   : > { %1055 = vmatpush.bf16.msrb.mxu2 %v2906_v40  ;;  %1288 = vmatpush.bf16.msrb.mxu3 %v2866_v41  ;;  %3943 = vst [vmem:[#allocation7_spill] sm:$0xff] %v3335_v35  ;;  %v2863_v40 = vld [vmem:[%s3927_s1 + $0x8] sm:$0xff]  ;;  %v472_v41 = vshrl.u32 %v3287_v61, 16  ;;  %v623_v52 = vshll.u32 %v3335_v35, 16 }
  0x3a   : > { %966 = vmatpush.bf16.msrb.mxu1 %v2898_v53  ;;  %1377 = vmatpush.bf16.msrb.mxu0 %v2874_v55  ;;  %v2895_v53 = vld [vmem:[%s3927_s1 + $0x108] sm:$0xff] }
  0x3b   : > { %887 = vmatmul.bf16.gmra.mxu0 %v3290_v3  ;;  %907 = vmatmul.bf16.gmra.mxu1 %v3293_v4  ;;  %v2871_v55 = vld [vmem:[%s3927_s1 + $0x48] sm:$0xff] }
  0x3c   : > { %927 = vmatmul.bf16.gmra.mxu2 %v3302_v17  ;;  %947 = vmatmul.bf16.gmra.mxu3 %v3305_v18 }
  0x3d   : > { %1056 = vmatpush.bf16.msrb.mxu2 %v2905_v58  ;;  %1289 = vmatpush.bf16.msrb.mxu3 %v2865_v60  ;;  %v2862_v58 = vld [vmem:[%s3927_s1] sm:$0xff]  ;;  %v477_v60 = vor.u32 %v476_v42, %v472_v41  ;;  %v3387_v41 = vsel %vm446_vm0, %v525_v7, %v529_v14  ;;  %v3390_v42 = vld [vmem:[%s3126_s23 + $0x54] sm:$0xff] }
  0x3e   : > { %967 = vmatpush.bf16.msrb.mxu1 %v2897_v25  ;;  %1378 = vmatpush.bf16.msrb.mxu0 %v2873_v26  ;;  %v573_v25 = vor.u32 %v572_v49, %v568_v47  ;;  %v577_v26 = vrot.slane %v575_v48, 1  ;;  %v419_v47 = vunpack.c.l.b16 %v217_v36  ;;  %v3402_v48 = vld [vmem:[%s3126_s23 + $0xb4] sm:$0xff] }
  0x3f   : > { %v630_v14 = vshll.u32 %v3402_v48, 16 }
  0x40   : > { %v3396_v45 = vsel %vm446_vm0, %v573_v25, %v577_v26 }
  0x41   : > { %1057 = vmatpush.bf16.msrb.mxu2 %v2904_v27  ;;  %1290 = vmatpush.bf16.msrb.mxu3 %v2864_v28  ;;  %v621_v27 = vor.u32 %v620_v51, %v616_v50  ;;  %v625_v28 = vrot.slane %v623_v52, 1  ;;  %v3411_v52 = vpack.c.b16 %v415_v43, %v415_v43  ;;  %v632_v43 = vrot.slane %v630_v14, 1 }
  0x42   : > { %968 = vmatpush.bf16.msrb.mxu1 %v2896_v37  ;;  %1379 = vmatpush.bf16.msrb.mxu0 %v2872_v38  ;;  %v229_v37 = vld [vmem:[%s3126_s23 + $0xbc] sm:$0xf]  ;;  %v3381_v38 = vld [vmem:[%s3126_s23 + $0x24] sm:$0xff] }
  0x43   : > { %v3399_v46 = vsel %vm446_vm0, %v621_v27, %v625_v28  ;;  %v423_v49 = vunpack.c.l.b16 %v229_v37  ;;  %v486_v51 = vshll.u32 %v3381_v38, 16  ;;  %v484_v25 = vshrl.u32 %v3381_v38, 16 }
  0x44   : > { %v532_v28 = vshrl.u32 %v3390_v42, 16 }
  0x45   : > { %1058 = vmatpush.bf16.msrb.mxu2 %v2903_v39  ;;  %1291 = vmatpush.bf16.msrb.mxu3 %v2863_v40  ;;  %v411_v39 = vunpack.c.l.b16 %v193_v22  ;;  %v3384_v40 = vsel %vm446_vm0, %v477_v60, %v481_v0  ;;  %v2885_v60 = vld [vmem:[%s3927_s1 + $0xb8] sm:$0xff]  ;;  %v3424_v0 = vpack.c.b16 %v419_v47, %v419_v47  ;;  %v3426_v7 = vpack.c.b16 %v423_v49, %v423_v49 }
  0x46   : > { %969 = vmatpush.bf16.msrb.mxu1 %v2895_v53  ;;  %1380 = vmatpush.bf16.msrb.mxu0 %v2871_v55  ;;  %v534_v53 = vshll.u32 %v3390_v42, 16  ;;  %v582_v55 = vshll.u32 %v3393_v44, 16  ;;  %v2933_v22 = vld [vmem:[%s3927_s1 + $0x238] sm:$0xff]  ;;  %v488_v26 = vrot.slane %v486_v51, 1 }
  0x47   : > { %v3406_v50 = vpack.c.b16 %v411_v39, %v411_v39  ;;  %3944 = vst [vmem:[#allocation8_spill] sm:$0xff] %v3424_v0  ;;  %v587_v37 = vshll.u32 %v3424_v0, 16  ;;  %v628_v39 = vshrl.u32 %v3402_v48, 16  ;;  %v635_v47 = vshll.u32 %v3426_v7, 16 }
  0x48   : > { %3945 = vst [vmem:[#allocation9_spill] sm:$0xff] %v3426_v7  ;;  %v536_v30 = vrot.slane %v534_v53, 1  ;;  %v584_v36 = vrot.slane %v582_v55, 1  ;;  %v489_v49 = vor.u32 %v488_v26, %v484_v25  ;;  %v2924_v25 = vld [vmem:[%s3927_s1 + $0x1f0] sm:$0xff] }
  0x49   : > { %1059 = vmatpush.bf16.msrb.mxu2 %v2902_v56  ;;  %1292 = vmatpush.bf16.msrb.mxu3 %v2862_v58  ;;  %v2917_v56 = vld [vmem:[%s3927_s1 + $0x1b8] sm:$0xff]  ;;  %v491_v27 = vshll.u32 %v3406_v50, 16  ;;  %v637_v53 = vrot.slane %v635_v47, 1  ;;  %v2884_v26 = vld [vmem:[%s3927_s1 + $0xb0] sm:$0xff] }
  0x4a   : > { %970 = vmatpush.bf16.msrb.mxu1 %v2894_v32  ;;  %1381 = vmatpush.bf16.msrb.mxu0 %v2870_v34  ;;  %v2925_v58 = vld [vmem:[%s3927_s1 + $0x1f8] sm:$0xff]  ;;  %v539_v32 = vshll.u32 %v3411_v52, 16  ;;  %v580_v34 = vshrl.u32 %v3393_v44, 16 }
  0x4b   : > { %892 = vmatmul.bf16.gmra.mxu0 %v3384_v40  ;;  %912 = vmatmul.bf16.gmra.mxu1 %v3387_v41  ;;  %v493_v51 = vrot.slane %v491_v27, 1 }
  0x4c   : > { %932 = vmatmul.bf16.gmra.mxu2 %v3396_v45  ;;  %952 = vmatmul.bf16.gmra.mxu3 %v3399_v46  ;;  %v585_v35 = vor.u32 %v584_v36, %v580_v34 }
  0x4d   : > { %1818 = vmatpush.bf16.msra.mxu2 %v2917_v56  ;;  %1907 = vmatpush.bf16.msra.mxu3 %v2925_v58  ;;  %v537_v56 = vor.u32 %v536_v30, %v532_v28  ;;  %v541_v58 = vrot.slane %v539_v32, 1  ;;  %v494_v16 = vsel %vm446_vm0, %v489_v49, %v493_v51  ;;  %v2922_v30 = vld [vmem:[%s3927_s1 + $0x1e0] sm:$0xff] }
  0x4e   : > { %1463 = vmatpush.bf16.msra.mxu1 %v2885_v60  ;;  %1996 = vmatpush.bf16.msra.mxu0 %v2933_v22  ;;  %v589_v60 = vrot.slane %v587_v37, 1  ;;  %v633_v22 = vor.u32 %v632_v43, %v628_v39  ;;  %v2930_v37 = vld [vmem:[%s3927_s1 + $0x220] sm:$0xff] }
  0x4f   : > { %v3442_v24 = vsel %vm446_vm0, %v537_v56, %v541_v58 }
  0x50   : > { %v3445_v55 = vsel %vm446_vm0, %v585_v35, %v589_v60  ;;  %v3448_v14 = vsel %vm446_vm0, %v633_v22, %v637_v53  ;;  %v2916_v35 = vld [vmem:[%s3927_s1 + $0x1b0] sm:$0xff] }
  0x51   : > { %1819 = vmatpush.bf16.msra.mxu2 %v2916_v35  ;;  %1908 = vmatpush.bf16.msra.mxu3 %v2924_v25  ;;  %v2921_v25 = vld [vmem:[%s3927_s1 + $0x1d8] sm:$0xff] }
  0x52   : > { %1464 = vmatpush.bf16.msra.mxu1 %v2884_v26 }
  0x5b   : > { %897 = vmatmul.bf16.gmra.mxu0 %v494_v16  ;;  %917 = vmatmul.bf16.gmra.mxu1 %v3442_v24 }
  0x5c   : > { %937 = vmatmul.bf16.gmra.mxu2 %v3445_v55  ;;  %957 = vmatmul.bf16.gmra.mxu3 %v3448_v14 }
  0x6b   : > { %971 = vmatmul.bf16.vlgmr.msrb.gmra.mxu1 %v3290_v3  ;;  %1382 = vmatmul.bf16.vlgmr.msrb.gmra.mxu0 %v3190_v54  ;;  %v2932_v3 = vld [vmem:[%s3927_s1 + $0x230] sm:$0xff] }
  0x6c   : > { %1060 = vmatmul.bf16.vlgmr.msrb.gmra.mxu2 %v3384_v40  ;;  %1293 = vmatmul.bf16.vlgmr.msrb.gmra.mxu3 %v3136_v8  ;;  %v2915_v8 = vld [vmem:[%s3927_s1 + $0x1a8] sm:$0xff] }
  0x6d   : > { %1997 = vmatpush.bf16.msra.mxu0 %v2932_v3  ;;  %1820 = vmatpush.bf16.msra.mxu2 %v2915_v8 }
  0x7b   : > { %976 = vmatmul.bf16.gmra.mxu1 %v3384_v40  ;;  %1387 = vmatmul.bf16.gmra.mxu0 %v3287_v61  ;;  %v2923_v40 = vld [vmem:[%s3927_s1 + $0x1e8] sm:$0xff] }
  0x7c   : > { %1065 = vmatmul.bf16.gmra.mxu2 %v494_v16  ;;  %1298 = vmatmul.bf16.gmra.mxu3 %v3190_v54  ;;  %v2883_v54 = vld [vmem:[%s3927_s1 + $0xa8] sm:$0xff] }
  0x7d   : > { %1909 = vmatpush.bf16.msra.mxu3 %v2923_v40  ;;  %1465 = vmatpush.bf16.msra.mxu1 %v2883_v54  ;;  %v2929_v40 = vld [vmem:[%s3927_s1 + $0x218] sm:$0xff] }
  0x81   : > { %1910 = vmatpush.bf16.msra.mxu3 %v2922_v30 }
  0x85   : > { %1911 = vmatpush.bf16.msra.mxu3 %v2921_v25 }
  0x8b   : > { %981 = vmatmul.bf16.gmra.mxu1 %v494_v16  ;;  %1392 = vmatmul.bf16.gmra.mxu0 %v3381_v38  ;;  %v2931_v16 = vld [vmem:[%s3927_s1 + $0x228] sm:$0xff] }
  0x8c   : > { %1070 = vmatmul.bf16.gmra.mxu2 %v3194_v57  ;;  %1303 = vmatmul.bf16.gmra.mxu3 %v3287_v61 }
  0x8d   : > { %1998 = vmatpush.bf16.msra.mxu0 %v2931_v16 }
  0x91   : > { %1999 = vmatpush.bf16.msra.mxu0 %v2930_v37 }
  0x95   : > { %2000 = vmatpush.bf16.msra.mxu0 %v2929_v40 }
  0x9b   : > { %986 = vmatmul.bf16.gmra.mxu1 %v3194_v57  ;;  %1397 = vmatmul.bf16.gmra.mxu0 %v3142_v11  ;;  %v2914_v57 = vld [vmem:[%s3927_s1 + $0x1a0] sm:$0xff] }
  0x9c   : > { %1075 = vmatmul.bf16.gmra.mxu2 %v3293_v4  ;;  %1308 = vmatmul.bf16.gmra.mxu3 %v3381_v38 }
  0x9d   : > { %1821 = vmatpush.bf16.msra.mxu2 %v2914_v57 }
  0xa8   : > { %v3491_v27 = vpop.f32.mrf.mxu0  ;;  %v3493_v28 = vpop.f32.mrf.mxu1 }
  0xab   : > { %991 = vmatmul.bf16.gmra.mxu1 %v3293_v4  ;;  %1402 = vmatmul.bf16.gmra.mxu0 %v3200_v59 }
  0xac   : > { %1080 = vmatmul.bf16.gmra.mxu2 %v3387_v41  ;;  %1313 = vmatmul.bf16.gmra.mxu3 %v3142_v11  ;;  %v2882_v11 = vld [vmem:[%s3927_s1 + $0xa0] sm:$0xff] }
  0xad   : > { %1466 = vmatpush.bf16.msra.mxu1 %v2882_v11 }
  0xaf   : > { %v3505_v32 = vpop.f32.mrf.mxu2  ;;  %v3507_v34 = vpop.f32.mrf.mxu3 }
  0xb0   : > { %v3509_v4 = vpop.f32.mrf.mxu0  ;;  %v3511_v36 = vpop.f32.mrf.mxu1 }
  0xb7   : > { %v3519_v39 = vpop.f32.mrf.mxu2  ;;  %v3521_v43 = vpop.f32.mrf.mxu3 }
  0xb8   : > { %3946 = vst [vmem:[#allocation10_spill] sm:$0xff] %v3521_v43  ;;  %v3523_v47 = vpop.f32.mrf.mxu0  ;;  %v3525_v49 = vpop.f32.mrf.mxu1 }
  0xbb   : > { %996 = vmatmul.bf16.gmra.mxu1 %v3387_v41  ;;  %1407 = vmatmul.bf16.gmra.mxu0 %v3296_v5 }
  0xbc   : > { %1085 = vmatmul.bf16.gmra.mxu2 %v3442_v24  ;;  %1318 = vmatmul.bf16.gmra.mxu3 %v3200_v59  ;;  %v2913_v59 = vld [vmem:[%s3927_s1 + $0x198] sm:$0xff] }
  0xbd   : > { %1822 = vmatpush.bf16.msra.mxu2 %v2913_v59 }
  0xbf   : > { %v3531_v51 = vpop.f32.mrf.mxu2  ;;  %v3533_v56 = vpop.f32.mrf.mxu3 }
  0xc0   : > { %3947 = vst [vmem:[#allocation11_spill] sm:$0xff] %v3533_v56  ;;  %v3535_v58 = vpop.f32.mrf.mxu0  ;;  %v3537_v60 = vpop.f32.mrf.mxu1 }
  0xc1   : > { %1823 = vmatpush.bf16.msra.mxu2 %v2912_v33 }
  0xc7   : > { %v3539_v22 = vpop.f32.mrf.mxu2  ;;  %v3541_v53 = vpop.f32.mrf.mxu3 }
  0xc8   : > { %3948 = vst [vmem:[#allocation12_spill] sm:$0xff] %v3541_v53  ;;  %v3543_v35 = vpop.f32.mrf.mxu0  ;;  %v3545_v41 = vpop.f32.mrf.mxu1  ;;  %v2928_v53 = vld [vmem:[%s3927_s1 + $0x210] sm:$0xff] }
  0xc9   : > { %2001 = vmatpush.bf16.msra.mxu0 %v2928_v53 }
  0xcb   : > { %1001 = vmatmul.bf16.gmra.mxu1 %v3442_v24  ;;  %1412 = vmatmul.bf16.gmra.mxu0 %v3390_v42 }
  0xcc   : > { %1090 = vmatmul.bf16.gmra.mxu2 %v3203_v62  ;;  %1323 = vmatmul.bf16.gmra.mxu3 %v3296_v5  ;;  %v2881_v5 = vld [vmem:[%s3927_s1 + $0x98] sm:$0xff] }
  0xcd   : > { %1467 = vmatpush.bf16.msra.mxu1 %v2881_v5 }
  0xcf   : > { %v3557_v26 = vpop.f32.mrf.mxu2  ;;  %v3559_v3 = vpop.f32.mrf.mxu3 }
  0xd0   : > { %3949 = vst [vmem:[#allocation13_spill] sm:$0xff] %v3559_v3  ;;  %v3561_v24 = vpop.f32.mrf.mxu0  ;;  %v3563_v8 = vpop.f32.mrf.mxu1 }
  0xd7   : > { %v3571_v54 = vpop.f32.mrf.mxu2  ;;  %v3573_v16 = vpop.f32.mrf.mxu3 }
  0xd8   : > { %3950 = vst [vmem:[#allocation14_spill] sm:$0xff] %v3573_v16  ;;  %v3575_v57 = vpop.f32.mrf.mxu0  ;;  %v3577_v30 = vpop.f32.mrf.mxu1 }
  0xdb   : > { %1006 = vmatmul.bf16.gmra.mxu1 %v3203_v62  ;;  %1417 = vmatmul.bf16.gmra.mxu0 %v3145_v13 }
  0xdc   : > { %1095 = vmatmul.bf16.gmra.mxu2 %v3302_v17  ;;  %1328 = vmatmul.bf16.gmra.mxu3 %v3390_v42 }
  0xdf   : > { %v3583_v11 = vpop.f32.mrf.mxu2  ;;  %v3585_v37 = vpop.f32.mrf.mxu3 }
  0xe0   : > { %3951 = vst [vmem:[#allocation15_spill] sm:$0xff] %v3585_v37  ;;  %v3587_v59 = vpop.f32.mrf.mxu0  ;;  %v3589_v25 = vpop.f32.mrf.mxu1 }
  0xe7   : > { %v3591_v5 = vpop.f32.mrf.mxu2  ;;  %v3593_v40 = vpop.f32.mrf.mxu3 }
  0xe8   : > { %3952 = vst [vmem:[#allocation16_spill] sm:$0xff] %v3593_v40  ;;  %v972_v7 = vpop.f32.mrf.mxu1  ;;  %v1383_v62 = vpop.f32.mrf.mxu0  ;;  %v2920_v40 = vld [vmem:[%s3927_s1 + $0x1d0] sm:$0xff] }
  0xe9   : > { %v973_v0 = vadd.f32 %v972_v7, %v3491_v27  ;;  %1912 = vmatpush.bf16.msra.mxu3 %v2920_v40 }
  0xeb   : > { %1011 = vmatmul.bf16.gmra.mxu1 %v3302_v17  ;;  %1422 = vmatmul.bf16.gmra.mxu0 %v3212_v1 }
  0xec   : > { %1100 = vmatmul.bf16.gmra.mxu2 %v3396_v45  ;;  %1333 = vmatmul.bf16.gmra.mxu3 %v3145_v13  ;;  %v2880_v13 = vld [vmem:[%s3927_s1 + $0x90] sm:$0xff] }
  0xed   : > { %1468 = vmatpush.bf16.msra.mxu1 %v2880_v13 }
  0xef   : > { %v1061_v37 = vpop.f32.mrf.mxu2  ;;  %v1294_v7 = vpop.f32.mrf.mxu3 }
  0xf0   : > { %v1062_v27 = vadd.f32 %v1061_v37, %v973_v0  ;;  %v974_v17 = vpop.f32.mrf.mxu1  ;;  %v1385_v16 = vpop.f32.mrf.mxu0 }
  0xf1   : > { %v975_v12 = vadd.f32 %v974_v17, %v3509_v4 }
  0xf2   : > { %v1295_v3 = vadd.f32 %v1294_v7, %v1062_v27 }
  0xf4   : > { %v3613_v33 = vadd.f32 %v1383_v62, %v1295_v3 }
  0xf6   : > { %3953 = vst [vmem:[#allocation17_spill] sm:$0xff] %v3613_v33 }
  0xf7   : > { %v1063_v40 = vpop.f32.mrf.mxu2  ;;  %v1296_v23 = vpop.f32.mrf.mxu3 }
  0xf8   : > { %v1064_v0 = vadd.f32 %v1063_v40, %v975_v12  ;;  %v977_v37 = vpop.f32.mrf.mxu1  ;;  %v1388_v56 = vpop.f32.mrf.mxu0 }
  0xf9   : > { %v978_v4 = vadd.f32 %v977_v37, %v3523_v47 }
  0xfa   : > { %v1297_v7 = vadd.f32 %v1296_v23, %v1064_v0 }
  0xfb   : > { %1016 = vmatmul.bf16.gmra.mxu1 %v3396_v45  ;;  %1427 = vmatmul.bf16.gmra.mxu0 %v3299_v10 }
  0xfc   : > { %1105 = vmatmul.bf16.gmra.mxu2 %v3445_v55  ;;  %1338 = vmatmul.bf16.gmra.mxu3 %v3212_v1  ;;  %v3620_v27 = vadd.f32 %v1385_v16, %v1297_v7 }
  0xff   : > { %v1066_v53 = vpop.f32.mrf.mxu2  ;;  %v1299_v3 = vpop.f32.mrf.mxu3 }
 0x100   : > { %v1067_v62 = vadd.f32 %v1066_v53, %v978_v4  ;;  %v979_v17 = vpop.f32.mrf.mxu1  ;;  %v1390_v12 = vpop.f32.mrf.mxu0 }
 0x101   : > { %v980_v13 = vadd.f32 %v979_v17, %v3535_v58  ;;  %v2919_v58 = vld [vmem:[%s3927_s1 + $0x1c8] sm:$0xff] }
 0x102   : > { %v1300_v40 = vadd.f32 %v1299_v3, %v1067_v62  ;;  %1913 = vmatpush.bf16.msra.mxu3 %v2919_v58  ;;  %v2879_v62 = vld [vmem:[%s3927_s1 + $0x88] sm:$0xff] }
 0x103   : > { %v2927_v17 = vld [vmem:[%s3927_s1 + $0x208] sm:$0xff]  ;;  %1469 = vmatpush.bf16.msra.mxu1 %v2879_v62 }
 0x104   : > { %v3623_v47 = vadd.f32 %v1388_v56, %v1300_v40  ;;  %v2911_v56 = vld [vmem:[%s3927_s1 + $0x188] sm:$0xff]  ;;  %2002 = vmatpush.bf16.msra.mxu0 %v2927_v17 }
 0x105   : > { %1824 = vmatpush.bf16.msra.mxu2 %v2911_v56 }
 0x107   : > { %v1068_v23 = vpop.f32.mrf.mxu2  ;;  %v1301_v45 = vpop.f32.mrf.mxu3 }
 0x108   : > { %v1069_v0 = vadd.f32 %v1068_v23, %v980_v13  ;;  %v982_v37 = vpop.f32.mrf.mxu1  ;;  %v1393_v33 = vpop.f32.mrf.mxu0 }
 0x109   : > { %v983_v43 = vadd.f32 %v982_v37, %v3543_v35 }
 0x10a   : > { %v1302_v1 = vadd.f32 %v1301_v45, %v1069_v0 }
 0x10b   : > { %1021 = vmatmul.bf16.gmra.mxu1 %v3445_v55  ;;  %1432 = vmatmul.bf16.gmra.mxu0 %v3393_v44 }
 0x10c   : > { %1110 = vmatmul.bf16.gmra.mxu2 %v3206_v63  ;;  %1343 = vmatmul.bf16.gmra.mxu3 %v3299_v10  ;;  %v3636_v16 = vadd.f32 %v1390_v12, %v1302_v1 }
 0x10f   : > { %v1071_v35 = vpop.f32.mrf.mxu2  ;;  %v1304_v55 = vpop.f32.mrf.mxu3 }
 0x110   : > { %v1072_v4 = vadd.f32 %v1071_v35, %v983_v43  ;;  %v984_v7 = vpop.f32.mrf.mxu1  ;;  %v1395_v53 = vpop.f32.mrf.mxu0 }
 0x111   : > { %v985_v3 = vadd.f32 %v984_v7, %v3561_v24 }
 0x112   : > { %v1305_v10 = vadd.f32 %v1304_v55, %v1072_v4 }
 0x114   : > { %v3645_v12 = vadd.f32 %v1393_v33, %v1305_v10 }
 0x117   : > { %v1073_v13 = vpop.f32.mrf.mxu2  ;;  %v1306_v40 = vpop.f32.mrf.mxu3 }
 0x118   : > { %v1074_v43 = vadd.f32 %v1073_v13, %v985_v3  ;;  %v987_v23 = vpop.f32.mrf.mxu1  ;;  %v1398_v45 = vpop.f32.mrf.mxu0 }
 0x119   : > { %v988_v24 = vadd.f32 %v987_v23, %v3575_v57 }
 0x11a   : > { %v1307_v0 = vadd.f32 %v1306_v40, %v1074_v43 }
 0x11b   : > { %1026 = vmatmul.bf16.gmra.mxu1 %v3206_v63  ;;  %1437 = vmatmul.bf16.gmra.mxu0 %v3148_v15 }
 0x11c   : > { %1115 = vmatmul.bf16.gmra.mxu2 %v3305_v18  ;;  %1348 = vmatmul.bf16.gmra.mxu3 %v3393_v44  ;;  %v3652_v37 = vadd.f32 %v1395_v53, %v1307_v0  ;;  %v2910_v44 = vld [vmem:[%s3927_s1 + $0x180] sm:$0xff] }
 0x11d   : > { %1825 = vmatpush.bf16.msra.mxu2 %v2910_v44  ;;  %v2926_v0 = vld [vmem:[%s3927_s1 + $0x200] sm:$0xff] }
 0x11e   : > { %2003 = vmatpush.bf16.msra.mxu0 %v2926_v0 }
 0x11f   : > { %v1076_v33 = vpop.f32.mrf.mxu2  ;;  %v1309_v1 = vpop.f32.mrf.mxu3 }
 0x120   : > { %v1077_v56 = vadd.f32 %v1076_v33, %v988_v24  ;;  %v989_v58 = vpop.f32.mrf.mxu1  ;;  %v1400_v35 = vpop.f32.mrf.mxu0  ;;  %v2878_v24 = vld [vmem:[%s3927_s1 + $0x80] sm:$0xff] }
 0x121   : > { %v990_v55 = vadd.f32 %v989_v58, %v3587_v59  ;;  %v2918_v59 = vld [vmem:[%s3927_s1 + $0x1c0] sm:$0xff]  ;;  %1470 = vmatpush.bf16.msra.mxu1 %v2878_v24 }
 0x122   : > { %v1310_v4 = vadd.f32 %v1309_v1, %v1077_v56  ;;  %1914 = vmatpush.bf16.msra.mxu3 %v2918_v59  ;;  %v232_v1 = vld [vmem:[%s3126_s23 + $0xc8] sm:$0xf] }
 0x124   : > { %v3655_v57 = vadd.f32 %v1398_v45, %v1310_v4 }
 0x127   : > { %v1078_v7 = vpop.f32.mrf.mxu2  ;;  %v1311_v63 = vpop.f32.mrf.mxu3 }
 0x128   : > { %v1079_v3 = vadd.f32 %v1078_v7, %v990_v55  ;;  %v992_v10 = vpop.f32.mrf.mxu1  ;;  %v1403_v62 = vpop.f32.mrf.mxu0  ;;  %v3681_v7 = vld [vmem:[%s3126_s23 + $0xc0] sm:$0xff] }
 0x129   : > { %v993_v13 = vadd.f32 %v992_v10, %v3493_v28 }
 0x12a   : > { %v1312_v17 = vadd.f32 %v1311_v63, %v1079_v3  ;;  %v441_v63 = vunpack.c.l.b16 %v232_v1 }
 0x12b   : > { %1031 = vmatmul.bf16.gmra.mxu1 %v3305_v18  ;;  %1442 = vmatmul.bf16.gmra.mxu0 %v3215_v2 }
 0x12c   : > { %1120 = vmatmul.bf16.gmra.mxu2 %v3399_v46  ;;  %1353 = vmatmul.bf16.gmra.mxu3 %v3148_v15  ;;  %v3667_v53 = vadd.f32 %v1400_v35, %v1312_v17 }
 0x12f   : > { %v1081_v18 = vpop.f32.mrf.mxu2  ;;  %v1314_v40 = vpop.f32.mrf.mxu3 }
 0x130   : > { %v1082_v43 = vadd.f32 %v1081_v18, %v993_v13  ;;  %v994_v15 = vpop.f32.mrf.mxu1  ;;  %v1405_v23 = vpop.f32.mrf.mxu0 }
 0x131   : > { %v995_v33 = vadd.f32 %v994_v15, %v3511_v36  ;;  %v3689_v36 = vpack.c.b16 %v441_v63, %v441_v63  ;;  %v3701_v63 = vld [vmem:[%s3126_s23 + $0xcc] sm:$0xff] }
 0x132   : > { %v1315_v45 = vadd.f32 %v1314_v40, %v1082_v43  ;;  %v640_v40 = vshrl.u32 %v3681_v7, 16 }
 0x134   : > { %v3676_v28 = vadd.f32 %v1403_v62, %v1315_v45  ;;  %v642_v62 = vshll.u32 %v3681_v7, 16 }
 0x136   : > { %v644_v43 = vrot.slane %v642_v62, 1 }
 0x137   : > { %v1083_v56 = vpop.f32.mrf.mxu2  ;;  %v1316_v58 = vpop.f32.mrf.mxu3 }
 0x138   : > { %v1084_v35 = vadd.f32 %v1083_v56, %v995_v33  ;;  %v997_v55 = vpop.f32.mrf.mxu1  ;;  %v1408_v4 = vpop.f32.mrf.mxu0  ;;  %v645_v45 = vor.u32 %v644_v43, %v640_v40  ;;  %v235_v33 = vld [vmem:[%s3126_s23 + $0xd4] sm:$0xf] }
 0x139   : > { %v998_v17 = vadd.f32 %v997_v55, %v3525_v49 }
 0x13a   : > { %v1317_v3 = vadd.f32 %v1316_v58, %v1084_v35 }
 0x13b   : > { %1036 = vmatmul.bf16.gmra.mxu1 %v3399_v46  ;;  %1447 = vmatmul.bf16.gmra.mxu0 %v3308_v21 }
 0x13c   : > { %1125 = vmatmul.bf16.gmra.mxu2 %v3448_v14  ;;  %1358 = vmatmul.bf16.gmra.mxu3 %v3215_v2  ;;  %v3687_v10 = vadd.f32 %v1405_v23, %v1317_v3  ;;  %v647_v2 = vshll.u32 %v3689_v36, 16  ;;  %v444_v3 = vunpack.c.l.b16 %v235_v33 }
 0x13e   : > { %v649_v24 = vrot.slane %v647_v2, 1 }
 0x13f   : > { %v1086_v44 = vpop.f32.mrf.mxu2  ;;  %v1319_v59 = vpop.f32.mrf.mxu3 }
 0x140   : > { %v1087_v13 = vadd.f32 %v1086_v44, %v998_v17  ;;  %v999_v18 = vpop.f32.mrf.mxu1  ;;  %v1410_v46 = vpop.f32.mrf.mxu0  ;;  %v650_v55 = vsel %vm446_vm0, %v645_v45, %v649_v24  ;;  %v654_v17 = vshll.u32 %v3701_v63, 16 }
 0x141   : > { %v1000_v0 = vadd.f32 %v999_v18, %v3537_v60 }
 0x142   : > { %v1320_v15 = vadd.f32 %v1319_v59, %v1087_v13  ;;  %v656_v2 = vrot.slane %v654_v17, 1 }
 0x144   : > { %v3695_v23 = vadd.f32 %v1408_v4, %v1320_v15  ;;  %v3708_v4 = vpack.c.b16 %v444_v3, %v444_v3 }
 0x146   : > { %v659_v15 = vshll.u32 %v3708_v4, 16 }
 0x147   : > { %v1088_v49 = vpop.f32.mrf.mxu2  ;;  %v1321_v1 = vpop.f32.mrf.mxu3 }
 0x148   : > { %v1089_v56 = vadd.f32 %v1088_v49, %v1000_v0  ;;  %v1002_v58 = vpop.f32.mrf.mxu1  ;;  %v1413_v35 = vpop.f32.mrf.mxu0  ;;  %v661_v24 = vrot.slane %v659_v15, 1 }
 0x149   : > { %v1003_v44 = vadd.f32 %v1002_v58, %v3545_v41 }
 0x14a   : > { %v1322_v62 = vadd.f32 %v1321_v1, %v1089_v56 }
 0x14b   : > { %1041 = vmatmul.bf16.gmra.mxu1 %v3448_v14  ;;  %1452 = vmatmul.bf16.gmra.mxu0 %v3402_v48  ;;  %v652_v14 = vshrl.u32 %v3701_v63, 16 }
 0x14c   : > { %1130 = vmatmul.bf16.gmra.mxu2 %v650_v55  ;;  %1363 = vmatmul.bf16.gmra.mxu3 %v3308_v21  ;;  %v3706_v60 = vadd.f32 %v1410_v46, %v1322_v62 }
 0x14d   : > { %v657_v46 = vor.u32 %v656_v2, %v652_v14  ;;  %v1560_v14 = vrot.slane %v3324_v29, 1 }
 0x14f   : > { %v1091_v59 = vpop.f32.mrf.mxu2  ;;  %v1324_v13 = vpop.f32.mrf.mxu3  ;;  %v662_v58 = vsel %vm446_vm0, %v657_v46, %v661_v24 }
 0x150   : > { %v1092_v18 = vadd.f32 %v1091_v59, %v1003_v44  ;;  %v1004_v40 = vpop.f32.mrf.mxu1  ;;  %v1415_v43 = vpop.f32.mrf.mxu0 }
 0x151   : > { %v1005_v0 = vadd.f32 %v1004_v40, %v3563_v8  ;;  %v1554_v40 = vrot.slane %v3154_v19, 1 }
 0x152   : > { %v1325_v45 = vadd.f32 %v1324_v13, %v1092_v18 }
 0x154   : > { %v3714_v21 = vadd.f32 %v1413_v35, %v1325_v45 }
 0x157   : > { %v1093_v33 = vpop.f32.mrf.mxu2  ;;  %v1326_v49 = vpop.f32.mrf.mxu3 }
 0x158   : > { %v1094_v41 = vadd.f32 %v1093_v33, %v1005_v0  ;;  %v1007_v1 = vpop.f32.mrf.mxu1  ;;  %v1418_v56 = vpop.f32.mrf.mxu0 }
 0x159   : > { %v1008_v8 = vadd.f32 %v1007_v1, %v3577_v30  ;;  %v3063_v30 = vld [vmem:[%s3126_s23 + $0xc] sm:$0xff] }
 0x15a   : > { %v1327_v3 = vadd.f32 %v1326_v49, %v1094_v41  ;;  %v1556_v45 = vrot.slane %v3063_v30, 1 }
 0x15b   : > { %1046 = vmatmul.bf16.gmra.mxu1 %v650_v55  ;;  %1457 = vmatmul.bf16.gmra.mxu0 %v3681_v7  ;;  %v1559_v55 = vrot.slane %v3287_v61, 1 }
 0x15c   : > { %1135 = vmatmul.bf16.gmra.mxu2 %v662_v58  ;;  %1368 = vmatmul.bf16.gmra.mxu3 %v3402_v48  ;;  %v3720_v35 = vadd.f32 %v1415_v43, %v1327_v3  ;;  %v1557_v48 = vrot.slane %v3224_v6, 1  ;;  %v3062_v43 = vld [vmem:[%s3126_s23] sm:$0xff] }
 0x15d   : > { %v1553_v15 = vrot.slane %v3062_v43, 1  ;;  %v1561_v41 = vsel %vm1552_vm1, %v1559_v55, %v1560_v14 }
 0x15e   : > { %v1558_v1 = vsel %vm1552_vm1, %v1556_v45, %v1557_v48 }
 0x15f   : > { %v1096_v62 = vpop.f32.mrf.mxu2  ;;  %v1329_v17 = vpop.f32.mrf.mxu3  ;;  %v1555_v29 = vsel %vm1552_vm1, %v1553_v15, %v1554_v40 }
 0x160   : > { %v1097_v44 = vadd.f32 %v1096_v62, %v1008_v8  ;;  %v1009_v59 = vpop.f32.mrf.mxu1  ;;  %v1420_v13 = vpop.f32.mrf.mxu0 }
 0x161   : > { %v1010_v46 = vadd.f32 %v1009_v59, %v3589_v25  ;;  %v1562_v59 = vrot.slane %v3381_v38, 1 }
 0x162   : > { %v1330_v18 = vadd.f32 %v1329_v17, %v1097_v44 }
 0x164   : > { %v3726_v2 = vadd.f32 %v1418_v56, %v1330_v18  ;;  %v1563_v18 = vrot.slane %v3406_v50, 1 }
 0x166   : > { %v1564_v43 = vsel %vm1552_vm1, %v1562_v59, %v1563_v18 }
 0x167   : > { %v1098_v24 = vpop.f32.mrf.mxu2  ;;  %v1331_v0 = vpop.f32.mrf.mxu3 }
 0x168   : > { %v1099_v33 = vadd.f32 %v1098_v24, %v1010_v46  ;;  %v1012_v49 = vpop.f32.mrf.mxu1  ;;  %v1423_v19 = vpop.f32.mrf.mxu0 }
 0x169   : > { %v1013_v25 = vadd.f32 %v1012_v49, %v3505_v32  ;;  %v3064_v49 = vld [vmem:[%s3126_s23 + $0x30] sm:$0xff] }
 0x16a   : > { %v1332_v56 = vadd.f32 %v1331_v0, %v1099_v33 }
 0x16b   : > { %1471 = vmatmul.bf16.vlgmr.msra.gmra.mxu1 %v3287_v61  ;;  %2004 = vmatmul.bf16.vlgmr.msra.gmra.mxu0 %v1561_v41 }
 0x16c   : > { %1826 = vmatmul.bf16.vlgmr.msra.gmra.mxu2 %v1555_v29  ;;  %1915 = vmatmul.bf16.vlgmr.msra.gmra.mxu3 %v1558_v1  ;;  %v3736_v6 = vadd.f32 %v1420_v13, %v1332_v56  ;;  %v1566_v29 = vrot.slane %v3156_v20, 1 }
 0x16f   : > { %v1101_v58 = vpop.f32.mrf.mxu2  ;;  %v1334_v3 = vpop.f32.mrf.mxu3 }
 0x170   : > { %v1102_v8 = vadd.f32 %v1101_v58, %v1013_v25  ;;  %v1014_v62 = vpop.f32.mrf.mxu1  ;;  %v1425_v17 = vpop.f32.mrf.mxu0 }
 0x171   : > { %v1015_v61 = vadd.f32 %v1014_v62, %v3519_v39 }
 0x172   : > { %v1335_v44 = vadd.f32 %v1334_v3, %v1102_v8 }
 0x174   : > { %v3741_v40 = vadd.f32 %v1423_v19, %v1335_v44  ;;  %v1565_v19 = vrot.slane %v3064_v49, 1 }
 0x176   : > { %v1567_v8 = vsel %vm1552_vm1, %v1565_v19, %v1566_v29 }
 0x177   : > { %v1103_v55 = vpop.f32.mrf.mxu2  ;;  %v1336_v14 = vpop.f32.mrf.mxu3 }
 0x178   : > { %v1104_v13 = vadd.f32 %v1103_v55, %v1015_v61  ;;  %v1017_v48 = vpop.f32.mrf.mxu1  ;;  %v1428_v32 = vpop.f32.mrf.mxu0 }
 0x179   : > { %v1018_v50 = vadd.f32 %v1017_v48, %v3531_v51  ;;  %v1569_v48 = vrot.slane %v3229_v9, 1 }
 0x17a   : > { %v1337_v15 = vadd.f32 %v1336_v14, %v1104_v13  ;;  %v3065_v14 = vld [vmem:[%s3126_s23 + $0x3c] sm:$0xff] }
 0x17b   : > { %1476 = vmatmul.bf16.gmra.mxu1 %v3381_v38  ;;  %2009 = vmatmul.bf16.gmra.mxu0 %v1564_v43  ;;  %v1568_v13 = vrot.slane %v3065_v14, 1 }
 0x17c   : > { %1831 = vmatmul.bf16.gmra.mxu2 %v1558_v1  ;;  %1920 = vmatmul.bf16.gmra.mxu3 %v1561_v41  ;;  %v3746_v30 = vadd.f32 %v1425_v17, %v1337_v15 }
 0x17f   : > { %v1106_v45 = vpop.f32.mrf.mxu2  ;;  %v1339_v39 = vpop.f32.mrf.mxu3 }
 0x180   : > { %v1107_v46 = vadd.f32 %v1106_v45, %v1018_v50  ;;  %v1019_v24 = vpop.f32.mrf.mxu1  ;;  %v1430_v0 = vpop.f32.mrf.mxu0 }
 0x181   : > { %v1020_v38 = vadd.f32 %v1019_v24, %v3539_v22 }
 0x182   : > { %v1340_v33 = vadd.f32 %v1339_v39, %v1107_v46  ;;  %v1570_v46 = vsel %vm1552_vm1, %v1568_v13, %v1569_v48 }
 0x184   : > { %v3751_v56 = vadd.f32 %v1428_v32, %v1340_v33 }
 0x187   : > { %v1108_v1 = vpop.f32.mrf.mxu2  ;;  %v1341_v25 = vpop.f32.mrf.mxu3 }
 0x188   : > { %v1109_v58 = vadd.f32 %v1108_v1, %v1020_v38  ;;  %v1022_v3 = vpop.f32.mrf.mxu1  ;;  %v1433_v51 = vpop.f32.mrf.mxu0  ;;  %v3066_v1 = vld [vmem:[%s3126_s23 + $0x48] sm:$0xff] }
 0x189   : > { %v1023_v20 = vadd.f32 %v1022_v3, %v3557_v26 }
 0x18a   : > { %v1342_v62 = vadd.f32 %v1341_v25, %v1109_v58  ;;  %v1571_v25 = vrot.slane %v3066_v1, 1  ;;  %v1572_v58 = vrot.slane %v3329_v31, 1 }
 0x18b   : > { %1481 = vmatmul.bf16.gmra.mxu1 %v3064_v49  ;;  %2014 = vmatmul.bf16.gmra.mxu0 %v1567_v8 }
 0x18c   : > { %1836 = vmatmul.bf16.gmra.mxu2 %v1561_v41  ;;  %1925 = vmatmul.bf16.gmra.mxu3 %v1564_v43  ;;  %v3755_v17 = vadd.f32 %v1430_v0, %v1342_v62 }
 0x18f   : > { %v1111_v44 = vpop.f32.mrf.mxu2  ;;  %v1344_v59 = vpop.f32.mrf.mxu3 }
 0x190   : > { %v1112_v22 = vadd.f32 %v1111_v44, %v1023_v20  ;;  %v1024_v18 = vpop.f32.mrf.mxu1  ;;  %v1435_v61 = vpop.f32.mrf.mxu0 }
 0x191   : > { %v1025_v15 = vadd.f32 %v1024_v18, %v3571_v54 }
 0x192   : > { %v1345_v55 = vadd.f32 %v1344_v59, %v1112_v22 }
 0x194   : > { %v3760_v32 = vadd.f32 %v1433_v51, %v1345_v55 }
 0x197   : > { %v1113_v41 = vpop.f32.mrf.mxu2  ;;  %v1346_v50 = vpop.f32.mrf.mxu3 }
 0x198   : > { %v1114_v45 = vadd.f32 %v1113_v41, %v1025_v15  ;;  %v1027_v39 = vpop.f32.mrf.mxu1  ;;  %v1438_v26 = vpop.f32.mrf.mxu0  ;;  %v1574_v15 = vrot.slane %v3390_v42, 1  ;;  %v1575_v41 = vrot.slane %v3411_v52, 1  ;;  %v3955_v52 = vld [vmem:[#allocation11_spill] sm:$0xff] }
 0x199   : > { %v1028_v9 = vadd.f32 %v1027_v39, %v3583_v11  ;;  %v1573_v11 = vsel %vm1552_vm1, %v1571_v25, %v1572_v58 }
 0x19a   : > { %v1347_v24 = vadd.f32 %v1346_v50, %v1114_v45  ;;  %v3954_v45 = vld [vmem:[#allocation10_spill] sm:$0xff] }
 0x19b   : > { %1486 = vmatmul.bf16.gmra.mxu1 %v3065_v14  ;;  %2019 = vmatmul.bf16.gmra.mxu0 %v1570_v46 }
 0x19c   : > { %1841 = vmatmul.bf16.gmra.mxu2 %v1564_v43  ;;  %1930 = vmatmul.bf16.gmra.mxu3 %v1567_v8  ;;  %v3764_v0 = vadd.f32 %v1435_v61, %v1347_v24 }
 0x19f   : > { %v1116_v33 = vpop.f32.mrf.mxu2  ;;  %v1349_v49 = vpop.f32.mrf.mxu3 }
 0x1a0   : > { %v1117_v54 = vadd.f32 %v1116_v33, %v1028_v9  ;;  %v1029_v19 = vpop.f32.mrf.mxu1  ;;  %v1440_v29 = vpop.f32.mrf.mxu0  ;;  %v1576_v33 = vsel %vm1552_vm1, %v1574_v15, %v1575_v41  ;;  %v3958_v15 = vld [vmem:[#allocation13_spill] sm:$0xff] }
 0x1a1   : > { %v1030_v51 = vadd.f32 %v1029_v19, %v3591_v5 }
 0x1a2   : > { %v1350_v38 = vadd.f32 %v1349_v49, %v1117_v54 }
 0x1a4   : > { %v3769_v3 = vadd.f32 %v1438_v26, %v1350_v38 }
 0x1a7   : > { %v1118_v43 = vpop.f32.mrf.mxu2  ;;  %v1351_v62 = vpop.f32.mrf.mxu3 }
 0x1a8   : > { %v1119_v20 = vadd.f32 %v1118_v43, %v1030_v51  ;;  %v1032_v44 = vpop.f32.mrf.mxu1  ;;  %v1443_v59 = vpop.f32.mrf.mxu0  ;;  %v3067_v43 = vld [vmem:[%s3126_s23 + $0x60] sm:$0xff] }
 0x1a9   : > { %v1033_v31 = vadd.f32 %v1032_v44, %v3507_v34 }
 0x1aa   : > { %v1352_v22 = vadd.f32 %v1351_v62, %v1119_v20  ;;  %v1577_v62 = vrot.slane %v3067_v43, 1  ;;  %v3956_v20 = vld [vmem:[#allocation2_spill] sm:$0xff] }
 0x1ab   : > { %1491 = vmatmul.bf16.gmra.mxu1 %v3066_v1  ;;  %2024 = vmatmul.bf16.gmra.mxu0 %v1573_v11  ;;  %v1578_v44 = vrot.slane %v3956_v20, 1 }
 0x1ac   : > { %1846 = vmatmul.bf16.gmra.mxu2 %v1567_v8  ;;  %1935 = vmatmul.bf16.gmra.mxu3 %v1570_v46  ;;  %v3773_v18 = vadd.f32 %v1440_v29, %v1352_v22 }
 0x1af   : > { %v1121_v61 = vpop.f32.mrf.mxu2  ;;  %v1354_v55 = vpop.f32.mrf.mxu3 }
 0x1b0   : > { %v1122_v14 = vadd.f32 %v1121_v61, %v1033_v31  ;;  %v1034_v5 = vpop.f32.mrf.mxu1  ;;  %v1445_v13 = vpop.f32.mrf.mxu0 }
 0x1b1   : > { %v1035_v39 = vadd.f32 %v1034_v5, %v3954_v45  ;;  %v1579_v5 = vsel %vm1552_vm1, %v1577_v62, %v1578_v44 }
 0x1b2   : > { %v1355_v48 = vadd.f32 %v1354_v55, %v1122_v14 }
 0x1b4   : > { %v3778_v50 = vadd.f32 %v1443_v59, %v1355_v48 }
 0x1b7   : > { %v1123_v8 = vpop.f32.mrf.mxu2  ;;  %v1356_v26 = vpop.f32.mrf.mxu3 }
 0x1b8   : > { %v1124_v24 = vadd.f32 %v1123_v8, %v1035_v39  ;;  %v1037_v9 = vpop.f32.mrf.mxu1  ;;  %v1448_v34 = vpop.f32.mrf.mxu0 }
 0x1b9   : > { %v1038_v19 = vadd.f32 %v1037_v9, %v3955_v52  ;;  %v3959_v52 = vld [vmem:[#allocation4_spill] sm:$0xff] }
 0x1ba   : > { %v1357_v49 = vadd.f32 %v1356_v26, %v1124_v24 }
 0x1bb   : > { %1496 = vmatmul.bf16.gmra.mxu1 %v3390_v42  ;;  %2029 = vmatmul.bf16.gmra.mxu0 %v1576_v33  ;;  %v3957_v42 = vld [vmem:[#allocation12_spill] sm:$0xff] }
 0x1bc   : > { %1851 = vmatmul.bf16.gmra.mxu2 %v1570_v46  ;;  %1940 = vmatmul.bf16.gmra.mxu3 %v1573_v11  ;;  %v3783_v54 = vadd.f32 %v1445_v13, %v1357_v49 }
 0x1bf   : > { %v1126_v29 = vpop.f32.mrf.mxu2  ;;  %v1359_v38 = vpop.f32.mrf.mxu3 }
 0x1c0   : > { %v1127_v1 = vadd.f32 %v1126_v29, %v1038_v19  ;;  %v1039_v25 = vpop.f32.mrf.mxu1  ;;  %v1450_v58 = vpop.f32.mrf.mxu0  ;;  %v1581_v19 = vrot.slane %v3959_v52, 1 }
 0x1c1   : > { %v1040_v22 = vadd.f32 %v1039_v25, %v3957_v42  ;;  %v3961_v42 = vld [vmem:[#allocation15_spill] sm:$0xff] }
 0x1c2   : > { %v1360_v51 = vadd.f32 %v1359_v38, %v1127_v1  ;;  %v3960_v38 = vld [vmem:[#allocation14_spill] sm:$0xff] }
 0x1c4   : > { %v3788_v59 = vadd.f32 %v1448_v34, %v1360_v51  ;;  %v3068_v34 = vld [vmem:[%s3126_s23 + $0x6c] sm:$0xff] }
 0x1c5   : > { %v1580_v49 = vrot.slane %v3068_v34, 1 }
 0x1c7   : > { %v1128_v46 = vpop.f32.mrf.mxu2  ;;  %v1361_v31 = vpop.f32.mrf.mxu3  ;;  %v1582_v62 = vsel %vm1552_vm1, %v1580_v49, %v1581_v19 }
 0x1c8   : > { %v1129_v61 = vadd.f32 %v1128_v46, %v1040_v22  ;;  %v1042_v55 = vpop.f32.mrf.mxu1  ;;  %v1453_v14 = vpop.f32.mrf.mxu0 }
 0x1c9   : > { %v1043_v41 = vadd.f32 %v1042_v55, %v3958_v15  ;;  %v3069_v15 = vld [vmem:[%s3126_s23 + $0x78] sm:$0xff] }
 0x1ca   : > { %v1362_v13 = vadd.f32 %v1361_v31, %v1129_v61 }
 0x1cb   : > { %1501 = vmatmul.bf16.gmra.mxu1 %v3067_v43  ;;  %2034 = vmatmul.bf16.gmra.mxu0 %v1579_v5 }
 0x1cc   : > { %1856 = vmatmul.bf16.gmra.mxu2 %v1573_v11  ;;  %1945 = vmatmul.bf16.gmra.mxu3 %v1576_v33  ;;  %v3792_v48 = vadd.f32 %v1450_v58, %v1362_v13 }
 0x1cf   : > { %v1131_v45 = vpop.f32.mrf.mxu2  ;;  %v1364_v39 = vpop.f32.mrf.mxu3 }
 0x1d0   : > { %v1132_v8 = vadd.f32 %v1131_v45, %v1043_v41  ;;  %v1044_v26 = vpop.f32.mrf.mxu1  ;;  %v1455_v24 = vpop.f32.mrf.mxu0  ;;  %v1583_v41 = vrot.slane %v3069_v15, 1  ;;  %v3962_v45 = vld [vmem:[#allocation6_spill] sm:$0xff] }
 0x1d1   : > { %v1045_v1 = vadd.f32 %v1044_v26, %v3960_v38  ;;  %v3963_v26 = vld [vmem:[#allocation16_spill] sm:$0xff] }
 0x1d2   : > { %v1365_v9 = vadd.f32 %v1364_v39, %v1132_v8  ;;  %v1584_v39 = vrot.slane %v3962_v45, 1 }
 0x1d4   : > { %v3797_v29 = vadd.f32 %v1453_v14, %v1365_v9  ;;  %v3810_v19 = vsel %vm1552_vm1, %v1583_v41, %v1584_v39 }
 0x1d7   : > { %v1133_v11 = vpop.f32.mrf.mxu2  ;;  %v1366_v25 = vpop.f32.mrf.mxu3 }
 0x1d8   : > { %v1134_v58 = vadd.f32 %v1133_v11, %v1045_v1  ;;  %v1047_v51 = vpop.f32.mrf.mxu1  ;;  %v1458_v43 = vpop.f32.mrf.mxu0 }
 0x1d9   : > { %v1048_v22 = vadd.f32 %v1047_v51, %v3961_v42 }
 0x1da   : > { %v1367_v20 = vadd.f32 %v1366_v25, %v1134_v58 }
 0x1db   : > { %1506 = vmatmul.bf16.gmra.mxu1 %v3068_v34  ;;  %2039 = vmatmul.bf16.gmra.mxu0 %v1582_v62 }
 0x1dc   : > { %1861 = vmatmul.bf16.gmra.mxu2 %v1576_v33  ;;  %1950 = vmatmul.bf16.gmra.mxu3 %v1579_v5  ;;  %v3801_v44 = vadd.f32 %v1455_v24, %v1367_v20  ;;  %v3070_v20 = vld [vmem:[%s3126_s23 + $0x84] sm:$0xff] }
 0x1dd   : > { %v1586_v42 = vrot.slane %v3070_v20, 1 }
 0x1df   : > { %v1136_v46 = vpop.f32.mrf.mxu2  ;;  %v1369_v31 = vpop.f32.mrf.mxu3 }
 0x1e0   : > { %v1137_v61 = vadd.f32 %v1136_v46, %v1048_v22  ;;  %v1049_v55 = vpop.f32.mrf.mxu1  ;;  %v1460_v14 = vpop.f32.mrf.mxu0  ;;  %v3964_v22 = vld [vmem:[#allocation8_spill] sm:$0xff] }
 0x1e1   : > { %v1050_v9 = vadd.f32 %v1049_v55, %v3963_v26  ;;  %v1587_v46 = vrot.slane %v3964_v22, 1 }
 0x1e2   : > { %v1370_v13 = vadd.f32 %v1369_v31, %v1137_v61 }
 0x1e4   : > { %v3806_v8 = vadd.f32 %v1458_v43, %v1370_v13  ;;  %v3965_v13 = vld [vmem:[#allocation17_spill] sm:$0xff] }
 0x1e7   : > { %v1138_v33 = vpop.f32.mrf.mxu2  ;;  %v1371_v34 = vpop.f32.mrf.mxu3 }
 0x1e8   : > { %v1139_v24 = vadd.f32 %v1138_v33, %v1050_v9  ;;  %v1472_v49 = vpop.f32.mrf.mxu1  ;;  %v2005_v52 = vpop.f32.mrf.mxu0 }
 0x1ea   : > { %v1372_v38 = vadd.f32 %v1371_v34, %v1139_v24 }
 0x1eb   : > { %1511 = vmatmul.bf16.gmra.mxu1 %v3069_v15  ;;  %2044 = vmatmul.bf16.gmra.mxu0 %v3810_v19  ;;  %v1473_v15 = vadd.f32 %v1472_v49, %v3965_v13 }
 0x1ec   : > { %1866 = vmatmul.bf16.gmra.mxu2 %v1579_v5  ;;  %1955 = vmatmul.bf16.gmra.mxu3 %v1582_v62  ;;  %v3813_v1 = vadd.f32 %v1460_v14, %v1372_v38  ;;  %v3819_v14 = vsel %vm1552_vm1, %v1586_v42, %v1587_v46  ;;  %v3071_v42 = vld [vmem:[%s3126_s23 + $0x90] sm:$0xff]  ;;  %v3966_v46 = vld [vmem:[#allocation3_spill] sm:$0xff] }
 0x1ed   : > { %v1589_v22 = vrot.slane %v3071_v42, 1 }
 0x1ef   : > { %v1827_v11 = vpop.f32.mrf.mxu2  ;;  %v1916_v25 = vpop.f32.mrf.mxu3 }
 0x1f0   : > { %v1474_v58 = vpop.f32.mrf.mxu1  ;;  %v2007_v51 = vpop.f32.mrf.mxu0  ;;  %v1917_v43 = vadd.f32 %v1916_v25, %v1827_v11 }
 0x1f1   : > { %v1475_v26 = vadd.f32 %v1474_v58, %v3620_v27 }
 0x1f2   : > { %v2006_v31 = vadd.f32 %v2005_v52, %v1917_v43 }
 0x1f4   : > { %v2085_v39 = vadd.f32 %v2006_v31, %v1473_v15  ;;  %v1590_v31 = vrot.slane %v3966_v46, 1 }
 0x1f6   : > { %v2154_v34 = vmul.f32 %v2085_v39, %v2085_v39 }
 0x1f7   : > { %v1829_v61 = vpop.f32.mrf.mxu2  ;;  %v1918_v55 = vpop.f32.mrf.mxu3 }
 0x1f8   : > { %v1919_v41 = vadd.f32 %v1918_v55, %v1829_v61  ;;  %v1477_v5 = vpop.f32.mrf.mxu1  ;;  %v2010_v45 = vpop.f32.mrf.mxu0 }
 0x1fa   : > { %v2008_v9 = vadd.f32 %v2007_v51, %v1919_v41  ;;  %v1478_v51 = vadd.f32 %v1477_v5, %v3623_v47 }
 0x1fb   : > { %1516 = vmatmul.bf16.gmra.mxu1 %v3070_v20  ;;  %2049 = vmatmul.bf16.gmra.mxu0 %v3819_v14 }
 0x1fc   : > { %v2086_v33 = vadd.f32 %v2008_v9, %v1475_v26  ;;  %1871 = vmatmul.bf16.gmra.mxu2 %v1582_v62  ;;  %1960 = vmatmul.bf16.gmra.mxu3 %v3810_v19 }
 0x1fe   : > { %v2117_v24 = vadd.f32 %v2086_v33, %v2085_v39  ;;  %v2155_v49 = vmul.f32 %v2086_v33, %v2086_v33  ;;  %v2937_v27 = vpack.c.bf16 %v2086_v33, %v2085_v39  ;;  %v3835_v33 = vsel %vm1552_vm1, %v1589_v22, %v1590_v31  ;;  %v3967_v22 = vld [vmem:[#allocation5_spill] sm:$0xff] }
 0x1ff   : > { %v1832_v52 = vpop.f32.mrf.mxu2  ;;  %v1921_v38 = vpop.f32.mrf.mxu3 }
 0x200   : > { %v2186_v11 = vadd.f32 %v2155_v49, %v2154_v34  ;;  %2938 = vst [vmem:[%s3828_s20] sm:$0xff] %v2937_v27   ;;  %v1922_v25 = vadd.f32 %v1921_v38, %v1832_v52  ;;  %v1479_v58 = vpop.f32.mrf.mxu1  ;;  %v2012_v62 = vpop.f32.mrf.mxu0 }
 0x201   : > { %v1480_v47 = vadd.f32 %v1479_v58, %v3636_v16 }
 0x202   : > { %v2011_v43 = vadd.f32 %v2010_v45, %v1922_v25 }
 0x204   : > { %v2087_v20 = vadd.f32 %v2011_v43, %v1478_v51  ;;  %v3072_v43 = vld [vmem:[%s3126_s23 + $0x9c] sm:$0xff] }
 0x206   : > { %v2118_v61 = vadd.f32 %v2117_v24, %v2087_v20  ;;  %v2156_v55 = vmul.f32 %v2087_v20, %v2087_v20 }
 0x207   : > { %v1834_v13 = vpop.f32.mrf.mxu2  ;;  %v1923_v15 = vpop.f32.mrf.mxu3 }
 0x208   : > { %v2187_v41 = vadd.f32 %v2186_v11, %v2156_v55  ;;  %v1924_v39 = vadd.f32 %v1923_v15, %v1834_v13  ;;  %v1482_v26 = vpop.f32.mrf.mxu1  ;;  %v2015_v9 = vpop.f32.mrf.mxu0 }
 0x209   : > { %v1483_v58 = vadd.f32 %v1482_v26, %v3645_v12 }
 0x20a   : > { %v2013_v5 = vadd.f32 %v2012_v62, %v1924_v39 }
 0x20b   : > { %1521 = vmatmul.bf16.gmra.mxu1 %v3071_v42  ;;  %2054 = vmatmul.bf16.gmra.mxu0 %v3835_v33  ;;  %v1592_v42 = vrot.slane %v3072_v43, 1 }
 0x20c   : > { %v2088_v45 = vadd.f32 %v2013_v5, %v1480_v47  ;;  %1876 = vmatmul.bf16.gmra.mxu2 %v3810_v19  ;;  %1965 = vmatmul.bf16.gmra.mxu3 %v3819_v14  ;;  %v1593_v19 = vrot.slane %v3967_v22, 1 }
 0x20e   : > { %v2119_v34 = vadd.f32 %v2118_v61, %v2088_v45  ;;  %v2157_v24 = vmul.f32 %v2088_v45, %v2088_v45  ;;  %v2942_v49 = vpack.c.bf16 %v2088_v45, %v2087_v20  ;;  %v3846_v39 = vsel %vm1552_vm1, %v1592_v42, %v1593_v19 }
 0x20f   : > { %v1837_v27 = vpop.f32.mrf.mxu2  ;;  %v1926_v52 = vpop.f32.mrf.mxu3 }
 0x210   : > { %v2188_v38 = vadd.f32 %v2187_v41, %v2157_v24  ;;  %3014 = vst [vmem:[%s3828_s20 + $0x8] sm:$0xff] %v2942_v49   ;;  %v1927_v11 = vadd.f32 %v1926_v52, %v1837_v27  ;;  %v1484_v25 = vpop.f32.mrf.mxu1  ;;  %v2017_v16 = vpop.f32.mrf.mxu0 }
 0x211   : > { %v1485_v12 = vadd.f32 %v1484_v25, %v3652_v37 }
 0x212   : > { %v2016_v62 = vadd.f32 %v2015_v9, %v1927_v11 }
 0x214   : > { %v2089_v51 = vadd.f32 %v2016_v62, %v1483_v58  ;;  %v3968_v62 = vld [vmem:[#allocation7_spill] sm:$0xff] }
 0x216   : > { %v2120_v46 = vadd.f32 %v2119_v34, %v2089_v51  ;;  %v2158_v31 = vmul.f32 %v2089_v51, %v2089_v51 }
 0x217   : > { %v1839_v61 = vpop.f32.mrf.mxu2  ;;  %v1928_v55 = vpop.f32.mrf.mxu3 }
 0x218   : > { %v2189_v20 = vadd.f32 %v2188_v38, %v2158_v31  ;;  %v1929_v13 = vadd.f32 %v1928_v55, %v1839_v61  ;;  %v1487_v15 = vpop.f32.mrf.mxu1  ;;  %v2020_v41 = vpop.f32.mrf.mxu0 }
 0x219   : > { %v1488_v38 = vadd.f32 %v1487_v15, %v3655_v57 }
 0x21a   : > { %v2018_v26 = vadd.f32 %v2017_v16, %v1929_v13  ;;  %v3073_v16 = vld [vmem:[%s3126_s23 + $0xa8] sm:$0xff] }
 0x21b   : > { %1526 = vmatmul.bf16.gmra.mxu1 %v3072_v43  ;;  %2059 = vmatmul.bf16.gmra.mxu0 %v3846_v39  ;;  %v1595_v58 = vrot.slane %v3073_v16, 1 }
 0x21c   : > { %v2090_v9 = vadd.f32 %v2018_v26, %v1485_v12  ;;  %1881 = vmatmul.bf16.gmra.mxu2 %v3819_v14  ;;  %1970 = vmatmul.bf16.gmra.mxu3 %v3835_v33  ;;  %v1596_v14 = vrot.slane %v3968_v62, 1 }
 0x21e   : > { %v2121_v47 = vadd.f32 %v2120_v46, %v2090_v9  ;;  %v2159_v5 = vmul.f32 %v2090_v9, %v2090_v9  ;;  %v2947_v45 = vpack.c.bf16 %v2090_v9, %v2089_v51  ;;  %v3857_v55 = vsel %vm1552_vm1, %v1595_v58, %v1596_v14 }
 0x21f   : > { %v1842_v34 = vpop.f32.mrf.mxu2  ;;  %v1931_v24 = vpop.f32.mrf.mxu3 }
 0x220   : > { %v2190_v49 = vadd.f32 %v2189_v20, %v2159_v5  ;;  %3015 = vst [vmem:[%s3828_s20 + $0x10] sm:$0xff] %v2947_v45   ;;  %v1932_v27 = vadd.f32 %v1931_v24, %v1842_v34  ;;  %v1489_v52 = vpop.f32.mrf.mxu1  ;;  %v2022_v37 = vpop.f32.mrf.mxu0 }
 0x221   : > { %v1490_v57 = vadd.f32 %v1489_v52, %v3667_v53 }
 0x222   : > { %v2021_v11 = vadd.f32 %v2020_v41, %v1932_v27  ;;  %v3074_v27 = vld [vmem:[%s3126_s23 + $0xb4] sm:$0xff]  ;;  %s2384_s23 = sshll.u32 %s3971_s13, 1 }
 0x223   : > { %v1598_v52 = vrot.slane %v3074_v27, 1  ;;  %s181_s24 = scalar_lea.vmem %s3929_s3, %s2384_s23 }
 0x224   : > { %v2091_v25 = vadd.f32 %v2021_v11, %v1488_v38 }
 0x226   : > { %v2122_v43 = vadd.f32 %v2121_v47, %v2091_v25  ;;  %v2160_v42 = vmul.f32 %v2091_v25, %v2091_v25 }
 0x227   : > { %v1844_v22 = vpop.f32.mrf.mxu2  ;;  %v1933_v19 = vpop.f32.mrf.mxu3 }
 0x228   : > { %v2191_v51 = vadd.f32 %v2190_v49, %v2160_v42  ;;  %v1934_v46 = vadd.f32 %v1933_v19, %v1844_v22  ;;  %v1492_v31 = vpop.f32.mrf.mxu1  ;;  %v2025_v61 = vpop.f32.mrf.mxu0 }
 0x229   : > { %v1493_v34 = vadd.f32 %v1492_v31, %v3676_v28 }
 0x22a   : > { %v2023_v20 = vadd.f32 %v2022_v37, %v1934_v46  ;;  %v3969_v37 = vld [vmem:[#allocation9_spill] sm:$0xff] }
 0x22b   : > { %1531 = vmatmul.bf16.gmra.mxu1 %v3073_v16  ;;  %2064 = vmatmul.bf16.gmra.mxu0 %v3857_v55 }
 0x22c   : > { %v2092_v13 = vadd.f32 %v2023_v20, %v1490_v57  ;;  %1886 = vmatmul.bf16.gmra.mxu2 %v3835_v33  ;;  %1975 = vmatmul.bf16.gmra.mxu3 %v3846_v39  ;;  %v1599_v33 = vrot.slane %v3969_v37, 1 }
 0x22e   : > { %v2123_v15 = vadd.f32 %v2122_v43, %v2092_v13  ;;  %v2161_v41 = vmul.f32 %v2092_v13, %v2092_v13  ;;  %v2952_v12 = vpack.c.bf16 %v2092_v13, %v2091_v25  ;;  %v3868_v42 = vsel %vm1552_vm1, %v1598_v52, %v1599_v33 }
 0x22f   : > { %v1847_v26 = vpop.f32.mrf.mxu2  ;;  %v1936_v9 = vpop.f32.mrf.mxu3 }
 0x230   : > { %v2192_v47 = vadd.f32 %v2191_v51, %v2161_v41  ;;  %3016 = vst [vmem:[%s3828_s20 + $0x18] sm:$0xff] %v2952_v12   ;;  %v1937_v5 = vadd.f32 %v1936_v9, %v1847_v26  ;;  %v1494_v45 = vpop.f32.mrf.mxu1  ;;  %v2027_v53 = vpop.f32.mrf.mxu0  ;;  %v1601_v9 = vrot.slane %v3681_v7, 1 }
 0x231   : > { %v1495_v28 = vadd.f32 %v1494_v45, %v3687_v10 }
 0x232   : > { %v2026_v24 = vadd.f32 %v2025_v61, %v1937_v5 }
 0x234   : > { %v2093_v49 = vadd.f32 %v2026_v24, %v1493_v34 }
 0x236   : > { %v2124_v38 = vadd.f32 %v2123_v15, %v2093_v49  ;;  %v2162_v11 = vmul.f32 %v2093_v49, %v2093_v49 }
 0x237   : > { %v1849_v16 = vpop.f32.mrf.mxu2  ;;  %v1938_v58 = vpop.f32.mrf.mxu3 }
 0x238   : > { %v2193_v25 = vadd.f32 %v2192_v47, %v2162_v11  ;;  %v1939_v62 = vadd.f32 %v1938_v58, %v1849_v16  ;;  %v1497_v14 = vpop.f32.mrf.mxu1  ;;  %v2030_v43 = vpop.f32.mrf.mxu0 }
 0x239   : > { %v1498_v10 = vadd.f32 %v1497_v14, %v3695_v23 }
 0x23a   : > { %v2028_v22 = vadd.f32 %v2027_v53, %v1939_v62 }
 0x23b   : > { %1536 = vmatmul.bf16.gmra.mxu1 %v3074_v27  ;;  %2069 = vmatmul.bf16.gmra.mxu0 %v3868_v42 }
 0x23c   : > { %v2094_v19 = vadd.f32 %v2028_v22, %v1495_v28  ;;  %1891 = vmatmul.bf16.gmra.mxu2 %v3846_v39  ;;  %1980 = vmatmul.bf16.gmra.mxu3 %v3857_v55  ;;  %v1602_v39 = vrot.slane %v3689_v36, 1  ;;  %v1604_v22 = vrot.slane %v3701_v63, 1 }
 0x23e   : > { %v2125_v51 = vadd.f32 %v2124_v38, %v2094_v19  ;;  %v2163_v46 = vmul.f32 %v2094_v19, %v2094_v19  ;;  %v2957_v31 = vpack.c.bf16 %v2094_v19, %v2093_v49  ;;  %v1603_v52 = vsel %vm1552_vm1, %v1601_v9, %v1602_v39 }
 0x23f   : > { %v1852_v61 = vpop.f32.mrf.mxu2  ;;  %v1941_v57 = vpop.f32.mrf.mxu3 }
 0x240   : > { %v2194_v20 = vadd.f32 %v2193_v25, %v2163_v46  ;;  %3017 = vst [vmem:[%s3828_s20 + $0x20] sm:$0xff] %v2957_v31   ;;  %v1942_v13 = vadd.f32 %v1941_v57, %v1852_v61  ;;  %v1499_v15 = vpop.f32.mrf.mxu1  ;;  %v2032_v41 = vpop.f32.mrf.mxu0 }
 0x241   : > { %v1500_v37 = vadd.f32 %v1499_v15, %v3706_v60 }
 0x242   : > { %v2031_v12 = vadd.f32 %v2030_v43, %v1942_v13 }
 0x244   : > { %v2095_v26 = vadd.f32 %v2031_v12, %v1498_v10 }
 0x246   : > { %v2126_v47 = vadd.f32 %v2125_v51, %v2095_v26  ;;  %v2164_v5 = vmul.f32 %v2095_v26, %v2095_v26 }
 0x247   : > { %v1854_v45 = vpop.f32.mrf.mxu2  ;;  %v1943_v53 = vpop.f32.mrf.mxu3 }
 0x248   : > { %v2195_v34 = vadd.f32 %v2194_v20, %v2164_v5  ;;  %v1944_v24 = vadd.f32 %v1943_v53, %v1854_v45  ;;  %v1502_v49 = vpop.f32.mrf.mxu1  ;;  %v2035_v27 = vpop.f32.mrf.mxu0 }
 0x249   : > { %v1503_v60 = vadd.f32 %v1502_v49, %v3714_v21 }
 0x24a   : > { %v2033_v23 = vadd.f32 %v2032_v41, %v1944_v24 }
 0x24b   : > { %1541 = vmatmul.bf16.gmra.mxu1 %v3681_v7  ;;  %2074 = vmatmul.bf16.gmra.mxu0 %v1603_v52 }
 0x24c   : > { %v2096_v33 = vadd.f32 %v2033_v23, %v1500_v37  ;;  %1896 = vmatmul.bf16.gmra.mxu2 %v3857_v55  ;;  %1985 = vmatmul.bf16.gmra.mxu3 %v3868_v42  ;;  %v1605_v55 = vrot.slane %v3708_v4, 1 }
 0x24e   : > { %v2127_v36 = vadd.f32 %v2126_v47, %v2096_v33  ;;  %v2165_v38 = vmul.f32 %v2096_v33, %v2096_v33  ;;  %v2962_v11 = vpack.c.bf16 %v2096_v33, %v2095_v26  ;;  %v1606_v15 = vsel %vm1552_vm1, %v1604_v22, %v1605_v55 }
 0x24f   : > { %v1857_v16 = vpop.f32.mrf.mxu2  ;;  %v1946_v58 = vpop.f32.mrf.mxu3 }
 0x250   : > { %v2196_v25 = vadd.f32 %v2195_v34, %v2165_v38  ;;  %3018 = vst [vmem:[%s3828_s20 + $0x28] sm:$0xff] %v2962_v11   ;;  %v1947_v62 = vadd.f32 %v1946_v58, %v1857_v16  ;;  %v1504_v14 = vpop.f32.mrf.mxu1  ;;  %v2037_v43 = vpop.f32.mrf.mxu0 }
 0x251   : > { %v1505_v41 = vadd.f32 %v1504_v14, %v3720_v35 }
 0x252   : > { %v2036_v28 = vadd.f32 %v2035_v27, %v1947_v62 }
 0x254   : > { %v2097_v7 = vadd.f32 %v2036_v28, %v1503_v60 }
 0x256   : > { %v2128_v19 = vadd.f32 %v2127_v36, %v2097_v7  ;;  %v2166_v51 = vmul.f32 %v2097_v7, %v2097_v7 }
 0x257   : > { %v1859_v46 = vpop.f32.mrf.mxu2  ;;  %v1948_v31 = vpop.f32.mrf.mxu3 }
 0x258   : > { %v2197_v61 = vadd.f32 %v2196_v25, %v2166_v51  ;;  %v1949_v57 = vadd.f32 %v1948_v31, %v1859_v46  ;;  %v1507_v20 = vpop.f32.mrf.mxu1  ;;  %v2040_v13 = vpop.f32.mrf.mxu0 }
 0x259   : > { %v1508_v35 = vadd.f32 %v1507_v20, %v3726_v2 }
 0x25a   : > { %v2038_v21 = vadd.f32 %v2037_v43, %v1949_v57 }
 0x25b   : > { %1546 = vmatmul.bf16.gmra.mxu1 %v3701_v63  ;;  %2079 = vmatmul.bf16.gmra.mxu0 %v1606_v15 }
 0x25c   : > { %v2098_v10 = vadd.f32 %v2038_v21, %v1505_v41  ;;  %1901 = vmatmul.bf16.gmra.mxu2 %v3868_v42  ;;  %1990 = vmatmul.bf16.gmra.mxu3 %v1603_v52 }
 0x25e   : > { %v2129_v4 = vadd.f32 %v2128_v19, %v2098_v10  ;;  %v2167_v12 = vmul.f32 %v2098_v10, %v2098_v10  ;;  %v2967_v26 = vpack.c.bf16 %v2098_v10, %v2097_v7 }
 0x25f   : > { %v1862_v9 = vpop.f32.mrf.mxu2  ;;  %v1951_v39 = vpop.f32.mrf.mxu3 }
 0x260   : > { %v2198_v47 = vadd.f32 %v2197_v61, %v2167_v12  ;;  %3019 = vst [vmem:[%s3828_s20 + $0x30] sm:$0xff] %v2967_v26   ;;  %v1952_v5 = vadd.f32 %v1951_v39, %v1862_v9  ;;  %v1509_v45 = vpop.f32.mrf.mxu1  ;;  %v2042_v53 = vpop.f32.mrf.mxu0 }
 0x261   : > { %v1510_v36 = vadd.f32 %v1509_v45, %v3736_v6 }
 0x262   : > { %v2041_v34 = vadd.f32 %v2040_v13, %v1952_v5 }
 0x264   : > { %v2099_v24 = vadd.f32 %v2041_v34, %v1508_v35 }
 0x266   : > { %v2130_v63 = vadd.f32 %v2129_v4, %v2099_v24  ;;  %v2168_v49 = vmul.f32 %v2099_v24, %v2099_v24 }
 0x267   : > { %v1864_v27 = vpop.f32.mrf.mxu2  ;;  %v1953_v42 = vpop.f32.mrf.mxu3 }
 0x268   : > { %v2199_v52 = vadd.f32 %v2198_v47, %v2168_v49  ;;  %v1954_v37 = vadd.f32 %v1953_v42, %v1864_v27  ;;  %v1512_v23 = vpop.f32.mrf.mxu1  ;;  %v2045_v33 = vpop.f32.mrf.mxu0 }
 0x269   : > { %v1513_v7 = vadd.f32 %v1512_v23, %v3741_v40 }
 0x26a   : > { %v2043_v38 = vadd.f32 %v2042_v53, %v1954_v37 }
 0x26c   : > { %v2100_v11 = vadd.f32 %v2043_v38, %v1510_v36 }
 0x26e   : > { %v2131_v16 = vadd.f32 %v2130_v63, %v2100_v11  ;;  %v2169_v58 = vmul.f32 %v2100_v11, %v2100_v11  ;;  %v2972_v25 = vpack.c.bf16 %v2100_v11, %v2099_v24 }
 0x26f   : > { %v1867_v62 = vpop.f32.mrf.mxu2  ;;  %v1956_v2 = vpop.f32.mrf.mxu3 }
 0x270   : > { %v2200_v14 = vadd.f32 %v2199_v52, %v2169_v58  ;;  %3020 = vst [vmem:[%s3828_s20 + $0x38] sm:$0xff] %v2972_v25   ;;  %v1957_v43 = vadd.f32 %v1956_v2, %v1867_v62  ;;  %v1514_v60 = vpop.f32.mrf.mxu1  ;;  %v2047_v28 = vpop.f32.mrf.mxu0 }
 0x271   : > { %v1515_v13 = vadd.f32 %v1514_v60, %v3746_v30 }
 0x272   : > { %v2046_v22 = vadd.f32 %v2045_v33, %v1957_v43 }
 0x274   : > { %v2101_v55 = vadd.f32 %v2046_v22, %v1513_v7 }
 0x276   : > { %v2132_v19 = vadd.f32 %v2131_v16, %v2101_v55  ;;  %v2170_v51 = vmul.f32 %v2101_v55, %v2101_v55 }
 0x277   : > { %v1869_v6 = vpop.f32.mrf.mxu2  ;;  %v1958_v46 = vpop.f32.mrf.mxu3 }
 0x278   : > { %v2201_v31 = vadd.f32 %v2200_v14, %v2170_v51  ;;  %v1959_v61 = vadd.f32 %v1958_v46, %v1869_v6  ;;  %v1517_v57 = vpop.f32.mrf.mxu1  ;;  %v2050_v20 = vpop.f32.mrf.mxu0 }
 0x279   : > { %v1518_v5 = vadd.f32 %v1517_v57, %v3751_v56 }
 0x27a   : > { %v2048_v15 = vadd.f32 %v2047_v28, %v1959_v61 }
 0x27c   : > { %v2102_v41 = vadd.f32 %v2048_v15, %v1515_v13 }
 0x27e   : > { %v2133_v21 = vadd.f32 %v2132_v19, %v2102_v41  ;;  %v2171_v10 = vmul.f32 %v2102_v41, %v2102_v41  ;;  %v2977_v4 = vpack.c.bf16 %v2102_v41, %v2101_v55 }
 0x27f   : > { %v1872_v12 = vpop.f32.mrf.mxu2  ;;  %v1961_v40 = vpop.f32.mrf.mxu3 }
 0x280   : > { %v2202_v26 = vadd.f32 %v2201_v31, %v2171_v10  ;;  %3021 = vst [vmem:[%s3828_s20 + $0x40] sm:$0xff] %v2977_v4   ;;  %v1962_v9 = vadd.f32 %v1961_v40, %v1872_v12  ;;  %v1519_v39 = vpop.f32.mrf.mxu1  ;;  %v2052_v47 = vpop.f32.mrf.mxu0 }
 0x281   : > { %v1520_v52 = vadd.f32 %v1519_v39, %v3755_v17 }
 0x282   : > { %v2051_v45 = vadd.f32 %v2050_v20, %v1962_v9 }
 0x284   : > { %v2103_v53 = vadd.f32 %v2051_v45, %v1518_v5 }
 0x286   : > { %v2134_v35 = vadd.f32 %v2133_v21, %v2103_v53  ;;  %v2172_v34 = vmul.f32 %v2103_v53, %v2103_v53 }
 0x287   : > { %v1874_v30 = vpop.f32.mrf.mxu2  ;;  %v1963_v24 = vpop.f32.mrf.mxu3 }
 0x288   : > { %v2203_v63 = vadd.f32 %v2202_v26, %v2172_v34  ;;  %v1964_v49 = vadd.f32 %v1963_v24, %v1874_v30  ;;  %v1522_v27 = vpop.f32.mrf.mxu1  ;;  %v2055_v42 = vpop.f32.mrf.mxu0 }
 0x289   : > { %v1523_v2 = vadd.f32 %v1522_v27, %v3760_v32 }
 0x28a   : > { %v2053_v37 = vadd.f32 %v2052_v47, %v1964_v49 }
 0x28c   : > { %v2104_v23 = vadd.f32 %v2053_v37, %v1520_v52 }
 0x28e   : > { %v2135_v33 = vadd.f32 %v2134_v35, %v2104_v23  ;;  %v2173_v36 = vmul.f32 %v2104_v23, %v2104_v23  ;;  %v2982_v38 = vpack.c.bf16 %v2104_v23, %v2103_v53 }
 0x28f   : > { %v1877_v11 = vpop.f32.mrf.mxu2  ;;  %v1966_v56 = vpop.f32.mrf.mxu3 }
 0x290   : > { %v2204_v16 = vadd.f32 %v2203_v63, %v2173_v36  ;;  %3022 = vst [vmem:[%s3828_s20 + $0x48] sm:$0xff] %v2982_v38   ;;  %v1967_v58 = vadd.f32 %v1966_v56, %v1877_v11  ;;  %v1524_v25 = vpop.f32.mrf.mxu1  ;;  %v2057_v62 = vpop.f32.mrf.mxu0 }
 0x291   : > { %v1525_v6 = vadd.f32 %v1524_v25, %v3764_v0 }
 0x292   : > { %v2056_v14 = vadd.f32 %v2055_v42, %v1967_v58 }
 0x294   : > { %v2105_v43 = vadd.f32 %v2056_v14, %v1523_v2 }
 0x296   : > { %v2136_v60 = vadd.f32 %v2135_v33, %v2105_v43  ;;  %v2174_v28 = vmul.f32 %v2105_v43, %v2105_v43 }
 0x297   : > { %v1879_v17 = vpop.f32.mrf.mxu2  ;;  %v1968_v7 = vpop.f32.mrf.mxu3 }
 0x298   : > { %v2205_v22 = vadd.f32 %v2204_v16, %v2174_v28  ;;  %v1969_v55 = vadd.f32 %v1968_v7, %v1879_v17  ;;  %v1527_v19 = vpop.f32.mrf.mxu1  ;;  %v2060_v51 = vpop.f32.mrf.mxu0 }
 0x299   : > { %v1528_v4 = vadd.f32 %v1527_v19, %v3769_v3 }
 0x29a   : > { %v2058_v46 = vadd.f32 %v2057_v62, %v1969_v55 }
 0x29c   : > { %v2106_v31 = vadd.f32 %v2058_v46, %v1525_v6 }
 0x29e   : > { %v2137_v61 = vadd.f32 %v2136_v60, %v2106_v31  ;;  %v2175_v57 = vmul.f32 %v2106_v31, %v2106_v31  ;;  %v2987_v20 = vpack.c.bf16 %v2106_v31, %v2105_v43 }
 0x29f   : > { %v1882_v13 = vpop.f32.mrf.mxu2  ;;  %v1971_v32 = vpop.f32.mrf.mxu3 }
 0x2a0   : > { %v2206_v15 = vadd.f32 %v2205_v22, %v2175_v57  ;;  %3023 = vst [vmem:[%s3828_s20 + $0x50] sm:$0xff] %v2987_v20   ;;  %v1972_v41 = vadd.f32 %v1971_v32, %v1882_v13  ;;  %v1529_v21 = vpop.f32.mrf.mxu1  ;;  %v2062_v10 = vpop.f32.mrf.mxu0 }
 0x2a1   : > { %v1530_v35 = vadd.f32 %v1529_v21, %v3773_v18 }
 0x2a2   : > { %v2061_v12 = vadd.f32 %v2060_v51, %v1972_v41 }
 0x2a4   : > { %v2107_v40 = vadd.f32 %v2061_v12, %v1528_v4 }
 0x2a6   : > { %v2138_v26 = vadd.f32 %v2137_v61, %v2107_v40  ;;  %v2176_v9 = vmul.f32 %v2107_v40, %v2107_v40 }
 0x2a7   : > { %v1884_v0 = vpop.f32.mrf.mxu2  ;;  %v1973_v39 = vpop.f32.mrf.mxu3 }
 0x2a8   : > { %v2207_v47 = vadd.f32 %v2206_v15, %v2176_v9  ;;  %v1974_v5 = vadd.f32 %v1973_v39, %v1884_v0  ;;  %v1532_v45 = vpop.f32.mrf.mxu1  ;;  %v2065_v53 = vpop.f32.mrf.mxu0 }
 0x2a9   : > { %v1533_v33 = vadd.f32 %v1532_v45, %v3778_v50 }
 0x2aa   : > { %v2063_v34 = vadd.f32 %v2062_v10, %v1974_v5 }
 0x2ac   : > { %v2108_v30 = vadd.f32 %v2063_v34, %v1530_v35 }
 0x2ae   : > { %v2139_v24 = vadd.f32 %v2138_v26, %v2108_v30  ;;  %v2177_v63 = vmul.f32 %v2108_v30, %v2108_v30  ;;  %v2992_v49 = vpack.c.bf16 %v2108_v30, %v2107_v40 }
 0x2af   : > { %v1887_v27 = vpop.f32.mrf.mxu2  ;;  %v1976_v3 = vpop.f32.mrf.mxu3 }
 0x2b0   : > { %v2208_v42 = vadd.f32 %v2207_v47, %v2177_v63  ;;  %3024 = vst [vmem:[%s3828_s20 + $0x58] sm:$0xff] %v2992_v49   ;;  %v1977_v52 = vadd.f32 %v1976_v3, %v1887_v27  ;;  %v1534_v37 = vpop.f32.mrf.mxu1  ;;  %v2067_v23 = vpop.f32.mrf.mxu0 }
 0x2b1   : > { %v1535_v14 = vadd.f32 %v1534_v37, %v3783_v54 }
 0x2b2   : > { %v2066_v36 = vadd.f32 %v2065_v53, %v1977_v52 }
 0x2b4   : > { %v2109_v38 = vadd.f32 %v2066_v36, %v1533_v33 }
 0x2b6   : > { %v2140_v11 = vadd.f32 %v2139_v24, %v2109_v38  ;;  %v2178_v56 = vmul.f32 %v2109_v38, %v2109_v38 }
 0x2b7   : > { %v1889_v18 = vpop.f32.mrf.mxu2  ;;  %v1978_v16 = vpop.f32.mrf.mxu3 }
 0x2b8   : > { %v2209_v58 = vadd.f32 %v2208_v42, %v2178_v56  ;;  %v1979_v25 = vadd.f32 %v1978_v16, %v1889_v18  ;;  %v1537_v62 = vpop.f32.mrf.mxu1  ;;  %v2070_v2 = vpop.f32.mrf.mxu0 }
 0x2b9   : > { %v1538_v46 = vadd.f32 %v1537_v62, %v3788_v59 }
 0x2ba   : > { %v2068_v43 = vadd.f32 %v2067_v23, %v1979_v25 }
 0x2bc   : > { %v2110_v60 = vadd.f32 %v2068_v43, %v1535_v14 }
 0x2be   : > { %v2141_v28 = vadd.f32 %v2140_v11, %v2110_v60  ;;  %v2179_v17 = vmul.f32 %v2110_v60, %v2110_v60  ;;  %v2997_v7 = vpack.c.bf16 %v2110_v60, %v2109_v38 }
 0x2bf   : > { %v1892_v22 = vpop.f32.mrf.mxu2  ;;  %v1981_v50 = vpop.f32.mrf.mxu3 }
 0x2c0   : > { %v2210_v55 = vadd.f32 %v2209_v58, %v2179_v17  ;;  %3025 = vst [vmem:[%s3828_s20 + $0x60] sm:$0xff] %v2997_v7   ;;  %v1982_v19 = vadd.f32 %v1981_v50, %v1892_v22  ;;  %v1539_v51 = vpop.f32.mrf.mxu1  ;;  %v2072_v6 = vpop.f32.mrf.mxu0 }
 0x2c1   : > { %v1540_v21 = vadd.f32 %v1539_v51, %v3792_v48 }
 0x2c2   : > { %v2071_v31 = vadd.f32 %v2070_v2, %v1982_v19 }
 0x2c4   : > { %v2111_v61 = vadd.f32 %v2071_v31, %v1538_v46 }
 0x2c6   : > { %v2142_v57 = vadd.f32 %v2141_v28, %v2111_v61  ;;  %v2180_v20 = vmul.f32 %v2111_v61, %v2111_v61 }
 0x2c7   : > { %v1894_v54 = vpop.f32.mrf.mxu2  ;;  %v1983_v13 = vpop.f32.mrf.mxu3 }
 0x2c8   : > { %v2211_v32 = vadd.f32 %v2210_v55, %v2180_v20  ;;  %v1984_v15 = vadd.f32 %v1983_v13, %v1894_v54  ;;  %v1542_v41 = vpop.f32.mrf.mxu1  ;;  %v2075_v4 = vpop.f32.mrf.mxu0 }
 0x2c9   : > { %v1543_v5 = vadd.f32 %v1542_v41, %v3797_v29 }
 0x2ca   : > { %v2073_v10 = vadd.f32 %v2072_v6, %v1984_v15 }
 0x2cc   : > { %v2112_v12 = vadd.f32 %v2073_v10, %v1540_v21 }
 0x2ce   : > { %v2143_v40 = vadd.f32 %v2142_v57, %v2112_v12  ;;  %v2181_v26 = vmul.f32 %v2112_v12, %v2112_v12  ;;  %v3002_v9 = vpack.c.bf16 %v2112_v12, %v2111_v61 }
 0x2cf   : > { %v1897_v0 = vpop.f32.mrf.mxu2  ;;  %v1986_v59 = vpop.f32.mrf.mxu3 }
 0x2d0   : > { %v2212_v39 = vadd.f32 %v2211_v32, %v2181_v26  ;;  %3026 = vst [vmem:[%s3828_s20 + $0x68] sm:$0xff] %v3002_v9   ;;  %v1987_v47 = vadd.f32 %v1986_v59, %v1897_v0  ;;  %v1544_v53 = vpop.f32.mrf.mxu1  ;;  %v2077_v34 = vpop.f32.mrf.mxu0 }
 0x2d1   : > { %v1545_v3 = vadd.f32 %v1544_v53, %v3801_v44 }
 0x2d2   : > { %v2076_v45 = vadd.f32 %v2075_v4, %v1987_v47 }
 0x2d4   : > { %v2113_v35 = vadd.f32 %v2076_v45, %v1543_v5 }
 0x2d6   : > { %v2144_v30 = vadd.f32 %v2143_v40, %v2113_v35  ;;  %v2182_v24 = vmul.f32 %v2113_v35, %v2113_v35 }
 0x2d7   : > { %v1899_v48 = vpop.f32.mrf.mxu2  ;;  %v1988_v63 = vpop.f32.mrf.mxu3 }
 0x2d8   : > { %v2213_v49 = vadd.f32 %v2212_v39, %v2182_v24  ;;  %v1989_v27 = vadd.f32 %v1988_v63, %v1899_v48  ;;  %v1547_v37 = vpop.f32.mrf.mxu1  ;;  %v2080_v29 = vpop.f32.mrf.mxu0 }
 0x2d9   : > { %v1548_v16 = vadd.f32 %v1547_v37, %v3806_v8 }
 0x2da   : > { %v2078_v42 = vadd.f32 %v2077_v34, %v1989_v27 }
 0x2dc   : > { %v2114_v52 = vadd.f32 %v2078_v42, %v1545_v3 }
 0x2de   : > { %v2145_v23 = vadd.f32 %v2144_v30, %v2114_v52  ;;  %v2183_v33 = vmul.f32 %v2114_v52, %v2114_v52  ;;  %v3007_v36 = vpack.c.bf16 %v2114_v52, %v2113_v35 }
 0x2df   : > { %v1902_v38 = vpop.f32.mrf.mxu2  ;;  %v1991_v11 = vpop.f32.mrf.mxu3 }
 0x2e0   : > { %v2214_v56 = vadd.f32 %v2213_v49, %v2183_v33  ;;  %3027 = vst [vmem:[%s3828_s20 + $0x70] sm:$0xff] %v3007_v36   ;;  %v1992_v18 = vadd.f32 %v1991_v11, %v1902_v38  ;;  %v1549_v44 = vpop.f32.mrf.mxu1  ;;  %v2082_v17 = vpop.f32.mrf.mxu0 }
 0x2e1   : > { %v1550_v7 = vadd.f32 %v1549_v44, %v3813_v1 }
 0x2e2   : > { %v2081_v58 = vadd.f32 %v2080_v29, %v1992_v18 }
 0x2e4   : > { %v2115_v25 = vadd.f32 %v2081_v58, %v1548_v16 }
 0x2e6   : > { %v2146_v62 = vadd.f32 %v2145_v23, %v2115_v25  ;;  %v2184_v2 = vmul.f32 %v2115_v25, %v2115_v25 }
 0x2e7   : > { %v1904_v14 = vpop.f32.mrf.mxu2  ;;  %v1993_v43 = vpop.f32.mrf.mxu3 }
 0x2e8   : > { %v2215_v60 = vadd.f32 %v2214_v56, %v2184_v2  ;;  %v1994_v28 = vadd.f32 %v1993_v43, %v1904_v14 }
 0x2ea   : > { %v2083_v22 = vadd.f32 %v2082_v17, %v1994_v28 }
 0x2ec   : > { %v2116_v50 = vadd.f32 %v2083_v22, %v1550_v7 }
 0x2ee   : > { %v2147_v55 = vadd.f32 %v2146_v62, %v2116_v50  ;;  %v2185_v19 = vmul.f32 %v2116_v50, %v2116_v50  ;;  %v3012_v51 = vpack.c.bf16 %v2116_v50, %v2115_v25 }
 0x2f0   : > { %v2148_v8 = vrot.slane %v2147_v55, 4  ;;  %v2216_v6 = vadd.f32 %v2215_v60, %v2185_v19  ;;  %3028 = vst [vmem:[%s3828_s20 + $0x78] sm:$0xff] %v3012_v51  }
 0x2f2   : > { %v2149_v46 = vadd.f32 %v2148_v8, %v2147_v55  ;;  %v2217_v31 = vrot.slane %v2216_v6, 4 }
 0x2f4   : > { %v2150_v61 = vrot.slane %v2149_v46, 2  ;;  %v2218_v57 = vadd.f32 %v2217_v31, %v2216_v6 }
 0x2f6   : > { %v2151_v20 = vadd.f32 %v2150_v61, %v2149_v46  ;;  %v2219_v54 = vrot.slane %v2218_v57, 2 }
 0x2f8   : > { %v2152_v13 = vrot.slane %v2151_v20, 1  ;;  %v2220_v32 = vadd.f32 %v2219_v54, %v2218_v57 }
 0x2fa   : > { %v2221_v15 = vrot.slane %v2220_v32, 1  ;;  %v2153_v1 = vadd.f32 %v2152_v13, %v2151_v20 }
 0x2fc   : > { %v2222_v41 = vadd.f32 %v2221_v15, %v2220_v32 }
 0x2fe   : > { %v2224_v21 = vsel %vm2223_vm2, %v2153_v1, %v2222_v41 }
 0x2ff   : > { %2225 = vst [vmem:[%s181_s24] sm:$0x3] %v2224_v21 }
 0x300 PF: > { %s14_s12 = sadd.s32 1, %s3081_s12  }
 0x301   : > { %p11_p4 = scmp.ge.s32.totalorder %s14_s12, 4  }
 0x303   :  { %13 = sbr.rel (!%p11_p4) target bundleno = 1 (0x1), region = 72 }

// kernel: basic_block_nchw.4
= control target key start
LH: loop header
LB: loop body
LE: loop exit
PB: predicated region body
PF: predicated region fallthrough
CT: control target
= control target key end

     0   :  { %s3422_s18 = smov 0   ;;  %s4469_s0 = inlined_call_operand.vmem [shape: bf16[2,16,16,128], index: 0, kind: input, shape index: {}]   ;;  %s4470_s1 = inlined_call_operand.vmem [shape: f32[1,128], index: 1, kind: input, shape index: {}]   ;;  %s4471_s2 = inlined_call_operand.vmem [shape: f32[1,128], index: 2, kind: input, shape index: {}]   ;;  %s4472_s3 = inlined_call_operand.vmem [shape: bf16[3,384,128], index: 3, kind: input, shape index: {}]   ;;  %s4473_s4 = inlined_call_operand.vmem [shape: bf16[2,16,16,128], index: 4, kind: output, shape index: {0}]   ;;  %s4474_s5 = inlined_call_operand.vmem [shape: f32[2,2,128], index: 5, kind: output, shape index: {1}]  }
   0x1 LB: > { %s2702_s19 = sadd.s32 4294967295, %s3389_s18   ;;  %p2706_p0 = scmp.ge.s32.totalorder %s3389_s18, 1  ;;  %s3389_s18 = sphi %s3422_s18, %s16_s18  }
   0x2   : > { %p190_p1 = scmp.lt.s32.totalorder %s3389_s18, 3 }
   0x4   : > { %p191_p2 = pnand %p2706_p0, %p190_p1 }
   0x6   : > { %194 = sbr.rel (%p191_p2) target bundleno = 805 (0x325), region = 36 }
   0xb   : > { %v3131_v0 = vld [vmem:[%s4472_s3 + $0xf8] sm:$0xff]  ;;  %vm670_vm0 = vcmask 1040384   ;;  %p222_p3 = scmp.lt.s32.totalorder %s2702_s19, 1  ;;  %v3391_v1 = vmov 0   ;;  %vm671_vm1 = vsmask.f32 256 }
   0xc   : > { %v520_v2 = vrot.slane %v3391_v1, 7  ;;  %1170 = vmatpush.bf16.msra.mxu0 %v3131_v0  ;;  %3346 = vmatpush.bf16.msra.mxu1 %v3131_v0  ;;  %v3130_v3 = vld [vmem:[%s4472_s3 + $0xf0] sm:$0xff]  ;;  %vm3437_vm2 = vmand %vm670_vm0, %vm671_vm1  ;;  %v3129_v10 = vld [vmem:[%s4472_s3 + $0xe8] sm:$0xff]  ;;  %vm755_vm3 = vsmask.f32 7424  ;;  %vm1882_vm4 = vcmask 1046528  }
   0xd   : > { %s4559_s19 = smov (!%p222_p3, %s2702_s19), 1  ;;  %3347 = vmatpush.bf16.msra.mxu2 %v3131_v0  ;;  %3348 = vmatpush.bf16.msra.mxu3 %v3131_v0  ;;  %v3468_v11 = vld [vmem:[%s4470_s1] ss:$0 sm:$0xff]  ;;  %v3127_v48 = vld [vmem:[%s4472_s3 + $0xd8] sm:$0xff] }
   0xe   : > { %v3445_v5 = vsel %vm3437_vm2, 0, %v520_v2  ;;  %v3449_v6 = vsel %vm3437_vm2, %v520_v2, 0  ;;  %s3098_s24 = sshll.u32 %s4559_s19, 7  ;;  %v3476_v19 = vld [vmem:[%s4471_s2] ss:$0 sm:$0xff]  ;;  %v3126_v2 = vld [vmem:[%s4472_s3 + $0xd0] sm:$0xff] }
   0xf   : > { %v757_v7 = vshrl.u32 %v3445_v5, 16  ;;  %v759_v8 = vshll.u32 %v3445_v5, 16  ;;  %v764_v9 = vshll.u32 %v3449_v6, 16  ;;  %s3463_s29 = scalar_lea.vmem %s4469_s0, %s3098_s24  ;;  %v3128_v30 = vld [vmem:[%s4472_s3 + $0xe0] sm:$0xff]  ;;  %s4370_s30 = scalar_lea.vmem %s4473_s4, %s3098_s24 }
  0x10   : > { %1171 = vmatpush.bf16.msra.mxu0 %v3130_v3  ;;  %3349 = vmatpush.bf16.msra.mxu1 %v3130_v3  ;;  %v3318_v14 = vld [vmem:[%s3463_s29 + $0x18] sm:$0xff]   ;;  %v3173_v25 = vld [vmem:[%s3463_s29] sm:$0xff]   ;;  %s2711_s24 = sshll.u32 %s4559_s19, 1 }
  0x11   : > { %v761_v12 = vrot.slane %v759_v8, 1  ;;  %v766_v13 = vrot.slane %v764_v9, 1  ;;  %v3322_v15 = vld [vmem:[%s3463_s29 + $0x38] sm:$0xff]   ;;  %3350 = vmatpush.bf16.msra.mxu2 %v3130_v3  ;;  %3351 = vmatpush.bf16.msra.mxu3 %v3130_v3  ;;  %v3186_v17 = vunpack.c.l.bf16 %v3318_v14  ;;  %v3187_v18 = vunpack.c.h.bf16 %v3318_v14  ;;  %v3319_v43 = vld [vmem:[%s3463_s29 + $0x20] sm:$0xff]   ;;  %s235_s8 = scalar_lea.vmem %s4474_s5, %s2711_s24 }
  0x12   : > { %v3326_v16 = vld [vmem:[%s3463_s29 + $0x58] sm:$0xff]   ;;  %v3202_v20 = vunpack.c.l.bf16 %v3322_v15  ;;  %v3203_v21 = vunpack.c.h.bf16 %v3322_v15  ;;  %v3174_v34 = vunpack.c.l.bf16 %v3173_v25  ;;  %v3175_v38 = vunpack.c.h.bf16 %v3173_v25  ;;  %v3506_v1 = vld [vmem:[%s3463_s29 + $0x40] sm:$0xff]  }
  0x13   : > { %v762_v22 = vor.u32 %v761_v12, %v757_v7  ;;  %v3218_v23 = vunpack.c.l.bf16 %v3326_v16  ;;  %v3219_v24 = vunpack.c.h.bf16 %v3326_v16  ;;  %v312_v26 = vmul.f32 %v3468_v11, %v3186_v17 }
  0x14   : > { %v313_v27 = vmul.f32 %v3468_v11, %v3187_v18  ;;  %v320_v28 = vmul.f32 %v3468_v11, %v3202_v20  ;;  %v321_v29 = vmul.f32 %v3468_v11, %v3203_v21  ;;  %1172 = vmatpush.bf16.msra.mxu0 %v3129_v10  ;;  %3352 = vmatpush.bf16.msra.mxu1 %v3129_v10  ;;  %v3190_v56 = vunpack.c.l.bf16 %v3319_v43 }
  0x15   : > { %v3487_v31 = vsel %vm755_vm3, %v762_v22, %v766_v13  ;;  %v328_v32 = vmul.f32 %v3468_v11, %v3218_v23  ;;  %v329_v33 = vmul.f32 %v3468_v11, %v3219_v24  ;;  %3353 = vmatpush.bf16.msra.mxu2 %v3129_v10  ;;  %3354 = vmatpush.bf16.msra.mxu3 %v3129_v10  ;;  %v3191_v13 = vunpack.c.h.bf16 %v3319_v43  ;;  %v3125_v24 = vld [vmem:[%s4472_s3 + $0xc8] sm:$0xff] }
  0x16   : > { %v347_v35 = vadd.f32 %v3476_v19, %v312_v26  ;;  %v348_v36 = vadd.f32 %v3476_v19, %v313_v27  ;;  %v355_v37 = vadd.f32 %v3476_v19, %v320_v28  ;;  %v356_v39 = vadd.f32 %v3476_v19, %v321_v29 }
  0x17   : > { %v363_v40 = vadd.f32 %v3476_v19, %v328_v32  ;;  %v364_v41 = vadd.f32 %v3476_v19, %v329_v33  ;;  %v306_v42 = vmul.f32 %v3468_v11, %v3174_v34  ;;  %v307_v47 = vmul.f32 %v3468_v11, %v3175_v38 }
  0x18   : > { %v379_v44 = vmax.f32 %v347_v35, 0.0  ;;  %v380_v45 = vmax.f32 %v348_v36, 0.0  ;;  %v387_v46 = vmax.f32 %v355_v37, 0.0  ;;  %1173 = vmatpush.bf16.msra.mxu0 %v3128_v30  ;;  %3355 = vmatpush.bf16.msra.mxu1 %v3128_v30  ;;  %v388_v49 = vmax.f32 %v356_v39, 0.0 }
  0x19   : > { %v395_v50 = vmax.f32 %v363_v40, 0.0  ;;  %v396_v51 = vmax.f32 %v364_v41, 0.0  ;;  %v341_v52 = vadd.f32 %v3476_v19, %v306_v42  ;;  %3356 = vmatpush.bf16.msra.mxu2 %v3128_v30  ;;  %3357 = vmatpush.bf16.msra.mxu3 %v3128_v30  ;;  %v342_v60 = vadd.f32 %v3476_v19, %v307_v47  ;;  %v3124_v42 = vld [vmem:[%s4472_s3 + $0xc0] sm:$0xff] }
  0x1a   : > { %v411_v53 = vpack.c.bf16 %v379_v44, %v379_v44  ;;  %v412_v54 = vpack.c.bf16 %v380_v45, %v380_v45  ;;  %v419_v55 = vpack.c.bf16 %v387_v46, %v387_v46  ;;  %v420_v57 = vpack.c.bf16 %v388_v49, %v388_v49 }
  0x1b   : > { %v427_v58 = vpack.c.bf16 %v395_v50, %v395_v50  ;;  %v428_v59 = vpack.c.bf16 %v396_v51, %v396_v51  ;;  %v373_v0 = vmax.f32 %v341_v52, 0.0  ;;  %v374_v9 = vmax.f32 %v342_v60, 0.0 }
  0x1c   : > { %v475_v61 = vunpack.c.l.b16 %v411_v53  ;;  %v476_v62 = vunpack.c.l.b16 %v412_v54  ;;  %v483_v63 = vunpack.c.l.b16 %v419_v55  ;;  %1174 = vmatpush.bf16.msra.mxu0 %v3127_v48  ;;  %3358 = vmatpush.bf16.msra.mxu1 %v3127_v48  ;;  %v484_v3 = vunpack.c.l.b16 %v420_v57  ;;  %v3147_v55 = vld [vmem:[%s4472_s3 + $0x178] sm:$0xff] }
  0x1d   : > { %v491_v7 = vunpack.c.l.b16 %v427_v58  ;;  %v492_v8 = vunpack.c.l.b16 %v428_v59  ;;  %3359 = vmatpush.bf16.msra.mxu2 %v3127_v48  ;;  %3360 = vmatpush.bf16.msra.mxu3 %v3127_v48  ;;  %v405_v12 = vpack.c.bf16 %v373_v0, %v373_v0  ;;  %v314_v14 = vmul.f32 %v3468_v11, %v3190_v56  ;;  %v3107_v56 = vld [vmem:[%s4472_s3 + $0x38] sm:$0xff] }
  0x1e   : > { %v504_v10 = vpack.c.b16 %v476_v62, %v475_v61  ;;  %v508_v15 = vpack.c.b16 %v484_v3, %v483_v63  ;;  %v406_v17 = vpack.c.bf16 %v374_v9, %v374_v9  ;;  %v3206_v18 = vunpack.c.l.bf16 %v3506_v1  ;;  %v3139_v61 = vld [vmem:[%s4472_s3 + $0x138] sm:$0xff] }
  0x1f   : > { %v512_v16 = vpack.c.b16 %v492_v8, %v491_v7  ;;  %v469_v22 = vunpack.c.l.b16 %v405_v12  ;;  %v315_v23 = vmul.f32 %v3468_v11, %v3191_v13  ;;  %v349_v32 = vadd.f32 %v3476_v19, %v314_v14  ;;  %v3115_v3 = vld [vmem:[%s4472_s3 + $0x78] sm:$0xff] }
  0x20   : > { %v546_v20 = vshrl.u32 %v504_v10, 16  ;;  %v549_v21 = vshll.u32 %v504_v10, 16  ;;  %1175 = vmatpush.bf16.msra.mxu0 %v3126_v2  ;;  %3361 = vmatpush.bf16.msra.mxu1 %v3126_v2  ;;  %v574_v25 = vshrl.u32 %v508_v15, 16  ;;  %v577_v26 = vshll.u32 %v508_v15, 16  ;;  %v3106_v15 = vld [vmem:[%s4472_s3 + $0x30] sm:$0xff] }
  0x21   : > { %v602_v27 = vshrl.u32 %v512_v16, 16  ;;  %v605_v28 = vshll.u32 %v512_v16, 16  ;;  %3362 = vmatpush.bf16.msra.mxu2 %v3126_v2  ;;  %3363 = vmatpush.bf16.msra.mxu3 %v3126_v2  ;;  %v470_v30 = vunpack.c.l.b16 %v406_v17  ;;  %v350_v33 = vadd.f32 %v3476_v19, %v315_v23 }
  0x22   : > { %v548_v29 = vrot.slane %v546_v20, 7  ;;  %v576_v34 = vrot.slane %v574_v25, 7  ;;  %v3207_v36 = vunpack.c.h.bf16 %v3506_v1  ;;  %v3521_v37 = vmul.f32 %v3468_v11, %v3206_v18  ;;  %v3146_v18 = vld [vmem:[%s4472_s3 + $0x170] sm:$0xff]  ;;  %v3113_v1 = vld [vmem:[%s4472_s3 + $0x68] sm:$0xff] }
  0x23   : > { %v604_v35 = vrot.slane %v602_v27, 7  ;;  %v501_v40 = vpack.c.b16 %v470_v30, %v469_v22  ;;  %v381_v41 = vmax.f32 %v349_v32, 0.0  ;;  %v382_v10 = vmax.f32 %v350_v33, 0.0  ;;  %v3138_v32 = vld [vmem:[%s4472_s3 + $0x130] sm:$0xff]  ;;  %v3316_v33 = vld [vmem:[%s3463_s29 + $0x8] sm:$0xff]  }
  0x24   : > { %v551_v38 = vor.u32 %v549_v21, %v548_v29  ;;  %v3525_v39 = vsel %vm3437_vm2, %v548_v29, 0  ;;  %1176 = vmatpush.bf16.msra.mxu0 %v3125_v24  ;;  %3364 = vmatpush.bf16.msra.mxu1 %v3125_v24  ;;  %v579_v44 = vor.u32 %v577_v26, %v576_v34  ;;  %v3533_v45 = vsel %vm3437_vm2, %v576_v34, 0  ;;  %v3327_v26 = vld [vmem:[%s3463_s29 + $0x60] sm:$0xff]  }
  0x25   : > { %v812_v43 = vshll.u32 %v3525_v39, 16  ;;  %4494 = vst [vmem:[#allocation2_spill] sm:$0xff] %v3533_v45  ;;  %v607_v46 = vor.u32 %v605_v28, %v604_v35  ;;  %3365 = vmatpush.bf16.msra.mxu2 %v3125_v24  ;;  %3366 = vmatpush.bf16.msra.mxu3 %v3125_v24  ;;  %v860_v48 = vshll.u32 %v3533_v45, 16  ;;  %v3542_v49 = vsel %vm3437_vm2, %v604_v35, 0 }
  0x26   : > { %v3537_v47 = vsel %vm3437_vm2, 0, %v551_v38  ;;  %4495 = vst [vmem:[#allocation3_spill] sm:$0xff] %v3542_v49  ;;  %v525_v50 = vshrl.u32 %v501_v40, 16  ;;  %v3548_v54 = vsel %vm3437_vm2, 0, %v579_v44  ;;  %v908_v2 = vshll.u32 %v3542_v49, 16  ;;  %v3151_v49 = vld [vmem:[%s4472_s3 + $0x198] sm:$0xff] }
  0x27   : > { %v805_v51 = vshrl.u32 %v3537_v47, 16  ;;  %v807_v52 = vshll.u32 %v3537_v47, 16  ;;  %v814_v53 = vrot.slane %v812_v43, 1  ;;  %4496 = vst [vmem:[#allocation4_spill] sm:$0xff] %v3548_v54  ;;  %v853_v57 = vshrl.u32 %v3548_v54, 16 }
  0x28   : > { %v855_v58 = vshll.u32 %v3548_v54, 16  ;;  %v862_v59 = vrot.slane %v860_v48, 1  ;;  %v3560_v60 = vsel %vm3437_vm2, 0, %v607_v46  ;;  %1177 = vmatpush.bf16.msra.mxu0 %v3124_v42  ;;  %3367 = vmatpush.bf16.msra.mxu1 %v3124_v42  ;;  %v527_v8 = vrot.slane %v525_v50, 7  ;;  %v3145_v50 = vld [vmem:[%s4472_s3 + $0x168] sm:$0xff] }
  0x29   : > { %v809_v62 = vrot.slane %v807_v52, 1  ;;  %v901_v63 = vshrl.u32 %v3560_v60, 16  ;;  %v903_v0 = vshll.u32 %v3560_v60, 16  ;;  %3368 = vmatpush.bf16.msra.mxu2 %v3124_v42  ;;  %3369 = vmatpush.bf16.msra.mxu3 %v3124_v42  ;;  %v528_v9 = vshll.u32 %v501_v40, 16  ;;  %v3114_v42 = vld [vmem:[%s4472_s3 + $0x70] sm:$0xff] }
  0x2a   : > { %v857_v7 = vrot.slane %v855_v58, 1  ;;  %v910_v14 = vrot.slane %v908_v2, 1  ;;  %v413_v16 = vpack.c.bf16 %v381_v41, %v381_v41  ;;  %v3580_v21 = vsel %vm3437_vm2, %v527_v8, 0  ;;  %v3105_v41 = vld [vmem:[%s4472_s3 + $0x28] sm:$0xff] }
  0x2b   : > { %v810_v12 = vor.u32 %v809_v62, %v805_v51  ;;  %v905_v13 = vrot.slane %v903_v0, 1  ;;  %1178 = vmatmul.bf16.vlgmr.msra.gmra.mxu0 %v3487_v31  ;;  %v530_v20 = vor.u32 %v528_v9, %v527_v8  ;;  %v414_v22 = vpack.c.bf16 %v382_v10, %v382_v10  ;;  %v3104_v0 = vld [vmem:[%s4472_s3 + $0x20] sm:$0xff] }
  0x2c   : > { %v858_v17 = vor.u32 %v857_v7, %v853_v57  ;;  %1259 = vmatpush.bf16.msrb.mxu1 %v3139_v61  ;;  %1670 = vmatpush.bf16.msrb.mxu0 %v3115_v3  ;;  %v776_v25 = vshll.u32 %v3580_v21, 16  ;;  %v477_v29 = vunpack.c.l.b16 %v413_v16  ;;  %v323_v44 = vmul.f32 %v3468_v11, %v3207_v36  ;;  %v3144_v9 = vld [vmem:[%s4472_s3 + $0x160] sm:$0xff] }
  0x2d   : > { %1348 = vmatpush.bf16.msrb.mxu2 %v3147_v55  ;;  %1581 = vmatpush.bf16.msrb.mxu3 %v3107_v56  ;;  %v3583_v23 = vsel %vm755_vm3, %v810_v12, %v814_v53  ;;  %v906_v24 = vor.u32 %v905_v13, %v901_v63  ;;  %v3593_v28 = vsel %vm3437_vm2, 0, %v530_v20  ;;  %v478_v30 = vunpack.c.l.b16 %v414_v22  ;;  %v3137_v53 = vld [vmem:[%s4472_s3 + $0x128] sm:$0xff] }
  0x2e   : > { %1198 = vmatmul.bf16.vlgmr.msra.gmra.mxu1 %v3583_v23  ;;  %v3589_v27 = vsel %vm755_vm3, %v858_v17, %v862_v59  ;;  %v769_v35 = vshrl.u32 %v3593_v28, 16  ;;  %v771_v38 = vshll.u32 %v3593_v28, 16  ;;  %v778_v40 = vrot.slane %v776_v25, 1  ;;  %v3320_v59 = vld [vmem:[%s3463_s29 + $0x28] sm:$0xff]  }
  0x2f   : > { %1218 = vmatmul.bf16.vlgmr.msra.gmra.mxu2 %v3589_v27  ;;  %v3601_v34 = vsel %vm755_vm3, %v906_v24, %v910_v14  ;;  %v505_v43 = vpack.c.b16 %v478_v30, %v477_v29  ;;  %v357_v46 = vadd.f32 %v3476_v19, %v3521_v37  ;;  %v3222_v48 = vunpack.c.l.bf16 %v3327_v26 }
  0x30   : > { %1238 = vmatmul.bf16.vlgmr.msra.gmra.mxu3 %v3601_v34  ;;  %v773_v51 = vrot.slane %v771_v38, 1  ;;  %v3223_v52 = vunpack.c.h.bf16 %v3327_v26  ;;  %1260 = vmatpush.bf16.msrb.mxu1 %v3138_v32  ;;  %v3178_v36 = vunpack.c.l.bf16 %v3316_v33  ;;  %v3179_v55 = vunpack.c.h.bf16 %v3316_v33 }
  0x31   : > { %1582 = vmatpush.bf16.msrb.mxu3 %v3106_v15  ;;  %1349 = vmatpush.bf16.msrb.mxu2 %v3146_v18  ;;  %v553_v37 = vshrl.u32 %v505_v43, 16  ;;  %v556_v56 = vshll.u32 %v505_v43, 16  ;;  %v358_v57 = vadd.f32 %v3476_v19, %v323_v44  ;;  %v389_v58 = vmax.f32 %v357_v46, 0.0 }
  0x32   : > { %1671 = vmatpush.bf16.msrb.mxu0 %v3114_v42  ;;  %v774_v61 = vor.u32 %v773_v51, %v769_v35  ;;  %v330_v62 = vmul.f32 %v3468_v11, %v3222_v48  ;;  %v331_v63 = vmul.f32 %v3468_v11, %v3223_v52  ;;  %v308_v2 = vmul.f32 %v3468_v11, %v3178_v36 }
  0x33   : > { %v555_v3 = vrot.slane %v553_v37, 7  ;;  %v390_v7 = vmax.f32 %v358_v57, 0.0  ;;  %v421_v8 = vpack.c.bf16 %v389_v58, %v389_v58  ;;  %v309_v10 = vmul.f32 %v3468_v11, %v3179_v55 }
  0x34   : > { %v3639_v12 = vsel %vm755_vm3, %v774_v61, %v778_v40  ;;  %v365_v13 = vadd.f32 %v3476_v19, %v330_v62  ;;  %v366_v14 = vadd.f32 %v3476_v19, %v331_v63  ;;  %1261 = vmatpush.bf16.msrb.mxu1 %v3137_v53  ;;  %v3194_v15 = vunpack.c.l.bf16 %v3320_v59  ;;  %v3324_v53 = vld [vmem:[%s3463_s29 + $0x48] sm:$0xff]  }
  0x35   : > { %1583 = vmatpush.bf16.msrb.mxu3 %v3105_v41  ;;  %1350 = vmatpush.bf16.msrb.mxu2 %v3145_v50  ;;  %v558_v16 = vor.u32 %v556_v56, %v555_v3  ;;  %v3645_v17 = vsel %vm3437_vm2, %v555_v3, 0  ;;  %v422_v18 = vpack.c.bf16 %v390_v7, %v390_v7  ;;  %v485_v20 = vunpack.c.l.b16 %v421_v8 }
  0x36   : > { %1672 = vmatpush.bf16.msrb.mxu0 %v3113_v1  ;;  %4497 = vst [vmem:[#allocation5_spill] sm:$0xff] %v3645_v17  ;;  %v824_v22 = vshll.u32 %v3645_v17, 16  ;;  %v397_v24 = vmax.f32 %v365_v13, 0.0  ;;  %v398_v25 = vmax.f32 %v366_v14, 0.0  ;;  %v343_v26 = vadd.f32 %v3476_v19, %v308_v2 }
  0x37   : > { %v3651_v29 = vsel %vm3437_vm2, 0, %v558_v16  ;;  %v486_v30 = vunpack.c.l.b16 %v422_v18  ;;  %v344_v32 = vadd.f32 %v3476_v19, %v309_v10  ;;  %v3195_v33 = vunpack.c.h.bf16 %v3320_v59 }
  0x38   : > { %v817_v35 = vshrl.u32 %v3651_v29, 16  ;;  %v819_v38 = vshll.u32 %v3651_v29, 16  ;;  %v826_v40 = vrot.slane %v824_v22, 1  ;;  %v429_v41 = vpack.c.bf16 %v397_v24, %v397_v24 }
  0x39   : > { %1584 = vmatpush.bf16.msrb.mxu3 %v3104_v0  ;;  %1351 = vmatpush.bf16.msrb.mxu2 %v3144_v9  ;;  %v509_v42 = vpack.c.b16 %v486_v30, %v485_v20  ;;  %v430_v43 = vpack.c.bf16 %v398_v25, %v398_v25  ;;  %v375_v44 = vmax.f32 %v343_v26, 0.0  ;;  %v376_v46 = vmax.f32 %v344_v32, 0.0 }
  0x3a   : > { %v821_v48 = vrot.slane %v819_v38, 1  ;;  %v493_v50 = vunpack.c.l.b16 %v429_v41  ;;  %v316_v51 = vmul.f32 %v3468_v11, %v3194_v15  ;;  %v317_v52 = vmul.f32 %v3468_v11, %v3195_v33 }
  0x3b   : > { %1183 = vmatmul.bf16.gmra.mxu0 %v3639_v12  ;;  %v581_v1 = vshrl.u32 %v509_v42, 16  ;;  %v584_v36 = vshll.u32 %v509_v42, 16  ;;  %v494_v55 = vunpack.c.l.b16 %v430_v43  ;;  %v407_v37 = vpack.c.bf16 %v375_v44, %v375_v44  ;;  %v3328_v43 = vld [vmem:[%s3463_s29 + $0x68] sm:$0xff]  }
  0x3c   : > { %v822_v56 = vor.u32 %v821_v48, %v817_v35  ;;  %v408_v57 = vpack.c.bf16 %v376_v46, %v376_v46  ;;  %v351_v58 = vadd.f32 %v3476_v19, %v316_v51  ;;  %v352_v59 = vadd.f32 %v3476_v19, %v317_v52 }
  0x3d   : > { %v583_v61 = vrot.slane %v581_v1, 7  ;;  %v513_v62 = vpack.c.b16 %v494_v55, %v493_v50  ;;  %v471_v63 = vunpack.c.l.b16 %v407_v37  ;;  %v3210_v0 = vunpack.c.l.bf16 %v3324_v53 }
  0x3e   : > { %v3663_v2 = vsel %vm755_vm3, %v822_v56, %v826_v40  ;;  %v472_v3 = vunpack.c.l.b16 %v408_v57  ;;  %v383_v7 = vmax.f32 %v351_v58, 0.0  ;;  %v384_v8 = vmax.f32 %v352_v59, 0.0 }
  0x3f   : > { %1203 = vmatmul.bf16.gmra.mxu1 %v3663_v2  ;;  %v586_v9 = vor.u32 %v584_v36, %v583_v61  ;;  %v3668_v10 = vsel %vm3437_vm2, %v583_v61, 0  ;;  %v609_v13 = vshrl.u32 %v513_v62, 16  ;;  %v612_v14 = vshll.u32 %v513_v62, 16 }
  0x40   : > { %4498 = vst [vmem:[#allocation6_spill] sm:$0xff] %v3668_v10  ;;  %v872_v15 = vshll.u32 %v3668_v10, 16  ;;  %v502_v16 = vpack.c.b16 %v472_v3, %v471_v63  ;;  %v415_v18 = vpack.c.bf16 %v383_v7, %v383_v7  ;;  %v416_v20 = vpack.c.bf16 %v384_v8, %v384_v8  ;;  %v3317_v3 = vld [vmem:[%s3463_s29 + $0x10] sm:$0xff]  }
  0x41   : > { %v3673_v22 = vsel %vm3437_vm2, 0, %v586_v9  ;;  %v611_v24 = vrot.slane %v609_v13, 7  ;;  %v3211_v25 = vunpack.c.h.bf16 %v3324_v53  ;;  %v324_v26 = vmul.f32 %v3468_v11, %v3210_v0 }
  0x42   : > { %v865_v30 = vshrl.u32 %v3673_v22, 16  ;;  %v867_v32 = vshll.u32 %v3673_v22, 16  ;;  %v874_v33 = vrot.slane %v872_v15, 1  ;;  %v532_v35 = vshrl.u32 %v502_v16, 16  ;;  %v3143_v15 = vld [vmem:[%s4472_s3 + $0x158] sm:$0xff] }
  0x43   : > { %v614_v38 = vor.u32 %v612_v14, %v611_v24  ;;  %v3680_v40 = vsel %vm3437_vm2, %v611_v24, 0  ;;  %v535_v41 = vshll.u32 %v502_v16, 16  ;;  %v479_v42 = vunpack.c.l.b16 %v415_v18  ;;  %v3136_v14 = vld [vmem:[%s4472_s3 + $0x120] sm:$0xff]  ;;  %1352 = vmatpush.bf16.msrb.mxu2 %v3143_v15 }
  0x44   : > { %4499 = vst [vmem:[#allocation7_spill] sm:$0xff] %v3680_v40  ;;  %v869_v44 = vrot.slane %v867_v32, 1  ;;  %v920_v46 = vshll.u32 %v3680_v40, 16  ;;  %v534_v48 = vrot.slane %v532_v35, 7  ;;  %v480_v50 = vunpack.c.l.b16 %v416_v20  ;;  %1262 = vmatpush.bf16.msrb.mxu1 %v3136_v14 }
  0x45   : > { %v3686_v51 = vsel %vm3437_vm2, 0, %v614_v38  ;;  %v325_v52 = vmul.f32 %v3468_v11, %v3211_v25  ;;  %v359_v53 = vadd.f32 %v3476_v19, %v324_v26  ;;  %v3226_v37 = vunpack.c.l.bf16 %v3328_v43  ;;  %v3103_v25 = vld [vmem:[%s4472_s3 + $0x18] sm:$0xff]  ;;  %v3112_v26 = vld [vmem:[%s4472_s3 + $0x60] sm:$0xff] }
  0x46   : > { %v870_v1 = vor.u32 %v869_v44, %v865_v30  ;;  %v913_v36 = vshrl.u32 %v3686_v51, 16  ;;  %v915_v55 = vshll.u32 %v3686_v51, 16  ;;  %v537_v56 = vor.u32 %v535_v41, %v534_v48  ;;  %v3135_v38 = vld [vmem:[%s4472_s3 + $0x118] sm:$0xff]  ;;  %v3142_v41 = vld [vmem:[%s4472_s3 + $0x150] sm:$0xff]  ;;  %1585 = vmatpush.bf16.msrb.mxu3 %v3103_v25  ;;  %1673 = vmatpush.bf16.msrb.mxu0 %v3112_v26 }
  0x47   : > { %v3694_v57 = vsel %vm3437_vm2, %v534_v48, 0  ;;  %v506_v58 = vpack.c.b16 %v480_v50, %v479_v42  ;;  %v360_v59 = vadd.f32 %v3476_v19, %v325_v52  ;;  %v922_v63 = vrot.slane %v920_v46, 1  ;;  %v3111_v48 = vld [vmem:[%s4472_s3 + $0x58] sm:$0xff]  ;;  %1353 = vmatpush.bf16.msrb.mxu2 %v3142_v41 }
  0x48   : > { %v3698_v61 = vsel %vm755_vm3, %v870_v1, %v874_v33  ;;  %v917_v62 = vrot.slane %v915_v55, 1  ;;  %v788_v0 = vshll.u32 %v3694_v57, 16  ;;  %v3705_v7 = vsel %vm3437_vm2, 0, %v537_v56  ;;  %1263 = vmatpush.bf16.msrb.mxu1 %v3135_v38 }
  0x49   : > { %1223 = vmatmul.bf16.gmra.mxu2 %v3698_v61  ;;  %v560_v8 = vshrl.u32 %v506_v58, 16  ;;  %v563_v9 = vshll.u32 %v506_v58, 16  ;;  %v391_v13 = vmax.f32 %v359_v53, 0.0  ;;  %v781_v18 = vshrl.u32 %v3705_v7, 16 }
  0x4a   : > { %v918_v16 = vor.u32 %v917_v62, %v913_v36  ;;  %v783_v20 = vshll.u32 %v3705_v7, 16  ;;  %v790_v24 = vrot.slane %v788_v0, 1  ;;  %v392_v32 = vmax.f32 %v360_v59, 0.0  ;;  %1674 = vmatpush.bf16.msrb.mxu0 %v3111_v48 }
  0x4b   : > { %v562_v30 = vrot.slane %v560_v8, 7  ;;  %v423_v33 = vpack.c.bf16 %v391_v13, %v391_v13  ;;  %v3227_v35 = vunpack.c.h.bf16 %v3328_v43  ;;  %v332_v46 = vmul.f32 %v3468_v11, %v3226_v37  ;;  %v3102_v43 = vld [vmem:[%s4472_s3 + $0x10] sm:$0xff] }
  0x4c   : > { %v3728_v42 = vsel %vm755_vm3, %v918_v16, %v922_v63  ;;  %v785_v44 = vrot.slane %v783_v20, 1  ;;  %v3182_v50 = vunpack.c.l.bf16 %v3317_v3  ;;  %v424_v1 = vpack.c.bf16 %v392_v32, %v392_v32  ;;  %v3321_v8 = vld [vmem:[%s3463_s29 + $0x30] sm:$0xff]   ;;  %1586 = vmatpush.bf16.msrb.mxu3 %v3102_v43 }
  0x4d   : > { %1243 = vmatmul.bf16.gmra.mxu3 %v3728_v42  ;;  %v565_v52 = vor.u32 %v563_v9, %v562_v30  ;;  %v3740_v53 = vsel %vm3437_vm2, %v562_v30, 0  ;;  %v487_v36 = vunpack.c.l.b16 %v423_v33  ;;  %v333_v56 = vmul.f32 %v3468_v11, %v3227_v35 }
  0x4e   : > { %4500 = vst [vmem:[#allocation8_spill] sm:$0xff] %v3740_v53  ;;  %v786_v55 = vor.u32 %v785_v44, %v781_v18  ;;  %v836_v37 = vshll.u32 %v3740_v53, 16  ;;  %v367_v58 = vadd.f32 %v3476_v19, %v332_v46  ;;  %v488_v62 = vunpack.c.l.b16 %v424_v1 }
  0x4f   : > { %v3747_v59 = vsel %vm3437_vm2, 0, %v565_v52  ;;  %v3183_v63 = vunpack.c.h.bf16 %v3317_v3  ;;  %v310_v0 = vmul.f32 %v3468_v11, %v3182_v50  ;;  %v368_v18 = vadd.f32 %v3476_v19, %v333_v56 }
  0x50   : > { %4501 = vst [vmem:[#allocation9_spill] sm:$0xff] %v3747_v59  ;;  %v3752_v9 = vsel %vm755_vm3, %v786_v55, %v790_v24  ;;  %v829_v13 = vshrl.u32 %v3747_v59, 16  ;;  %v831_v14 = vshll.u32 %v3747_v59, 16  ;;  %v838_v15 = vrot.slane %v836_v37, 1 }
  0x51   : > { %1188 = vmatmul.bf16.gmra.mxu0 %v3752_v9  ;;  %v510_v16 = vpack.c.b16 %v488_v62, %v487_v36  ;;  %v399_v20 = vmax.f32 %v367_v58, 0.0  ;;  %v311_v3 = vmul.f32 %v3468_v11, %v3183_v63  ;;  %v345_v26 = vadd.f32 %v3476_v19, %v310_v0  ;;  %v3325_v58 = vld [vmem:[%s3463_s29 + $0x50] sm:$0xff]  }
  0x52   : > { %v833_v25 = vrot.slane %v831_v14, 1  ;;  %v3198_v24 = vunpack.c.l.bf16 %v3321_v8  ;;  %v3199_v30 = vunpack.c.h.bf16 %v3321_v8  ;;  %v400_v35 = vmax.f32 %v368_v18, 0.0 }
  0x53   : > { %v588_v32 = vshrl.u32 %v510_v16, 16  ;;  %v591_v33 = vshll.u32 %v510_v16, 16  ;;  %v431_v38 = vpack.c.bf16 %v399_v20, %v399_v20  ;;  %v346_v44 = vadd.f32 %v3476_v19, %v311_v3 }
  0x54   : > { %v834_v41 = vor.u32 %v833_v25, %v829_v13  ;;  %v377_v46 = vmax.f32 %v345_v26, 0.0  ;;  %v318_v43 = vmul.f32 %v3468_v11, %v3198_v24  ;;  %v432_v50 = vpack.c.bf16 %v400_v35, %v400_v35 }
  0x55   : > { %v590_v48 = vrot.slane %v588_v32, 7  ;;  %v495_v52 = vunpack.c.l.b16 %v431_v38  ;;  %v319_v1 = vmul.f32 %v3468_v11, %v3199_v30  ;;  %v378_v55 = vmax.f32 %v346_v44, 0.0 }
  0x56   : > { %v3764_v36 = vsel %vm755_vm3, %v834_v41, %v838_v15  ;;  %v409_v37 = vpack.c.bf16 %v377_v46, %v377_v46  ;;  %v353_v56 = vadd.f32 %v3476_v19, %v318_v43  ;;  %v496_v0 = vunpack.c.l.b16 %v432_v50 }
  0x57   : > { %1208 = vmatmul.bf16.gmra.mxu1 %v3764_v36  ;;  %v593_v62 = vor.u32 %v591_v33, %v590_v48  ;;  %v3771_v63 = vsel %vm3437_vm2, %v590_v48, 0  ;;  %v354_v8 = vadd.f32 %v3476_v19, %v319_v1  ;;  %v410_v14 = vpack.c.bf16 %v378_v55, %v378_v55  ;;  %v3782_v33 = vld [vmem:[%s3463_s29 + $0x70] sm:$0xff]  }
  0x58   : > { %4502 = vst [vmem:[#allocation10_spill] sm:$0xff] %v3771_v63  ;;  %v884_v13 = vshll.u32 %v3771_v63, 16  ;;  %v473_v15 = vunpack.c.l.b16 %v409_v37  ;;  %v385_v16 = vmax.f32 %v353_v56, 0.0  ;;  %v514_v20 = vpack.c.b16 %v496_v0, %v495_v52 }
  0x59   : > { %v3777_v18 = vsel %vm3437_vm2, 0, %v593_v62  ;;  %v386_v3 = vmax.f32 %v354_v8, 0.0  ;;  %v3214_v25 = vunpack.c.l.bf16 %v3325_v58  ;;  %v474_v32 = vunpack.c.l.b16 %v410_v14 }
  0x5a   : > { %v877_v26 = vshrl.u32 %v3777_v18, 16  ;;  %v879_v24 = vshll.u32 %v3777_v18, 16  ;;  %v886_v30 = vrot.slane %v884_v13, 1  ;;  %v616_v35 = vshrl.u32 %v514_v20, 16 }
  0x5b   : > { %v619_v38 = vshll.u32 %v514_v20, 16  ;;  %v417_v41 = vpack.c.bf16 %v385_v16, %v385_v16  ;;  %v418_v44 = vpack.c.bf16 %v386_v3, %v386_v3  ;;  %v503_v43 = vpack.c.b16 %v474_v32, %v473_v15 }
  0x5c   : > { %v881_v46 = vrot.slane %v879_v24, 1  ;;  %v3215_v48 = vunpack.c.h.bf16 %v3325_v58  ;;  %v326_v50 = vmul.f32 %v3468_v11, %v3214_v25  ;;  %v618_v52 = vrot.slane %v616_v35, 7 }
  0x5d   : > { %v481_v1 = vunpack.c.l.b16 %v417_v41  ;;  %v482_v55 = vunpack.c.l.b16 %v418_v44  ;;  %v3230_v37 = vunpack.c.l.bf16 %v3782_v33  ;;  %v539_v62 = vshrl.u32 %v503_v43, 16 }
  0x5e   : > { %v882_v56 = vor.u32 %v881_v46, %v877_v26  ;;  %v542_v0 = vshll.u32 %v503_v43, 16  ;;  %v327_v8 = vmul.f32 %v3468_v11, %v3215_v48  ;;  %v621_v13 = vor.u32 %v619_v38, %v618_v52 }
  0x5f   : > { %v3789_v14 = vsel %vm3437_vm2, %v618_v52, 0  ;;  %v507_v16 = vpack.c.b16 %v482_v55, %v481_v1  ;;  %v361_v58 = vadd.f32 %v3476_v19, %v326_v50  ;;  %v541_v3 = vrot.slane %v539_v62, 7  ;;  %v3134_v52 = vld [vmem:[%s4472_s3 + $0x110] sm:$0xff]  ;;  %v3141_v1 = vld [vmem:[%s4472_s3 + $0x148] sm:$0xff] }
  0x60   : > { %4503 = vst [vmem:[#allocation11_spill] sm:$0xff] %v3789_v14  ;;  %v3793_v15 = vsel %vm755_vm3, %v882_v56, %v886_v30  ;;  %v932_v20 = vshll.u32 %v3789_v14, 16  ;;  %v362_v25 = vadd.f32 %v3476_v19, %v327_v8  ;;  %v3800_v26 = vsel %vm3437_vm2, 0, %v621_v13  ;;  %v3101_v55 = vld [vmem:[%s4472_s3 + $0x8] sm:$0xff]  ;;  %v3110_v13 = vld [vmem:[%s4472_s3 + $0x50] sm:$0xff]  ;;  %1264 = vmatpush.bf16.msrb.mxu1 %v3134_v52  ;;  %1354 = vmatpush.bf16.msrb.mxu2 %v3141_v1 }
  0x61   : > { %1228 = vmatmul.bf16.gmra.mxu2 %v3793_v15  ;;  %v567_v24 = vshrl.u32 %v507_v16, 16  ;;  %v570_v32 = vshll.u32 %v507_v16, 16  ;;  %v393_v35 = vmax.f32 %v361_v58, 0.0  ;;  %v925_v38 = vshrl.u32 %v3800_v26, 16  ;;  %1587 = vmatpush.bf16.msrb.mxu3 %v3101_v55 }
  0x62   : > { %v927_v41 = vshll.u32 %v3800_v26, 16  ;;  %v934_v30 = vrot.slane %v932_v20, 1  ;;  %v544_v44 = vor.u32 %v542_v0, %v541_v3  ;;  %v3806_v46 = vsel %vm3437_vm2, %v541_v3, 0  ;;  %1675 = vmatpush.bf16.msrb.mxu0 %v3110_v13 }
  0x63   : > { %v569_v43 = vrot.slane %v567_v24, 7  ;;  %v394_v48 = vmax.f32 %v362_v25, 0.0  ;;  %v425_v50 = vpack.c.bf16 %v393_v35, %v393_v35  ;;  %v800_v0 = vshll.u32 %v3806_v46, 16  ;;  %v3133_v25 = vld [vmem:[%s4472_s3 + $0x108] sm:$0xff] }
  0x64   : > { %v929_v56 = vrot.slane %v927_v41, 1  ;;  %v3819_v62 = vsel %vm3437_vm2, 0, %v544_v44  ;;  %v3231_v8 = vunpack.c.h.bf16 %v3782_v33  ;;  %v3100_v44 = vld [vmem:[%s4472_s3] sm:$0xff]  ;;  %v334_v1 = vmul.f32 %v3468_v11, %v3230_v37  ;;  %1265 = vmatpush.bf16.msrb.mxu1 %v3133_v25 }
  0x65   : > { %v793_v16 = vshrl.u32 %v3819_v62, 16  ;;  %v795_v58 = vshll.u32 %v3819_v62, 16  ;;  %v572_v20 = vor.u32 %v570_v32, %v569_v43  ;;  %v3830_v3 = vsel %vm3437_vm2, %v569_v43, 0  ;;  %v3140_v32 = vld [vmem:[%s4472_s3 + $0x140] sm:$0xff]  ;;  %1588 = vmatpush.bf16.msrb.mxu3 %v3100_v44 }
  0x66   : > { %4504 = vst [vmem:[#allocation12_spill] sm:$0xff] %v3830_v3  ;;  %v930_v33 = vor.u32 %v929_v56, %v925_v38  ;;  %v802_v24 = vrot.slane %v800_v0, 1  ;;  %v848_v35 = vshll.u32 %v3830_v3, 16  ;;  %v426_v41 = vpack.c.bf16 %v394_v48, %v394_v48  ;;  %v3109_v48 = vld [vmem:[%s4472_s3 + $0x48] sm:$0xff]  ;;  %v3132_v37 = vld [vmem:[%s4472_s3 + $0x100] sm:$0xff]  ;;  %1355 = vmatpush.bf16.msrb.mxu2 %v3140_v32 }
  0x67   : > { %v797_v43 = vrot.slane %v795_v58, 1  ;;  %v3844_v52 = vsel %vm3437_vm2, 0, %v572_v20  ;;  %v489_v38 = vunpack.c.l.b16 %v425_v50  ;;  %v335_v20 = vmul.f32 %v3468_v11, %v3231_v8  ;;  %1676 = vmatpush.bf16.msrb.mxu0 %v3109_v48  ;;  %v3108_v11 = vld [vmem:[%s4472_s3 + $0x40] sm:$0xff] }
  0x68   : > { %4505 = vst [vmem:[#allocation13_spill] sm:$0xff] %v3844_v52  ;;  %v3851_v55 = vsel %vm755_vm3, %v930_v33, %v934_v30  ;;  %v841_v56 = vshrl.u32 %v3844_v52, 16  ;;  %v843_v0 = vshll.u32 %v3844_v52, 16  ;;  %v490_v58 = vunpack.c.l.b16 %v426_v41  ;;  %1266 = vmatpush.bf16.msrb.mxu1 %v3132_v37 }
  0x69   : > { %1248 = vmatmul.bf16.gmra.mxu3 %v3851_v55  ;;  %v798_v13 = vor.u32 %v797_v43, %v793_v16  ;;  %v369_v50 = vadd.f32 %v3476_v19, %v334_v1  ;;  %v850_v30 = vrot.slane %v848_v35, 1  ;;  %v370_v16 = vadd.f32 %v3476_v19, %v335_v20  ;;  %v3123_v20 = vld [vmem:[%s4472_s3 + $0xb8] sm:$0xff] }
  0x6a   : > { %v845_v14 = vrot.slane %v843_v0, 1  ;;  %v511_v40 = vpack.c.b16 %v490_v58, %v489_v38  ;;  %v3163_v58 = vld [vmem:[%s4472_s3 + $0x1f8] sm:$0xff] }
  0x6b   : > { %v3862_v33 = vsel %vm755_vm3, %v798_v13, %v802_v24  ;;  %v401_v41 = vmax.f32 %v369_v50, 0.0  ;;  %v402_v35 = vmax.f32 %v370_v16, 0.0  ;;  %1677 = vmatpush.bf16.msrb.mxu0 %v3108_v11  ;;  %v3155_v13 = vld [vmem:[%s4472_s3 + $0x1b8] sm:$0xff]  ;;  %2233 = vmatpush.bf16.msra.mxu3 %v3163_v58 }
  0x6c   : > { %1193 = vmatmul.bf16.gmra.mxu0 %v3862_v33  ;;  %v846_v8 = vor.u32 %v845_v14, %v841_v56  ;;  %v595_v25 = vshrl.u32 %v511_v40, 16  ;;  %v598_v43 = vshll.u32 %v511_v40, 16  ;;  %2144 = vmatpush.bf16.msra.mxu2 %v3155_v13 }
  0x6d   : > { %v433_v32 = vpack.c.bf16 %v401_v41, %v401_v41  ;;  %v434_v44 = vpack.c.bf16 %v402_v35, %v402_v35  ;;  %1759 = vmatpush.bf16.msra.mxu1 %v3123_v20  ;;  %v3154_v20 = vld [vmem:[%s4472_s3 + $0x1b0] sm:$0xff] }
  0x6e   : > { %v3870_v24 = vsel %vm755_vm3, %v846_v8, %v850_v30  ;;  %v597_v19 = vrot.slane %v595_v25, 7  ;;  %v3171_v30 = vld [vmem:[%s4472_s3 + $0x238] sm:$0xff] }
  0x6f   : > { %1213 = vmatmul.bf16.gmra.mxu1 %v3870_v24  ;;  %v497_v38 = vunpack.c.l.b16 %v433_v32  ;;  %v498_v14 = vunpack.c.l.b16 %v434_v44  ;;  %2322 = vmatpush.bf16.msra.mxu0 %v3171_v30 }
  0x70   : > { %v600_v1 = vor.u32 %v598_v43, %v597_v19  ;;  %v3875_v48 = vsel %vm3437_vm2, %v597_v19, 0  ;;  %2145 = vmatpush.bf16.msra.mxu2 %v3154_v20 }
  0x71   : > { %4506 = vst [vmem:[#allocation14_spill] sm:$0xff] %v3875_v48  ;;  %v896_v40 = vshll.u32 %v3875_v48, 16  ;;  %v515_v0 = vpack.c.b16 %v498_v14, %v497_v38  ;;  %v3159_v48 = vld [vmem:[%s4472_s3 + $0x1d8] sm:$0xff] }
  0x72   : > { %v3880_v56 = vsel %vm3437_vm2, 0, %v600_v1 }
  0x73   : > { %v889_v50 = vshrl.u32 %v3880_v56, 16  ;;  %v891_v37 = vshll.u32 %v3880_v56, 16  ;;  %v623_v16 = vshrl.u32 %v515_v0, 16  ;;  %v626_v41 = vshll.u32 %v515_v0, 16 }
  0x74   : > { %v898_v8 = vrot.slane %v896_v40, 1 }
  0x75   : > { %v893_v11 = vrot.slane %v891_v37, 1  ;;  %v625_v25 = vrot.slane %v623_v16, 7  ;;  %v3170_v37 = vld [vmem:[%s4472_s3 + $0x230] sm:$0xff]  ;;  %v3153_v16 = vld [vmem:[%s4472_s3 + $0x1a8] sm:$0xff] }
  0x76   : > { %2323 = vmatpush.bf16.msra.mxu0 %v3170_v37  ;;  %2146 = vmatpush.bf16.msra.mxu2 %v3153_v16 }
  0x77   : > { %v894_v43 = vor.u32 %v893_v11, %v889_v50  ;;  %v628_v35 = vor.u32 %v626_v41, %v625_v25  ;;  %v3898_v32 = vsel %vm3437_vm2, %v625_v25, 0  ;;  %v3122_v50 = vld [vmem:[%s4472_s3 + $0xb0] sm:$0xff]  ;;  %v3121_v41 = vld [vmem:[%s4472_s3 + $0xa8] sm:$0xff] }
  0x78   : > { %4507 = vst [vmem:[#allocation15_spill] sm:$0xff] %v3898_v32  ;;  %v944_v44 = vshll.u32 %v3898_v32, 16  ;;  %1760 = vmatpush.bf16.msra.mxu1 %v3122_v50 }
  0x79   : > { %v3901_v19 = vsel %vm755_vm3, %v894_v43, %v898_v8  ;;  %v3907_v38 = vsel %vm3437_vm2, 0, %v628_v35 }
  0x7a   : > { %1233 = vmatmul.bf16.gmra.mxu2 %v3901_v19  ;;  %v937_v1 = vshrl.u32 %v3907_v38, 16  ;;  %v939_v14 = vshll.u32 %v3907_v38, 16  ;;  %v946_v0 = vrot.slane %v944_v44, 1 }
  0x7c   : > { %1678 = vmatmul.bf16.vlgmr.msrb.gmra.mxu0 %v3593_v28  ;;  %v941_v40 = vrot.slane %v939_v14, 1  ;;  %1761 = vmatpush.bf16.msra.mxu1 %v3121_v41 }
  0x7e   : > { %v942_v13 = vor.u32 %v941_v40, %v937_v1  ;;  %v3152_v40 = vld [vmem:[%s4472_s3 + $0x1a0] sm:$0xff] }
  0x7f   : > { %1267 = vmatmul.bf16.vlgmr.msrb.gmra.mxu1 %v3639_v12  ;;  %v3162_v12 = vld [vmem:[%s4472_s3 + $0x1f0] sm:$0xff]  ;;  %2147 = vmatpush.bf16.msra.mxu2 %v3152_v40 }
  0x80   : > { %v3914_v58 = vsel %vm755_vm3, %v942_v13, %v946_v0  ;;  %2234 = vmatpush.bf16.msra.mxu3 %v3162_v12  ;;  %v3160_v0 = vld [vmem:[%s4472_s3 + $0x1e0] sm:$0xff] }
  0x81   : > { %1253 = vmatmul.bf16.gmra.mxu3 %v3914_v58  ;;  %v3120_v13 = vld [vmem:[%s4472_s3 + $0xa0] sm:$0xff] }
  0x82   : > { %1762 = vmatpush.bf16.msra.mxu1 %v3120_v13 }
  0x83   : > { %2148 = vmatpush.bf16.msra.mxu2 %v3151_v49 }
  0x8a   : > { %1356 = vmatmul.bf16.vlgmr.msrb.gmra.mxu2 %v3752_v9 }
  0x8c   : > { %1683 = vmatmul.bf16.gmra.mxu0 %v3705_v7 }
  0x8f   : > { %1272 = vmatmul.bf16.gmra.mxu1 %v3752_v9 }
  0x91   : > { %1589 = vmatmul.bf16.vlgmr.msrb.gmra.mxu3 %v3445_v5 }
  0x9a   : > { %1361 = vmatmul.bf16.gmra.mxu2 %v3862_v33 }
  0x9c   : > { %1688 = vmatmul.bf16.gmra.mxu0 %v3819_v62 }
  0x9f   : > { %1277 = vmatmul.bf16.gmra.mxu1 %v3862_v33  ;;  %v3161_v33 = vld [vmem:[%s4472_s3 + $0x1e8] sm:$0xff] }
  0xa0   : > { %2235 = vmatpush.bf16.msra.mxu3 %v3161_v33 }
  0xa1   : > { %1594 = vmatmul.bf16.gmra.mxu3 %v3593_v28 }
  0xa4   : > { %2236 = vmatpush.bf16.msra.mxu3 %v3160_v0 }
  0xa8   : > { %v3939_v9 = vpop.f32.mrf.mxu0  ;;  %2237 = vmatpush.bf16.msra.mxu3 %v3159_v48 }
  0xaa   : > { %1366 = vmatmul.bf16.gmra.mxu2 %v3583_v23 }
  0xab   : > { %v3942_v30 = vpop.f32.mrf.mxu1 }
  0xac   : > { %1693 = vmatmul.bf16.gmra.mxu0 %v3537_v47 }
  0xaf   : > { %1282 = vmatmul.bf16.gmra.mxu1 %v3583_v23  ;;  %v3169_v23 = vld [vmem:[%s4472_s3 + $0x228] sm:$0xff] }
  0xb0   : > { %2324 = vmatpush.bf16.msra.mxu0 %v3169_v23  ;;  %v3957_v11 = vpop.f32.mrf.mxu0 }
  0xb1   : > { %1599 = vmatmul.bf16.gmra.mxu3 %v3705_v7 }
  0xb2   : > { %v3966_v43 = vpop.f32.mrf.mxu2 }
  0xb3   : > { %v3960_v8 = vpop.f32.mrf.mxu1  ;;  %v3971_v44 = vpop.f32.mrf.mxu3 }
  0xb4   : > { %4508 = vst [vmem:[#allocation16_spill] sm:$0xff] %v3971_v44 }
  0xb8   : > { %v3964_v25 = vpop.f32.mrf.mxu0 }
  0xba   : > { %1371 = vmatmul.bf16.gmra.mxu2 %v3663_v2  ;;  %v3976_v14 = vpop.f32.mrf.mxu2 }
  0xbb   : > { %v3992_v20 = vpop.f32.mrf.mxu3 }
  0xbc   : > { %1698 = vmatmul.bf16.gmra.mxu0 %v3651_v29  ;;  %v3969_v35 = vpop.f32.mrf.mxu1  ;;  %4509 = vst [vmem:[#allocation17_spill] sm:$0xff] %v3992_v20 }
  0xbf   : > { %1287 = vmatmul.bf16.gmra.mxu1 %v3663_v2 }
  0xc0   : > { %v3974_v1 = vpop.f32.mrf.mxu0 }
  0xc1   : > { %1604 = vmatmul.bf16.gmra.mxu3 %v3819_v62 }
  0xc4   : > { %v3980_v2 = vpop.f32.mrf.mxu1 }
  0xca   : > { %1376 = vmatmul.bf16.gmra.mxu2 %v3764_v36 }
  0xcc   : > { %1703 = vmatmul.bf16.gmra.mxu0 %v3747_v59  ;;  %v3999_v50 = vpop.f32.mrf.mxu2 }
  0xce   : > { %v3997_v12 = vpop.f32.mrf.mxu0 }
  0xcf   : > { %1292 = vmatmul.bf16.gmra.mxu1 %v3764_v36  ;;  %v3168_v36 = vld [vmem:[%s4472_s3 + $0x220] sm:$0xff] }
  0xd0   : > { %2325 = vmatpush.bf16.msra.mxu0 %v3168_v36  ;;  %v4005_v16 = vpop.f32.mrf.mxu3 }
  0xd1   : > { %1609 = vmatmul.bf16.gmra.mxu3 %v3537_v47  ;;  %4510 = vst [vmem:[#allocation18_spill] sm:$0xff] %v4005_v16 }
  0xd4   : > { %v4001_v37 = vpop.f32.mrf.mxu1  ;;  %v4010_v41 = vpop.f32.mrf.mxu2 }
  0xd6   : > { %v4008_v33 = vpop.f32.mrf.mxu0 }
  0xd8   : > { %v4015_v40 = vpop.f32.mrf.mxu3 }
  0xd9   : > { %4511 = vst [vmem:[#allocation19_spill] sm:$0xff] %v4015_v40 }
  0xda   : > { %1381 = vmatmul.bf16.gmra.mxu2 %v3870_v24 }
  0xdc   : > { %1708 = vmatmul.bf16.gmra.mxu0 %v3844_v52  ;;  %v4013_v23 = vpop.f32.mrf.mxu1 }
  0xdf   : > { %1297 = vmatmul.bf16.gmra.mxu1 %v3870_v24 }
  0xe1   : > { %1614 = vmatmul.bf16.gmra.mxu3 %v3651_v29 }
  0xe4   : > { %v4019_v13 = vpop.f32.mrf.mxu2 }
  0xe5   : > { %4512 = vst [vmem:[#allocation20_spill] sm:$0xff] %v4019_v13 }
  0xe9   : > { %v4017_v0 = vpop.f32.mrf.mxu0 }
  0xea   : > { %1386 = vmatmul.bf16.gmra.mxu2 %v3589_v27 }
  0xec   : > { %1713 = vmatmul.bf16.gmra.mxu0 %v3548_v54  ;;  %v4023_v36 = vpop.f32.mrf.mxu1  ;;  %v4028_v32 = vpop.f32.mrf.mxu3 }
  0xed   : > { %4513 = vst [vmem:[#allocation21_spill] sm:$0xff] %v4028_v32  ;;  %v4037_v63 = vpop.f32.mrf.mxu2  ;;  %v3167_v32 = vld [vmem:[%s4472_s3 + $0x218] sm:$0xff] }
  0xee   : > { %4514 = vst [vmem:[#allocation22_spill] sm:$0xff] %v4037_v63  ;;  %2326 = vmatpush.bf16.msra.mxu0 %v3167_v32 }
  0xef   : > { %1302 = vmatmul.bf16.gmra.mxu1 %v3589_v27  ;;  %v3119_v27 = vld [vmem:[%s4472_s3 + $0x98] sm:$0xff] }
  0xf0   : > { %1763 = vmatpush.bf16.msra.mxu1 %v3119_v27 }
  0xf1   : > { %v4026_v24 = vpop.f32.mrf.mxu0  ;;  %1619 = vmatmul.bf16.gmra.mxu3 %v3747_v59  ;;  %v3166_v59 = vld [vmem:[%s4472_s3 + $0x210] sm:$0xff] }
  0xf2   : > { %2327 = vmatpush.bf16.msra.mxu0 %v3166_v59 }
  0xf4   : > { %v4039_v10 = vpop.f32.mrf.mxu1  ;;  %v4048_v16 = vpop.f32.mrf.mxu3 }
  0xf5   : > { %4515 = vst [vmem:[#allocation23_spill] sm:$0xff] %v4048_v16 }
  0xf9   : > { %v1679_v40 = vpop.f32.mrf.mxu0 }
  0xfa   : > { %1391 = vmatmul.bf16.gmra.mxu2 %v3698_v61 }
  0xfc   : > { %1718 = vmatmul.bf16.gmra.mxu0 %v3673_v22  ;;  %v1268_v45 = vpop.f32.mrf.mxu1 }
  0xfd   : > { %v4051_v49 = vpop.f32.mrf.mxu2  ;;  %v1269_v27 = vadd.f32 %v1268_v45, %v3939_v9 }
  0xfe   : > { %4516 = vst [vmem:[#allocation24_spill] sm:$0xff] %v4051_v49 }
  0xff   : > { %1307 = vmatmul.bf16.gmra.mxu1 %v3698_v61 }
 0x101   : > { %v1681_v48 = vpop.f32.mrf.mxu0  ;;  %1624 = vmatmul.bf16.gmra.mxu3 %v3844_v52 }
 0x104   : > { %v1270_v20 = vpop.f32.mrf.mxu1  ;;  %v4055_v44 = vpop.f32.mrf.mxu3 }
 0x105   : > { %4517 = vst [vmem:[#allocation25_spill] sm:$0xff] %v4055_v44  ;;  %v4057_v3 = vpop.f32.mrf.mxu2  ;;  %v3150_v44 = vld [vmem:[%s4472_s3 + $0x190] sm:$0xff]  ;;  %v1271_v45 = vadd.f32 %v1270_v20, %v3957_v11 }
 0x106   : > { %4518 = vst [vmem:[#allocation26_spill] sm:$0xff] %v4057_v3  ;;  %v3158_v3 = vld [vmem:[%s4472_s3 + $0x1d0] sm:$0xff]  ;;  %2149 = vmatpush.bf16.msra.mxu2 %v3150_v44 }
 0x107   : > { %2238 = vmatpush.bf16.msra.mxu3 %v3158_v3 }
 0x109   : > { %v1684_v32 = vpop.f32.mrf.mxu0 }
 0x10a   : > { %1396 = vmatmul.bf16.gmra.mxu2 %v3793_v15 }
 0x10c   : > { %1723 = vmatmul.bf16.gmra.mxu0 %v3777_v18  ;;  %v1273_v16 = vpop.f32.mrf.mxu1  ;;  %v4062_v53 = vpop.f32.mrf.mxu3 }
 0x10d   : > { %4519 = vst [vmem:[#allocation27_spill] sm:$0xff] %v4062_v53  ;;  %v1357_v49 = vpop.f32.mrf.mxu2 }
 0x10e   : > { %v1358_v61 = vadd.f32 %v1357_v49, %v1269_v27 }
 0x10f   : > { %1312 = vmatmul.bf16.gmra.mxu1 %v3793_v15 }
 0x111   : > { %v1686_v52 = vpop.f32.mrf.mxu0  ;;  %1629 = vmatmul.bf16.gmra.mxu3 %v3548_v54  ;;  %v3118_v54 = vld [vmem:[%s4472_s3 + $0x90] sm:$0xff] }
 0x112   : > { %1764 = vmatpush.bf16.msra.mxu1 %v3118_v54 }
 0x114   : > { %v1275_v9 = vpop.f32.mrf.mxu1  ;;  %v1590_v53 = vpop.f32.mrf.mxu3 }
 0x115   : > { %v1359_v49 = vpop.f32.mrf.mxu2  ;;  %v1591_v27 = vadd.f32 %v1590_v53, %v1358_v61  ;;  %v1274_v53 = vadd.f32 %v1273_v16, %v3964_v25  ;;  %v1276_v54 = vadd.f32 %v1275_v9, %v3974_v1 }
 0x116   : > { %v1360_v15 = vadd.f32 %v1359_v49, %v1271_v45 }
 0x117   : > { %v4079_v13 = vadd.f32 %v1679_v40, %v1591_v27 }
 0x119   : > { %v1689_v63 = vpop.f32.mrf.mxu0  ;;  %4520 = vst [vmem:[#allocation28_spill] sm:$0xff] %v4079_v13 }
 0x11a   : > { %1401 = vmatmul.bf16.gmra.mxu2 %v3901_v19 }
 0x11c   : > { %1728 = vmatmul.bf16.gmra.mxu0 %v3880_v56  ;;  %v1278_v3 = vpop.f32.mrf.mxu1  ;;  %v1592_v11 = vpop.f32.mrf.mxu3 }
 0x11d   : > { %v1362_v44 = vpop.f32.mrf.mxu2  ;;  %v1593_v20 = vadd.f32 %v1592_v11, %v1360_v15 }
 0x11e   : > { %v1363_v61 = vadd.f32 %v1362_v44, %v1274_v53 }
 0x11f   : > { %1317 = vmatmul.bf16.gmra.mxu1 %v3901_v19  ;;  %v4087_v49 = vadd.f32 %v1681_v48, %v1593_v20  ;;  %v1279_v19 = vadd.f32 %v1278_v3, %v3997_v12  ;;  %v3149_v12 = vld [vmem:[%s4472_s3 + $0x188] sm:$0xff] }
 0x120   : > { %v3157_v3 = vld [vmem:[%s4472_s3 + $0x1c8] sm:$0xff]  ;;  %2150 = vmatpush.bf16.msra.mxu2 %v3149_v12 }
 0x121   : > { %v4085_v45 = vpop.f32.mrf.mxu0  ;;  %1634 = vmatmul.bf16.gmra.mxu3 %v3673_v22 }
 0x122   : > { %2239 = vmatpush.bf16.msra.mxu3 %v3157_v3 }
 0x124   : > { %v1280_v59 = vpop.f32.mrf.mxu1  ;;  %v1595_v40 = vpop.f32.mrf.mxu3 }
 0x125   : > { %v1364_v27 = vpop.f32.mrf.mxu2  ;;  %v1281_v25 = vadd.f32 %v1280_v59, %v4008_v33  ;;  %v1596_v16 = vadd.f32 %v1595_v40, %v1363_v61  ;;  %v3330_v61 = vld [vmem:[%s3463_s29 + $0x78] sm:$0xff]   ;;  %v3117_v59 = vld [vmem:[%s4472_s3 + $0x88] sm:$0xff] }
 0x126   : > { %v1365_v13 = vadd.f32 %v1364_v27, %v1276_v54  ;;  %v3165_v40 = vld [vmem:[%s4472_s3 + $0x208] sm:$0xff]  ;;  %v3234_v27 = vunpack.c.l.bf16 %v3330_v61  ;;  %1765 = vmatpush.bf16.msra.mxu1 %v3117_v59 }
 0x127   : > { %v4094_v15 = vadd.f32 %v1684_v32, %v1596_v16  ;;  %v3235_v16 = vunpack.c.h.bf16 %v3330_v61  ;;  %2328 = vmatpush.bf16.msra.mxu0 %v3165_v40 }
 0x129   : > { %v4092_v17 = vpop.f32.mrf.mxu0 }
 0x12a   : > { %1406 = vmatmul.bf16.gmra.mxu2 %v3601_v34 }
 0x12c   : > { %1733 = vmatmul.bf16.gmra.mxu0 %v3560_v60  ;;  %v1283_v48 = vpop.f32.mrf.mxu1  ;;  %v1597_v53 = vpop.f32.mrf.mxu3 }
 0x12d   : > { %v1367_v1 = vpop.f32.mrf.mxu2  ;;  %v1284_v9 = vadd.f32 %v1283_v48, %v4017_v0  ;;  %v1598_v11 = vadd.f32 %v1597_v53, %v1365_v13 }
 0x12e   : > { %v1368_v33 = vadd.f32 %v1367_v1, %v1279_v19  ;;  %v3382_v1 = vld [vmem:[%s4471_s2] ss:$0 sm:$0xff] }
 0x12f   : > { %1322 = vmatmul.bf16.gmra.mxu1 %v3601_v34  ;;  %v4103_v32 = vadd.f32 %v1686_v52, %v1598_v11 }
 0x131   : > { %v4101_v44 = vpop.f32.mrf.mxu0  ;;  %1639 = vmatmul.bf16.gmra.mxu3 %v3777_v18 }
 0x134   : > { %v1285_v20 = vpop.f32.mrf.mxu1  ;;  %v1600_v0 = vpop.f32.mrf.mxu3 }
 0x135   : > { %v1369_v13 = vpop.f32.mrf.mxu2  ;;  %v1286_v34 = vadd.f32 %v1285_v20, %v4026_v24  ;;  %v1601_v52 = vadd.f32 %v1600_v0, %v1368_v33  ;;  %v3381_v24 = vld [vmem:[%s4470_s1] ss:$0 sm:$0xff] }
 0x136   : > { %v1370_v54 = vadd.f32 %v1369_v13, %v1281_v25  ;;  %v336_v48 = vmul.f32 %v3381_v24, %v3234_v27  ;;  %v337_v25 = vmul.f32 %v3381_v24, %v3235_v16 }
 0x137   : > { %v4125_v53 = vadd.f32 %v1689_v63, %v1601_v52 }
 0x138   : > { %v371_v11 = vadd.f32 %v3382_v1, %v336_v48  ;;  %v372_v33 = vadd.f32 %v3382_v1, %v337_v25 }
 0x139   : > { %v4120_v19 = vpop.f32.mrf.mxu0 }
 0x13a   : > { %1411 = vmatmul.bf16.gmra.mxu2 %v3728_v42  ;;  %v403_v3 = vmax.f32 %v371_v11, 0.0  ;;  %v404_v20 = vmax.f32 %v372_v33, 0.0 }
 0x13c   : > { %1738 = vmatmul.bf16.gmra.mxu0 %v3686_v51  ;;  %v1288_v12 = vpop.f32.mrf.mxu1  ;;  %v1602_v0 = vpop.f32.mrf.mxu3  ;;  %v435_v52 = vpack.c.bf16 %v403_v3, %v403_v3  ;;  %v436_v40 = vpack.c.bf16 %v404_v20, %v404_v20 }
 0x13d   : > { %v1372_v13 = vpop.f32.mrf.mxu2  ;;  %v1603_v61 = vadd.f32 %v1602_v0, %v1370_v54 }
 0x13e   : > { %v1373_v59 = vadd.f32 %v1372_v13, %v1284_v9  ;;  %v499_v24 = vunpack.c.l.b16 %v435_v52  ;;  %v500_v48 = vunpack.c.l.b16 %v436_v40 }
 0x13f   : > { %1327 = vmatmul.bf16.gmra.mxu1 %v3728_v42  ;;  %v4136_v27 = vadd.f32 %v4085_v45, %v1603_v61  ;;  %v1289_v45 = vadd.f32 %v1288_v12, %v3942_v30  ;;  %v3148_v30 = vld [vmem:[%s4472_s3 + $0x180] sm:$0xff] }
 0x140   : > { %v516_v9 = vpack.c.b16 %v500_v48, %v499_v24  ;;  %v3156_v12 = vld [vmem:[%s4472_s3 + $0x1c0] sm:$0xff]  ;;  %2151 = vmatpush.bf16.msra.mxu2 %v3148_v30 }
 0x141   : > { %v4133_v63 = vpop.f32.mrf.mxu0  ;;  %1644 = vmatmul.bf16.gmra.mxu3 %v3880_v56 }
 0x142   : > { %v630_v20 = vshrl.u32 %v516_v9, 16  ;;  %v633_v40 = vshll.u32 %v516_v9, 16  ;;  %2240 = vmatpush.bf16.msra.mxu3 %v3156_v12  ;;  %v3164_v9 = vld [vmem:[%s4472_s3 + $0x200] sm:$0xff] }
 0x143   : > { %2329 = vmatpush.bf16.msra.mxu0 %v3164_v9 }
 0x144   : > { %v1290_v16 = vpop.f32.mrf.mxu1  ;;  %v1605_v25 = vpop.f32.mrf.mxu3 }
 0x145   : > { %v1374_v1 = vpop.f32.mrf.mxu2  ;;  %v1606_v11 = vadd.f32 %v1605_v25, %v1373_v59  ;;  %v632_v59 = vrot.slane %v630_v20, 7  ;;  %v1291_v24 = vadd.f32 %v1290_v16, %v3960_v8 }
 0x146   : > { %v1375_v33 = vadd.f32 %v1374_v1, %v1286_v34 }
 0x147   : > { %v4142_v42 = vadd.f32 %v4092_v17, %v1606_v11 }
 0x149   : > { %v4139_v54 = vpop.f32.mrf.mxu0 }
 0x14a   : > { %1416 = vmatmul.bf16.gmra.mxu2 %v3851_v55 }
 0x14c   : > { %1743 = vmatmul.bf16.gmra.mxu0 %v3800_v26  ;;  %v1293_v3 = vpop.f32.mrf.mxu1  ;;  %v1607_v0 = vpop.f32.mrf.mxu3 }
 0x14d   : > { %v1377_v13 = vpop.f32.mrf.mxu2  ;;  %v1608_v61 = vadd.f32 %v1607_v0, %v1375_v33  ;;  %v3116_v33 = vld [vmem:[%s4472_s3 + $0x80] sm:$0xff]  ;;  %v1294_v0 = vadd.f32 %v1293_v3, %v3969_v35 }
 0x14e   : > { %v1378_v52 = vadd.f32 %v1377_v13, %v1289_v45  ;;  %1766 = vmatpush.bf16.msra.mxu1 %v3116_v33 }
 0x14f   : > { %1332 = vmatmul.bf16.gmra.mxu1 %v3851_v55  ;;  %v4149_v17 = vadd.f32 %v4101_v44, %v1608_v61  ;;  %v635_v55 = vor.u32 %v633_v40, %v632_v59  ;;  %v4178_v61 = vsel %vm3437_vm2, %v632_v59, 0 }
 0x151   : > { %v1706_v34 = vpop.f32.mrf.mxu0  ;;  %1649 = vmatmul.bf16.gmra.mxu3 %v3560_v60  ;;  %v4167_v8 = vsel %vm3437_vm2, 0, %v635_v55  ;;  %v956_v55 = vshll.u32 %v4178_v61, 16 }
 0x152   : > { %v951_v20 = vshll.u32 %v4167_v8, 16 }
 0x153   : > { %v958_v35 = vrot.slane %v956_v55, 1 }
 0x154   : > { %v1295_v48 = vpop.f32.mrf.mxu1  ;;  %v1610_v25 = vpop.f32.mrf.mxu3 }
 0x155   : > { %v1379_v1 = vpop.f32.mrf.mxu2  ;;  %v1611_v44 = vadd.f32 %v1610_v25, %v1378_v52  ;;  %v1296_v3 = vadd.f32 %v1295_v48, %v3980_v2 }
 0x156   : > { %v1380_v11 = vadd.f32 %v1379_v1, %v1291_v24  ;;  %v953_v24 = vrot.slane %v951_v20, 1 }
 0x157   : > { %v4170_v16 = vadd.f32 %v4120_v19, %v1611_v44  ;;  %v949_v19 = vshrl.u32 %v4167_v8, 16 }
 0x159   : > { %v1709_v45 = vpop.f32.mrf.mxu0  ;;  %v954_v4 = vor.u32 %v953_v24, %v949_v19  ;;  %v1890_v24 = vrot.slane %v3694_v57, 1 }
 0x15a   : > { %1421 = vmatmul.bf16.gmra.mxu2 %v3914_v58 }
 0x15b   : > { %v959_v9 = vsel %vm755_vm3, %v954_v4, %v958_v35  ;;  %v1889_v4 = vrot.slane %v3705_v7, 1 }
 0x15c   : > { %1748 = vmatmul.bf16.gmra.mxu0 %v3907_v38  ;;  %v1298_v13 = vpop.f32.mrf.mxu1  ;;  %v1612_v52 = vpop.f32.mrf.mxu3 }
 0x15d   : > { %v1382_v40 = vpop.f32.mrf.mxu2  ;;  %v1613_v30 = vadd.f32 %v1612_v52, %v1380_v11 }
 0x15e   : > { %v1383_v12 = vadd.f32 %v1382_v40, %v1294_v0 }
 0x15f   : > { %1337 = vmatmul.bf16.gmra.mxu1 %v3914_v58  ;;  %v4184_v1 = vadd.f32 %v4133_v63, %v1613_v30  ;;  %v1299_v63 = vadd.f32 %v1298_v13, %v4001_v37 }
 0x161   : > { %v1711_v25 = vpop.f32.mrf.mxu0  ;;  %1654 = vmatmul.bf16.gmra.mxu3 %v3686_v51 }
 0x164   : > { %v1300_v59 = vpop.f32.mrf.mxu1  ;;  %v1615_v44 = vpop.f32.mrf.mxu3 }
 0x165   : > { %v1384_v11 = vpop.f32.mrf.mxu2  ;;  %v1616_v33 = vadd.f32 %v1615_v44, %v1383_v12 }
 0x166   : > { %v1385_v58 = vadd.f32 %v1384_v11, %v1296_v3  ;;  %v4201_v11 = vsel %vm1882_vm4, %v1889_v4, %v1890_v24 }
 0x167   : > { %v4190_v0 = vadd.f32 %v4139_v54, %v1616_v33  ;;  %v1301_v54 = vadd.f32 %v1300_v59, %v4013_v23 }
 0x169   : > { %v1714_v20 = vpop.f32.mrf.mxu0 }
 0x16a   : > { %1426 = vmatmul.bf16.gmra.mxu2 %v959_v9 }
 0x16c   : > { %1753 = vmatmul.bf16.gmra.mxu0 %v4167_v8  ;;  %v1303_v52 = vpop.f32.mrf.mxu1  ;;  %v1617_v40 = vpop.f32.mrf.mxu3 }
 0x16d   : > { %v1387_v30 = vpop.f32.mrf.mxu2  ;;  %v1618_v2 = vadd.f32 %v1617_v40, %v1385_v58  ;;  %v1304_v57 = vadd.f32 %v1303_v52, %v4023_v36  ;;  %v1892_v36 = vrot.slane %v3819_v62, 1  ;;  %v1893_v52 = vrot.slane %v3806_v46, 1 }
 0x16e   : > { %v1388_v48 = vadd.f32 %v1387_v30, %v1299_v63 }
 0x16f   : > { %1342 = vmatmul.bf16.gmra.mxu1 %v959_v9  ;;  %v4194_v12 = vadd.f32 %v1706_v34, %v1618_v2 }
 0x171   : > { %v1716_v19 = vpop.f32.mrf.mxu0  ;;  %1659 = vmatmul.bf16.gmra.mxu3 %v3800_v26 }
 0x174   : > { %v1305_v55 = vpop.f32.mrf.mxu1  ;;  %v1620_v35 = vpop.f32.mrf.mxu3 }
 0x175   : > { %v1389_v37 = vpop.f32.mrf.mxu2  ;;  %v1621_v13 = vadd.f32 %v1620_v35, %v1388_v48  ;;  %v1306_v30 = vadd.f32 %v1305_v55, %v4039_v10  ;;  %v4221_v35 = vsel %vm1882_vm4, %v1892_v36, %v1893_v52  ;;  %v1887_v10 = vrot.slane %v3580_v21, 1 }
 0x176   : > { %v1390_v3 = vadd.f32 %v1389_v37, %v1301_v54  ;;  %v1886_v55 = vrot.slane %v3593_v28, 1 }
 0x177   : > { %v4203_v34 = vadd.f32 %v1709_v45, %v1621_v13  ;;  %v1884_v45 = vrot.slane %v3449_v6, 1 }
 0x179   : > { %v1719_v44 = vpop.f32.mrf.mxu0 }
 0x17a   : > { %1431 = vmatmul.bf16.gmra.mxu2 %v3487_v31  ;;  %v1883_v31 = vrot.slane %v3445_v5, 1 }
 0x17c   : > { %2330 = vmatmul.bf16.vlgmr.msra.gmra.mxu0 %v4201_v11  ;;  %v1308_v23 = vpop.f32.mrf.mxu1  ;;  %v1622_v59 = vpop.f32.mrf.mxu3 }
 0x17d   : > { %v1392_v33 = vpop.f32.mrf.mxu2  ;;  %v1623_v58 = vadd.f32 %v1622_v59, %v1390_v3  ;;  %v1309_v46 = vadd.f32 %v1308_v23, %v3966_v43  ;;  %v1896_v43 = vrot.slane %v3525_v39, 1 }
 0x17e   : > { %v1393_v9 = vadd.f32 %v1392_v33, %v1304_v57 }
 0x17f   : > { %1767 = vmatmul.bf16.vlgmr.msra.gmra.mxu1 %v3705_v7  ;;  %v4209_v40 = vadd.f32 %v1711_v25, %v1623_v58  ;;  %v4218_v25 = vsel %vm1882_vm4, %v1883_v31, %v1884_v45 }
 0x181   : > { %v1721_v63 = vpop.f32.mrf.mxu0  ;;  %1664 = vmatmul.bf16.gmra.mxu3 %v3907_v38 }
 0x184   : > { %v1310_v2 = vpop.f32.mrf.mxu1  ;;  %v1625_v48 = vpop.f32.mrf.mxu3 }
 0x185   : > { %v1394_v24 = vpop.f32.mrf.mxu2  ;;  %v1626_v54 = vadd.f32 %v1625_v48, %v1393_v9  ;;  %v1311_v21 = vadd.f32 %v1310_v2, %v3976_v14  ;;  %v1895_v9 = vrot.slane %v3537_v47, 1 }
 0x186   : > { %v1395_v7 = vadd.f32 %v1394_v24, %v1306_v30 }
 0x187   : > { %v4223_v6 = vadd.f32 %v1714_v20, %v1626_v54  ;;  %v1888_v20 = vsel %vm1882_vm4, %v1886_v55, %v1887_v10  ;;  %v1898_v55 = vrot.slane %v3651_v29, 1 }
 0x189   : > { %v1724_v4 = vpop.f32.mrf.mxu0 }
 0x18a   : > { %2152 = vmatmul.bf16.vlgmr.msra.gmra.mxu2 %v4218_v25 }
 0x18c   : > { %2335 = vmatmul.bf16.gmra.mxu0 %v4221_v35  ;;  %v1313_v37 = vpop.f32.mrf.mxu1  ;;  %v1627_v13 = vpop.f32.mrf.mxu3 }
 0x18d   : > { %v1397_v3 = vpop.f32.mrf.mxu2  ;;  %v1628_v57 = vadd.f32 %v1627_v13, %v1395_v7  ;;  %v1314_v14 = vadd.f32 %v1313_v37, %v3999_v50 }
 0x18e   : > { %v1398_v59 = vadd.f32 %v1397_v3, %v1309_v46  ;;  %v4521_v46 = vld [vmem:[#allocation5_spill] sm:$0xff] }
 0x18f   : > { %1772 = vmatmul.bf16.gmra.mxu1 %v3819_v62  ;;  %v4232_v58 = vadd.f32 %v1716_v19, %v1628_v57  ;;  %v4238_v62 = vsel %vm1882_vm4, %v1895_v9, %v1896_v43  ;;  %v1899_v13 = vrot.slane %v4521_v46, 1 }
 0x191   : > { %v1726_v33 = vpop.f32.mrf.mxu0  ;;  %2241 = vmatmul.bf16.vlgmr.msra.gmra.mxu3 %v1888_v20 }
 0x194   : > { %v1315_v28 = vpop.f32.mrf.mxu1  ;;  %v1630_v23 = vpop.f32.mrf.mxu3 }
 0x195   : > { %v1399_v45 = vpop.f32.mrf.mxu2  ;;  %v1631_v31 = vadd.f32 %v1630_v23, %v1398_v59 }
 0x196   : > { %v1400_v30 = vadd.f32 %v1399_v45, %v1311_v21 }
 0x197   : > { %v4240_v52 = vadd.f32 %v1719_v44, %v1631_v31  ;;  %v1316_v44 = vadd.f32 %v1315_v28, %v4010_v41  ;;  %v4522_v41 = vld [vmem:[#allocation20_spill] sm:$0xff] }
 0x199   : > { %v1729_v36 = vpop.f32.mrf.mxu0 }
 0x19a   : > { %2157 = vmatmul.bf16.gmra.mxu2 %v1888_v20  ;;  %v4252_v20 = vsel %vm1882_vm4, %v1898_v55, %v1899_v13 }
 0x19c   : > { %2340 = vmatmul.bf16.gmra.mxu0 %v4238_v62  ;;  %v1318_v19 = vpop.f32.mrf.mxu1  ;;  %v1632_v2 = vpop.f32.mrf.mxu3 }
 0x19d   : > { %v1402_v48 = vpop.f32.mrf.mxu2  ;;  %v1633_v24 = vadd.f32 %v1632_v2, %v1400_v30 }
 0x19e   : > { %v1403_v39 = vadd.f32 %v1402_v48, %v1314_v14  ;;  %v4525_v48 = vld [vmem:[#allocation8_spill] sm:$0xff] }
 0x19f   : > { %1777 = vmatmul.bf16.gmra.mxu1 %v3537_v47  ;;  %v4245_v7 = vadd.f32 %v1721_v63, %v1633_v24  ;;  %v1319_v63 = vadd.f32 %v1318_v19, %v4522_v41  ;;  %v1902_v24 = vrot.slane %v4525_v48, 1 }
 0x1a1   : > { %v1731_v54 = vpop.f32.mrf.mxu0  ;;  %2246 = vmatmul.bf16.gmra.mxu3 %v4201_v11 }
 0x1a4   : > { %v1320_v10 = vpop.f32.mrf.mxu1  ;;  %v1635_v50 = vpop.f32.mrf.mxu3 }
 0x1a5   : > { %v1404_v37 = vpop.f32.mrf.mxu2  ;;  %v1636_v3 = vadd.f32 %v1635_v50, %v1403_v39 }
 0x1a6   : > { %v1405_v57 = vadd.f32 %v1404_v37, %v1316_v44 }
 0x1a7   : > { %v4254_v47 = vadd.f32 %v1724_v4, %v1636_v3  ;;  %v4523_v4 = vld [vmem:[#allocation22_spill] sm:$0xff] }
 0x1a8   : > { %v1321_v30 = vadd.f32 %v1320_v10, %v4523_v4  ;;  %v4529_v4 = vld [vmem:[#allocation12_spill] sm:$0xff] }
 0x1a9   : > { %v1734_v59 = vpop.f32.mrf.mxu0 }
 0x1aa   : > { %2162 = vmatmul.bf16.gmra.mxu2 %v4201_v11  ;;  %v4524_v11 = vld [vmem:[#allocation9_spill] sm:$0xff] }
 0x1ab   : > { %v1901_v2 = vrot.slane %v4524_v11, 1 }
 0x1ac   : > { %2345 = vmatmul.bf16.gmra.mxu0 %v4252_v20  ;;  %v1323_v21 = vpop.f32.mrf.mxu1  ;;  %v1637_v28 = vpop.f32.mrf.mxu3 }
 0x1ad   : > { %v1407_v9 = vpop.f32.mrf.mxu2  ;;  %v1638_v43 = vadd.f32 %v1637_v28, %v1405_v57  ;;  %v4267_v13 = vsel %vm1882_vm4, %v1901_v2, %v1902_v24 }
 0x1ae   : > { %v1408_v23 = vadd.f32 %v1407_v9, %v1319_v63 }
 0x1af   : > { %1782 = vmatmul.bf16.gmra.mxu1 %v3651_v29  ;;  %v4260_v31 = vadd.f32 %v1726_v33, %v1638_v43  ;;  %v4526_v33 = vld [vmem:[#allocation24_spill] sm:$0xff] }
 0x1b0   : > { %v1324_v10 = vadd.f32 %v1323_v21, %v4526_v33 }
 0x1b1   : > { %v1736_v45 = vpop.f32.mrf.mxu0  ;;  %2251 = vmatmul.bf16.gmra.mxu3 %v4221_v35 }
 0x1b4   : > { %v1325_v14 = vpop.f32.mrf.mxu1  ;;  %v1640_v19 = vpop.f32.mrf.mxu3 }
 0x1b5   : > { %v1409_v39 = vpop.f32.mrf.mxu2  ;;  %v1641_v44 = vadd.f32 %v1640_v19, %v1408_v23 }
 0x1b6   : > { %v1410_v55 = vadd.f32 %v1409_v39, %v1321_v30  ;;  %v1905_v30 = vrot.slane %v4529_v4, 1 }
 0x1b7   : > { %v4269_v29 = vadd.f32 %v1729_v36, %v1641_v44  ;;  %v4527_v36 = vld [vmem:[#allocation26_spill] sm:$0xff] }
 0x1b8   : > { %v1326_v9 = vadd.f32 %v1325_v14, %v4527_v36 }
 0x1b9   : > { %v1739_v46 = vpop.f32.mrf.mxu0 }
 0x1ba   : > { %2167 = vmatmul.bf16.gmra.mxu2 %v4221_v35  ;;  %v4528_v35 = vld [vmem:[#allocation13_spill] sm:$0xff] }
 0x1bb   : > { %v1904_v23 = vrot.slane %v4528_v35, 1 }
 0x1bc   : > { %2350 = vmatmul.bf16.gmra.mxu0 %v4267_v13  ;;  %v1328_v50 = vpop.f32.mrf.mxu1  ;;  %v1642_v37 = vpop.f32.mrf.mxu3 }
 0x1bd   : > { %v1412_v3 = vpop.f32.mrf.mxu2  ;;  %v1643_v57 = vadd.f32 %v1642_v37, %v1410_v55  ;;  %v4282_v39 = vsel %vm1882_vm4, %v1904_v23, %v1905_v30  ;;  %v4533_v23 = vld [vmem:[#allocation2_spill] sm:$0xff] }
 0x1be   : > { %v1413_v41 = vadd.f32 %v1412_v3, %v1324_v10  ;;  %v1908_v4 = vrot.slane %v4533_v23, 1  ;;  %v4536_v23 = vld [vmem:[#allocation6_spill] sm:$0xff] }
 0x1bf   : > { %1787 = vmatmul.bf16.gmra.mxu1 %v4524_v11  ;;  %v4275_v28 = vadd.f32 %v1731_v54, %v1643_v57  ;;  %v4530_v54 = vld [vmem:[#allocation16_spill] sm:$0xff] }
 0x1c0   : > { %v1329_v14 = vadd.f32 %v1328_v50, %v4530_v54 }
 0x1c1   : > { %v1741_v63 = vpop.f32.mrf.mxu0  ;;  %2256 = vmatmul.bf16.gmra.mxu3 %v4238_v62 }
 0x1c4   : > { %v1330_v43 = vpop.f32.mrf.mxu1  ;;  %v1645_v21 = vpop.f32.mrf.mxu3 }
 0x1c5   : > { %v1414_v2 = vpop.f32.mrf.mxu2  ;;  %v1646_v48 = vadd.f32 %v1645_v21, %v1413_v41 }
 0x1c6   : > { %v1415_v24 = vadd.f32 %v1414_v2, %v1326_v9 }
 0x1c7   : > { %v4284_v11 = vadd.f32 %v1734_v59, %v1646_v48  ;;  %v4531_v59 = vld [vmem:[#allocation17_spill] sm:$0xff] }
 0x1c8   : > { %v1331_v41 = vadd.f32 %v1330_v43, %v4531_v59 }
 0x1c9   : > { %v1744_v19 = vpop.f32.mrf.mxu0 }
 0x1ca   : > { %2172 = vmatmul.bf16.gmra.mxu2 %v4238_v62  ;;  %v4532_v62 = vld [vmem:[#allocation4_spill] sm:$0xff] }
 0x1cb   : > { %v1907_v9 = vrot.slane %v4532_v62, 1 }
 0x1cc   : > { %2355 = vmatmul.bf16.gmra.mxu0 %v4282_v39  ;;  %v1333_v44 = vpop.f32.mrf.mxu1  ;;  %v1647_v55 = vpop.f32.mrf.mxu3 }
 0x1cd   : > { %v1417_v33 = vpop.f32.mrf.mxu2  ;;  %v1648_v10 = vadd.f32 %v1647_v55, %v1415_v24  ;;  %v4297_v24 = vsel %vm1882_vm4, %v1907_v9, %v1908_v4  ;;  %v1911_v4 = vrot.slane %v4536_v23, 1 }
 0x1ce   : > { %v1418_v37 = vadd.f32 %v1417_v33, %v1329_v14 }
 0x1cf   : > { %1792 = vmatmul.bf16.gmra.mxu1 %v4528_v35  ;;  %v4290_v57 = vadd.f32 %v1736_v45, %v1648_v10  ;;  %v4534_v45 = vld [vmem:[#allocation18_spill] sm:$0xff] }
 0x1d0   : > { %v1334_v43 = vadd.f32 %v1333_v44, %v4534_v45 }
 0x1d1   : > { %v1746_v3 = vpop.f32.mrf.mxu0  ;;  %2261 = vmatmul.bf16.gmra.mxu3 %v4252_v20 }
 0x1d4   : > { %v1335_v36 = vpop.f32.mrf.mxu1  ;;  %v1650_v50 = vpop.f32.mrf.mxu3 }
 0x1d5   : > { %v1419_v30 = vpop.f32.mrf.mxu2  ;;  %v1651_v21 = vadd.f32 %v1650_v50, %v1418_v37 }
 0x1d6   : > { %v1420_v2 = vadd.f32 %v1419_v30, %v1331_v41 }
 0x1d7   : > { %v4299_v35 = vadd.f32 %v1739_v46, %v1651_v21  ;;  %v4535_v46 = vld [vmem:[#allocation19_spill] sm:$0xff] }
 0x1d8   : > { %v1336_v41 = vadd.f32 %v1335_v36, %v4535_v46 }
 0x1d9   : > { %v1749_v48 = vpop.f32.mrf.mxu0 }
 0x1da   : > { %2177 = vmatmul.bf16.gmra.mxu2 %v4252_v20  ;;  %v1910_v20 = vrot.slane %v3673_v22, 1 }
 0x1dc   : > { %2360 = vmatmul.bf16.gmra.mxu0 %v4297_v24  ;;  %v1338_v54 = vpop.f32.mrf.mxu1  ;;  %v1652_v14 = vpop.f32.mrf.mxu3  ;;  %v4312_v45 = vsel %vm1882_vm4, %v1910_v20, %v1911_v4  ;;  %v4540_v4 = vld [vmem:[#allocation10_spill] sm:$0xff] }
 0x1dd   : > { %v1422_v55 = vpop.f32.mrf.mxu2  ;;  %v1653_v33 = vadd.f32 %v1652_v14, %v1420_v2 }
 0x1de   : > { %v1423_v10 = vadd.f32 %v1422_v55, %v1334_v43 }
 0x1df   : > { %1797 = vmatmul.bf16.gmra.mxu1 %v4532_v62  ;;  %v4305_v59 = vadd.f32 %v1741_v63, %v1653_v33  ;;  %v4537_v63 = vld [vmem:[#allocation21_spill] sm:$0xff] }
 0x1e0   : > { %v1339_v36 = vadd.f32 %v1338_v54, %v4537_v63 }
 0x1e1   : > { %v1751_v37 = vpop.f32.mrf.mxu0  ;;  %2266 = vmatmul.bf16.gmra.mxu3 %v4267_v13 }
 0x1e4   : > { %v1340_v9 = vpop.f32.mrf.mxu1  ;;  %v1655_v44 = vpop.f32.mrf.mxu3 }
 0x1e5   : > { %v1424_v50 = vpop.f32.mrf.mxu2  ;;  %v1656_v30 = vadd.f32 %v1655_v44, %v1423_v10  ;;  %v1914_v44 = vrot.slane %v4540_v4, 1 }
 0x1e6   : > { %v1425_v21 = vadd.f32 %v1424_v50, %v1336_v41 }
 0x1e7   : > { %v4314_v62 = vadd.f32 %v1744_v19, %v1656_v30  ;;  %v4539_v19 = vld [vmem:[#allocation23_spill] sm:$0xff] }
 0x1e8   : > { %v1341_v20 = vadd.f32 %v1340_v9, %v4539_v19 }
 0x1e9   : > { %v1754_v2 = vpop.f32.mrf.mxu0 }
 0x1ea   : > { %2182 = vmatmul.bf16.gmra.mxu2 %v4267_v13  ;;  %v1913_v13 = vrot.slane %v3777_v18, 1 }
 0x1ec   : > { %2365 = vmatmul.bf16.gmra.mxu0 %v4312_v45  ;;  %v1343_v43 = vpop.f32.mrf.mxu1  ;;  %v1657_v14 = vpop.f32.mrf.mxu3 }
 0x1ed   : > { %v1427_v55 = vpop.f32.mrf.mxu2  ;;  %v1658_v33 = vadd.f32 %v1657_v14, %v1425_v21 }
 0x1ee   : > { %v1428_v46 = vadd.f32 %v1427_v55, %v1339_v36  ;;  %v4327_v36 = vsel %vm1882_vm4, %v1913_v13, %v1914_v44 }
 0x1ef   : > { %1802 = vmatmul.bf16.gmra.mxu1 %v3673_v22  ;;  %v4320_v41 = vadd.f32 %v1746_v3, %v1658_v33  ;;  %v4542_v3 = vld [vmem:[#allocation25_spill] sm:$0xff] }
 0x1f0   : > { %v1344_v9 = vadd.f32 %v1343_v43, %v4542_v3 }
 0x1f1   : > { %v1756_v10 = vpop.f32.mrf.mxu0  ;;  %4538 = vst [vmem:[#allocation5_spill] sm:$0xff] %v4320_v41  ;;  %2271 = vmatmul.bf16.gmra.mxu3 %v4282_v39 }
 0x1f4   : > { %v1345_v23 = vpop.f32.mrf.mxu1  ;;  %v1660_v54 = vpop.f32.mrf.mxu3 }
 0x1f5   : > { %v1429_v50 = vpop.f32.mrf.mxu2  ;;  %v1661_v30 = vadd.f32 %v1660_v54, %v1428_v46  ;;  %v4545_v54 = vld [vmem:[#allocation14_spill] sm:$0xff] }
 0x1f6   : > { %v1430_v63 = vadd.f32 %v1429_v50, %v1341_v20  ;;  %v1917_v50 = vrot.slane %v4545_v54, 1 }
 0x1f7   : > { %v4329_v22 = vadd.f32 %v1749_v48, %v1661_v30  ;;  %v4544_v48 = vld [vmem:[#allocation27_spill] sm:$0xff] }
 0x1f8   : > { %v1346_v13 = vadd.f32 %v1345_v23, %v4544_v48 }
 0x1f9   : > { %v2331_v21 = vpop.f32.mrf.mxu0  ;;  %4541 = vst [vmem:[#allocation20_spill] sm:$0xff] %v4329_v22 }
 0x1fa   : > { %2187 = vmatmul.bf16.gmra.mxu2 %v4282_v39  ;;  %v1916_v39 = vrot.slane %v3880_v56, 1 }
 0x1fc   : > { %2370 = vmatmul.bf16.gmra.mxu0 %v4327_v36  ;;  %v1768_v14 = vpop.f32.mrf.mxu1  ;;  %v1662_v55 = vpop.f32.mrf.mxu3 }
 0x1fd   : > { %v1432_v33 = vpop.f32.mrf.mxu2  ;;  %v1663_v19 = vadd.f32 %v1662_v55, %v1430_v63 }
 0x1fe   : > { %v1433_v4 = vadd.f32 %v1432_v33, %v1344_v9  ;;  %v4342_v9 = vsel %vm1882_vm4, %v1916_v39, %v1917_v50 }
 0x1ff   : > { %1807 = vmatmul.bf16.gmra.mxu1 %v3777_v18  ;;  %v4335_v20 = vadd.f32 %v1751_v37, %v1663_v19 }
 0x201   : > { %v2333_v46 = vpop.f32.mrf.mxu0  ;;  %4543 = vst [vmem:[#allocation22_spill] sm:$0xff] %v4335_v20  ;;  %2276 = vmatmul.bf16.gmra.mxu3 %v4297_v24 }
 0x204   : > { %v1770_v44 = vpop.f32.mrf.mxu1  ;;  %v1665_v43 = vpop.f32.mrf.mxu3 }
 0x205   : > { %v1434_v30 = vpop.f32.mrf.mxu2  ;;  %v1666_v3 = vadd.f32 %v1665_v43, %v1433_v4 }
 0x206   : > { %v1435_v22 = vadd.f32 %v1434_v30, %v1346_v13  ;;  %v1919_v13 = vrot.slane %v3560_v60, 1 }
 0x207   : > { %v4344_v18 = vadd.f32 %v1754_v2, %v1666_v3  ;;  %v4548_v2 = vld [vmem:[#allocation3_spill] sm:$0xff] }
 0x208   : > { %v1920_v39 = vrot.slane %v4548_v2, 1 }
 0x209   : > { %v2336_v63 = vpop.f32.mrf.mxu0  ;;  %4546 = vst [vmem:[#allocation9_spill] sm:$0xff] %v4344_v18 }
 0x20a   : > { %2192 = vmatmul.bf16.gmra.mxu2 %v4297_v24  ;;  %v4355_v30 = vsel %vm1882_vm4, %v1919_v13, %v1920_v39 }
 0x20c   : > { %2375 = vmatmul.bf16.gmra.mxu0 %v4342_v9  ;;  %v1773_v37 = vpop.f32.mrf.mxu1  ;;  %v1667_v23 = vpop.f32.mrf.mxu3 }
 0x20d   : > { %v2153_v55 = vpop.f32.mrf.mxu2  ;;  %v1668_v33 = vadd.f32 %v1667_v23, %v1435_v22  ;;  %v4549_v22 = vld [vmem:[#allocation28_spill] sm:$0xff] }
 0x20e   : > { %v1769_v3 = vadd.f32 %v1768_v14, %v4549_v22 }
 0x20f   : > { %1812 = vmatmul.bf16.gmra.mxu1 %v3880_v56  ;;  %v4349_v48 = vadd.f32 %v1756_v10, %v1668_v33 }
 0x211   : > { %v2338_v19 = vpop.f32.mrf.mxu0  ;;  %4547 = vst [vmem:[#allocation8_spill] sm:$0xff] %v4349_v48  ;;  %2281 = vmatmul.bf16.gmra.mxu3 %v4312_v45 }
 0x214   : > { %v1775_v4 = vpop.f32.mrf.mxu1  ;;  %v2242_v54 = vpop.f32.mrf.mxu3 }
 0x215   : > { %v2155_v24 = vpop.f32.mrf.mxu2  ;;  %v2243_v50 = vadd.f32 %v2242_v54, %v2153_v55  ;;  %v1771_v55 = vadd.f32 %v1770_v44, %v4087_v49 }
 0x217   : > { %v2332_v56 = vadd.f32 %v2331_v21, %v2243_v50  ;;  %v1922_v21 = vrot.slane %v3686_v51, 1 }
 0x219   : > { %v2341_v43 = vpop.f32.mrf.mxu0  ;;  %v2411_v2 = vadd.f32 %v2332_v56, %v1769_v3  ;;  %v1774_v3 = vadd.f32 %v1773_v37, %v4094_v15  ;;  %v1776_v15 = vadd.f32 %v1775_v4, %v4103_v32 }
 0x21a   : > { %2197 = vmatmul.bf16.gmra.mxu2 %v4312_v45 }
 0x21b   : > { %v2480_v45 = vmul.f32 %v2411_v2, %v2411_v2 }
 0x21c   : > { %2380 = vmatmul.bf16.gmra.mxu0 %v4355_v30  ;;  %v1778_v10 = vpop.f32.mrf.mxu1  ;;  %v2244_v23 = vpop.f32.mrf.mxu3 }
 0x21d   : > { %v2158_v33 = vpop.f32.mrf.mxu2  ;;  %v2245_v48 = vadd.f32 %v2244_v23, %v2155_v24  ;;  %v1779_v32 = vadd.f32 %v1778_v10, %v4125_v53 }
 0x21f   : > { %1817 = vmatmul.bf16.gmra.mxu1 %v3560_v60  ;;  %v2334_v54 = vadd.f32 %v2333_v46, %v2245_v48  ;;  %v4550_v46 = vld [vmem:[#allocation7_spill] sm:$0xff] }
 0x220   : > { %v1923_v44 = vrot.slane %v4550_v46, 1 }
 0x221   : > { %v4362_v13 = vpop.f32.mrf.mxu0  ;;  %v2412_v39 = vadd.f32 %v2334_v54, %v1771_v55  ;;  %2286 = vmatmul.bf16.gmra.mxu3 %v4327_v36 }
 0x222   : > { %v4377_v54 = vsel %vm1882_vm4, %v1922_v21, %v1923_v44 }
 0x223   : > { %v2443_v60 = vadd.f32 %v2412_v39, %v2411_v2  ;;  %v2481_v14 = vmul.f32 %v2412_v39, %v2412_v39  ;;  %v3239_v24 = vpack.c.bf16 %v2412_v39, %v2411_v2 }
 0x224   : > { %v1780_v49 = vpop.f32.mrf.mxu1  ;;  %v2247_v48 = vpop.f32.mrf.mxu3 }
 0x225   : > { %v2160_v50 = vpop.f32.mrf.mxu2  ;;  %v2512_v56 = vadd.f32 %v2481_v14, %v2480_v45  ;;  %3240 = vst [vmem:[%s4370_s30] sm:$0xff] %v3239_v24   ;;  %v2248_v22 = vadd.f32 %v2247_v48, %v2158_v33  ;;  %v4551_v48 = vld [vmem:[#allocation11_spill] sm:$0xff]  ;;  %v1781_v53 = vadd.f32 %v1780_v49, %v4136_v27 }
 0x227   : > { %v2337_v23 = vadd.f32 %v2336_v63, %v2248_v22  ;;  %v1926_v22 = vrot.slane %v4551_v48, 1 }
 0x229   : > { %v2346_v55 = vpop.f32.mrf.mxu0  ;;  %v2413_v18 = vadd.f32 %v2337_v23, %v1774_v3 }
 0x22a   : > { %2202 = vmatmul.bf16.gmra.mxu2 %v4327_v36  ;;  %v1925_v36 = vrot.slane %v3800_v26, 1 }
 0x22b   : > { %v2444_v2 = vadd.f32 %v2443_v60, %v2413_v18  ;;  %v2482_v39 = vmul.f32 %v2413_v18, %v2413_v18 }
 0x22c   : > { %2385 = vmatmul.bf16.gmra.mxu0 %v4377_v54  ;;  %v1783_v46 = vpop.f32.mrf.mxu1  ;;  %v2249_v20 = vpop.f32.mrf.mxu3  ;;  %v4389_v3 = vsel %vm1882_vm4, %v1925_v36, %v1926_v22 }
 0x22d   : > { %v2163_v41 = vpop.f32.mrf.mxu2  ;;  %v2513_v45 = vadd.f32 %v2512_v56, %v2482_v39  ;;  %v2250_v14 = vadd.f32 %v2249_v20, %v2160_v50  ;;  %v1784_v27 = vadd.f32 %v1783_v46, %v4142_v42 }
 0x22f   : > { %1822 = vmatmul.bf16.gmra.mxu1 %v3686_v51  ;;  %v2339_v63 = vadd.f32 %v2338_v19, %v2250_v14 }
 0x231   : > { %v2348_v37 = vpop.f32.mrf.mxu0  ;;  %v2414_v33 = vadd.f32 %v2339_v63, %v1776_v15  ;;  %2291 = vmatmul.bf16.gmra.mxu3 %v4342_v9 }
 0x233   : > { %v2445_v21 = vadd.f32 %v2444_v2, %v2414_v33  ;;  %v2483_v60 = vmul.f32 %v2414_v33, %v2414_v33  ;;  %v3244_v24 = vpack.c.bf16 %v2414_v33, %v2413_v18 }
 0x234   : > { %v1785_v44 = vpop.f32.mrf.mxu1  ;;  %v2252_v56 = vpop.f32.mrf.mxu3 }
 0x235   : > { %v2165_v20 = vpop.f32.mrf.mxu2  ;;  %v2514_v50 = vadd.f32 %v2513_v45, %v2483_v60  ;;  %3331 = vst [vmem:[%s4370_s30 + $0x8] sm:$0xff] %v3244_v24   ;;  %v2253_v51 = vadd.f32 %v2252_v56, %v2163_v41  ;;  %v4552_v24 = vld [vmem:[#allocation15_spill] sm:$0xff]  ;;  %v1786_v42 = vadd.f32 %v1785_v44, %v4149_v17 }
 0x236   : > { %v1929_v48 = vrot.slane %v4552_v24, 1 }
 0x237   : > { %v2342_v19 = vadd.f32 %v2341_v43, %v2253_v51 }
 0x239   : > { %v2351_v4 = vpop.f32.mrf.mxu0  ;;  %v2415_v23 = vadd.f32 %v2342_v19, %v1779_v32 }
 0x23a   : > { %2207 = vmatmul.bf16.gmra.mxu2 %v4342_v9  ;;  %v1928_v9 = vrot.slane %v3907_v38, 1 }
 0x23b   : > { %v2446_v18 = vadd.f32 %v2445_v21, %v2415_v23  ;;  %v2484_v2 = vmul.f32 %v2415_v23, %v2415_v23 }
 0x23c   : > { %2390 = vmatmul.bf16.gmra.mxu0 %v4389_v3  ;;  %v1788_v39 = vpop.f32.mrf.mxu1  ;;  %v2254_v14 = vpop.f32.mrf.mxu3 }
 0x23d   : > { %v2168_v15 = vpop.f32.mrf.mxu2  ;;  %v2515_v45 = vadd.f32 %v2514_v50, %v2484_v2  ;;  %v2255_v63 = vadd.f32 %v2254_v14, %v2165_v20  ;;  %v4402_v50 = vsel %vm1882_vm4, %v1928_v9, %v1929_v48  ;;  %v1932_v9 = vrot.slane %v4178_v61, 1 }
 0x23e   : > { %v1789_v17 = vadd.f32 %v1788_v39, %v4170_v16 }
 0x23f   : > { %1827 = vmatmul.bf16.gmra.mxu1 %v3800_v26  ;;  %v2344_v41 = vadd.f32 %v4362_v13, %v2255_v63 }
 0x241   : > { %v2353_v43 = vpop.f32.mrf.mxu0  ;;  %v2416_v10 = vadd.f32 %v2344_v41, %v1781_v53  ;;  %2296 = vmatmul.bf16.gmra.mxu3 %v4355_v30 }
 0x243   : > { %v2447_v33 = vadd.f32 %v2446_v18, %v2416_v10  ;;  %v2485_v36 = vmul.f32 %v2416_v10, %v2416_v10  ;;  %v3249_v21 = vpack.c.bf16 %v2416_v10, %v2415_v23 }
 0x244   : > { %v1790_v60 = vpop.f32.mrf.mxu1  ;;  %v2257_v22 = vpop.f32.mrf.mxu3 }
 0x245   : > { %v2170_v56 = vpop.f32.mrf.mxu2  ;;  %v2516_v20 = vadd.f32 %v2515_v45, %v2485_v36  ;;  %3332 = vst [vmem:[%s4370_s30 + $0x10] sm:$0xff] %v3249_v21   ;;  %v2258_v26 = vadd.f32 %v2257_v22, %v2168_v15  ;;  %v1791_v16 = vadd.f32 %v1790_v60, %v4184_v1 }
 0x247   : > { %v2347_v13 = vadd.f32 %v2346_v55, %v2258_v26 }
 0x249   : > { %v2356_v49 = vpop.f32.mrf.mxu0  ;;  %v2417_v51 = vadd.f32 %v2347_v13, %v1784_v27 }
 0x24a   : > { %2212 = vmatmul.bf16.gmra.mxu2 %v4355_v30  ;;  %v1931_v30 = vrot.slane %v4167_v8, 1 }
 0x24b   : > { %v2448_v32 = vadd.f32 %v2447_v33, %v2417_v51  ;;  %v2486_v19 = vmul.f32 %v2417_v51, %v2417_v51 }
 0x24c   : > { %2395 = vmatmul.bf16.gmra.mxu0 %v4402_v50  ;;  %v1793_v23 = vpop.f32.mrf.mxu1  ;;  %v2259_v18 = vpop.f32.mrf.mxu3  ;;  %v4414_v24 = vsel %vm1882_vm4, %v1931_v30, %v1932_v9 }
 0x24d   : > { %v2173_v2 = vpop.f32.mrf.mxu2  ;;  %v2517_v14 = vadd.f32 %v2516_v20, %v2486_v19  ;;  %v2260_v45 = vadd.f32 %v2259_v18, %v2170_v56 }
 0x24f   : > { %1832 = vmatmul.bf16.gmra.mxu1 %v3907_v38  ;;  %v2349_v55 = vadd.f32 %v2348_v37, %v2260_v45 }
 0x251   : > { %v2358_v46 = vpop.f32.mrf.mxu0  ;;  %v2418_v15 = vadd.f32 %v2349_v55, %v1786_v42  ;;  %2301 = vmatmul.bf16.gmra.mxu3 %v4377_v54  ;;  %v1794_v55 = vadd.f32 %v1793_v23, %v4190_v0 }
 0x253   : > { %v2449_v63 = vadd.f32 %v2448_v32, %v2418_v15  ;;  %v2487_v53 = vmul.f32 %v2418_v15, %v2418_v15  ;;  %v3254_v41 = vpack.c.bf16 %v2418_v15, %v2417_v51 }
 0x254   : > { %v1795_v10 = vpop.f32.mrf.mxu1  ;;  %v2262_v33 = vpop.f32.mrf.mxu3 }
 0x255   : > { %v2175_v36 = vpop.f32.mrf.mxu2  ;;  %v2518_v21 = vadd.f32 %v2517_v14, %v2487_v53  ;;  %3333 = vst [vmem:[%s4370_s30 + $0x18] sm:$0xff] %v3254_v41   ;;  %v2263_v38 = vadd.f32 %v2262_v33, %v2173_v2  ;;  %v1796_v33 = vadd.f32 %v1795_v10, %v4194_v12 }
 0x257   : > { %v2352_v37 = vadd.f32 %v2351_v4, %v2263_v38 }
 0x259   : > { %v2361_v44 = vpop.f32.mrf.mxu0  ;;  %v2419_v48 = vadd.f32 %v2352_v37, %v1789_v17 }
 0x25a   : > { %2217 = vmatmul.bf16.gmra.mxu2 %v4377_v54 }
 0x25b   : > { %v2450_v22 = vadd.f32 %v2449_v63, %v2419_v48  ;;  %v2488_v56 = vmul.f32 %v2419_v48, %v2419_v48 }
 0x25c   : > { %2400 = vmatmul.bf16.gmra.mxu0 %v4414_v24  ;;  %v1798_v61 = vpop.f32.mrf.mxu1  ;;  %v2264_v20 = vpop.f32.mrf.mxu3 }
 0x25d   : > { %v2178_v26 = vpop.f32.mrf.mxu2  ;;  %v2519_v27 = vadd.f32 %v2518_v21, %v2488_v56  ;;  %v2265_v13 = vadd.f32 %v2264_v20, %v2175_v36 }
 0x25f   : > { %1837 = vmatmul.bf16.gmra.mxu1 %v4167_v8  ;;  %v2354_v4 = vadd.f32 %v2353_v43, %v2265_v13 }
 0x261   : > { %v2363_v39 = vpop.f32.mrf.mxu0  ;;  %v2420_v51 = vadd.f32 %v2354_v4, %v1791_v16  ;;  %2306 = vmatmul.bf16.gmra.mxu3 %v4389_v3 }
 0x263   : > { %v2451_v54 = vadd.f32 %v2450_v22, %v2420_v51  ;;  %v2489_v32 = vmul.f32 %v2420_v51, %v2420_v51  ;;  %v3259_v19 = vpack.c.bf16 %v2420_v51, %v2419_v48  ;;  %v1799_v22 = vadd.f32 %v1798_v61, %v4203_v34 }
 0x264   : > { %v1800_v18 = vpop.f32.mrf.mxu1  ;;  %v2267_v2 = vpop.f32.mrf.mxu3 }
 0x265   : > { %v2180_v14 = vpop.f32.mrf.mxu2  ;;  %v2520_v45 = vadd.f32 %v2519_v27, %v2489_v32  ;;  %3334 = vst [vmem:[%s4370_s30 + $0x20] sm:$0xff] %v3259_v19   ;;  %v2268_v42 = vadd.f32 %v2267_v2, %v2178_v26  ;;  %v1801_v4 = vadd.f32 %v1800_v18, %v4209_v40 }
 0x267   : > { %v2357_v15 = vadd.f32 %v2356_v49, %v2268_v42 }
 0x269   : > { %v2366_v8 = vpop.f32.mrf.mxu0  ;;  %v2421_v30 = vadd.f32 %v2357_v15, %v1794_v55 }
 0x26a   : > { %2222 = vmatmul.bf16.gmra.mxu2 %v4389_v3 }
 0x26b   : > { %v2452_v1 = vadd.f32 %v2451_v54, %v2421_v30  ;;  %v2490_v43 = vmul.f32 %v2421_v30, %v2421_v30 }
 0x26c   : > { %2405 = vmatmul.bf16.gmra.mxu0 %v4218_v25  ;;  %v1803_v60 = vpop.f32.mrf.mxu1  ;;  %v2269_v63 = vpop.f32.mrf.mxu3 }
 0x26d   : > { %v2183_v53 = vpop.f32.mrf.mxu2  ;;  %v2521_v41 = vadd.f32 %v2520_v45, %v2490_v43  ;;  %v2270_v9 = vadd.f32 %v2269_v63, %v2180_v14  ;;  %v1804_v42 = vadd.f32 %v1803_v60, %v4223_v6 }
 0x26f   : > { %1842 = vmatmul.bf16.gmra.mxu1 %v3445_v5  ;;  %v2359_v0 = vadd.f32 %v2358_v46, %v2270_v9 }
 0x271   : > { %v2368_v49 = vpop.f32.mrf.mxu0  ;;  %v2422_v23 = vadd.f32 %v2359_v0, %v1796_v33  ;;  %2311 = vmatmul.bf16.gmra.mxu3 %v4402_v50 }
 0x273   : > { %v2453_v3 = vadd.f32 %v2452_v1, %v2422_v23  ;;  %v2491_v36 = vmul.f32 %v2422_v23, %v2422_v23  ;;  %v3264_v25 = vpack.c.bf16 %v2422_v23, %v2421_v30 }
 0x274   : > { %v1805_v21 = vpop.f32.mrf.mxu1  ;;  %v2272_v38 = vpop.f32.mrf.mxu3 }
 0x275   : > { %v2185_v17 = vpop.f32.mrf.mxu2  ;;  %v2522_v37 = vadd.f32 %v2521_v41, %v2491_v36  ;;  %3335 = vst [vmem:[%s4370_s30 + $0x28] sm:$0xff] %v3264_v25   ;;  %v2273_v48 = vadd.f32 %v2272_v38, %v2183_v53  ;;  %v1806_v53 = vadd.f32 %v1805_v21, %v4232_v58 }
 0x277   : > { %v2362_v56 = vadd.f32 %v2361_v44, %v2273_v48 }
 0x279   : > { %v2371_v5 = vpop.f32.mrf.mxu0  ;;  %v2423_v20 = vadd.f32 %v2362_v56, %v1799_v22 }
 0x27a   : > { %2227 = vmatmul.bf16.gmra.mxu2 %v4402_v50 }
 0x27b   : > { %v2454_v12 = vadd.f32 %v2453_v3, %v2423_v20  ;;  %v2492_v46 = vmul.f32 %v2423_v20, %v2423_v20 }
 0x27c   : > { %v1808_v10 = vpop.f32.mrf.mxu1  ;;  %v2274_v26 = vpop.f32.mrf.mxu3 }
 0x27d   : > { %v2188_v27 = vpop.f32.mrf.mxu2  ;;  %v2523_v13 = vadd.f32 %v2522_v37, %v2492_v46  ;;  %v2275_v16 = vadd.f32 %v2274_v26, %v2185_v17  ;;  %v1809_v38 = vadd.f32 %v1808_v10, %v4240_v52 }
 0x27f   : > { %v2364_v51 = vadd.f32 %v2363_v39, %v2275_v16 }
 0x281   : > { %v2424_v54 = vadd.f32 %v2364_v51, %v1801_v4  ;;  %2316 = vmatmul.bf16.gmra.mxu3 %v4414_v24  ;;  %v2373_v34 = vpop.f32.mrf.mxu0 }
 0x283   : > { %v2455_v44 = vadd.f32 %v2454_v12, %v2424_v54  ;;  %v2493_v61 = vmul.f32 %v2424_v54, %v2424_v54  ;;  %v3269_v32 = vpack.c.bf16 %v2424_v54, %v2423_v20 }
 0x284   : > { %v1810_v19 = vpop.f32.mrf.mxu1  ;;  %v2277_v50 = vpop.f32.mrf.mxu3 }
 0x285   : > { %v2190_v2 = vpop.f32.mrf.mxu2  ;;  %v2524_v14 = vadd.f32 %v2523_v13, %v2493_v61  ;;  %3336 = vst [vmem:[%s4370_s30 + $0x30] sm:$0xff] %v3269_v32   ;;  %v2278_v45 = vadd.f32 %v2277_v50, %v2188_v27  ;;  %v1811_v12 = vadd.f32 %v1810_v19, %v4245_v7 }
 0x287   : > { %v2367_v55 = vadd.f32 %v2366_v8, %v2278_v45 }
 0x289   : > { %v2425_v15 = vadd.f32 %v2367_v55, %v1804_v42  ;;  %v2376_v18 = vpop.f32.mrf.mxu0 }
 0x28b   : > { %v2456_v30 = vadd.f32 %v2455_v44, %v2425_v15  ;;  %v2494_v40 = vmul.f32 %v2425_v15, %v2425_v15 }
 0x28c   : > { %v1813_v39 = vpop.f32.mrf.mxu1  ;;  %v2279_v24 = vpop.f32.mrf.mxu3 }
 0x28d   : > { %v2193_v1 = vpop.f32.mrf.mxu2  ;;  %v2525_v43 = vadd.f32 %v2524_v14, %v2494_v40  ;;  %v2280_v63 = vadd.f32 %v2279_v24, %v2190_v2  ;;  %v1814_v54 = vadd.f32 %v1813_v39, %v4254_v47 }
 0x28f   : > { %v2369_v41 = vadd.f32 %v2368_v49, %v2280_v63 }
 0x291   : > { %v2426_v9 = vadd.f32 %v2369_v41, %v1806_v53  ;;  %v2378_v25 = vpop.f32.mrf.mxu0 }
 0x293   : > { %v2457_v33 = vadd.f32 %v2456_v30, %v2426_v9  ;;  %v2495_v0 = vmul.f32 %v2426_v9, %v2426_v9  ;;  %v3274_v23 = vpack.c.bf16 %v2426_v9, %v2425_v15 }
 0x294   : > { %v1815_v3 = vpop.f32.mrf.mxu1  ;;  %v2282_v6 = vpop.f32.mrf.mxu3 }
 0x295   : > { %v2195_v8 = vpop.f32.mrf.mxu2  ;;  %v2526_v60 = vadd.f32 %v2525_v43, %v2495_v0  ;;  %3337 = vst [vmem:[%s4370_s30 + $0x38] sm:$0xff] %v3274_v23   ;;  %v2283_v36 = vadd.f32 %v2282_v6, %v2193_v1  ;;  %v1816_v42 = vadd.f32 %v1815_v3, %v4260_v31 }
 0x297   : > { %v2372_v17 = vadd.f32 %v2371_v5, %v2283_v36 }
 0x299   : > { %v2427_v37 = vadd.f32 %v2372_v17, %v1809_v38  ;;  %v2381_v26 = vpop.f32.mrf.mxu0 }
 0x29b   : > { %v2458_v48 = vadd.f32 %v2457_v33, %v2427_v37  ;;  %v2496_v22 = vmul.f32 %v2427_v37, %v2427_v37 }
 0x29c   : > { %v2284_v58 = vpop.f32.mrf.mxu3  ;;  %v1818_v20 = vpop.f32.mrf.mxu1 }
 0x29d   : > { %v2198_v49 = vpop.f32.mrf.mxu2  ;;  %v2527_v21 = vadd.f32 %v2526_v60, %v2496_v22  ;;  %v2285_v56 = vadd.f32 %v2284_v58, %v2195_v8  ;;  %v1819_v53 = vadd.f32 %v1818_v20, %v4269_v29 }
 0x29f   : > { %v2374_v46 = vadd.f32 %v2373_v34, %v2285_v56 }
 0x2a1   : > { %v2428_v27 = vadd.f32 %v2374_v46, %v1811_v12  ;;  %v2383_v50 = vpop.f32.mrf.mxu0 }
 0x2a3   : > { %v2459_v13 = vadd.f32 %v2458_v48, %v2428_v27  ;;  %v2497_v16 = vmul.f32 %v2428_v27, %v2428_v27  ;;  %v3279_v4 = vpack.c.bf16 %v2428_v27, %v2427_v37 }
 0x2a4   : > { %v2287_v51 = vpop.f32.mrf.mxu3  ;;  %v1820_v61 = vpop.f32.mrf.mxu1 }
 0x2a5   : > { %v2200_v52 = vpop.f32.mrf.mxu2  ;;  %v2528_v5 = vadd.f32 %v2527_v21, %v2497_v16  ;;  %3338 = vst [vmem:[%s4370_s30 + $0x40] sm:$0xff] %v3279_v4   ;;  %v2288_v10 = vadd.f32 %v2287_v51, %v2198_v49  ;;  %v1821_v36 = vadd.f32 %v1820_v61, %v4275_v28 }
 0x2a7   : > { %v2377_v44 = vadd.f32 %v2376_v18, %v2288_v10 }
 0x2a9   : > { %v2429_v32 = vadd.f32 %v2377_v44, %v1814_v54  ;;  %v2386_v47 = vpop.f32.mrf.mxu0 }
 0x2ab   : > { %v2460_v2 = vadd.f32 %v2459_v13, %v2429_v32  ;;  %v2498_v14 = vmul.f32 %v2429_v32, %v2429_v32 }
 0x2ac   : > { %v2289_v7 = vpop.f32.mrf.mxu3  ;;  %v1823_v30 = vpop.f32.mrf.mxu1 }
 0x2ad   : > { %v2203_v34 = vpop.f32.mrf.mxu2  ;;  %v2529_v19 = vadd.f32 %v2528_v5, %v2498_v14  ;;  %v2290_v45 = vadd.f32 %v2289_v7, %v2200_v52  ;;  %v1824_v56 = vadd.f32 %v1823_v30, %v4284_v11 }
 0x2af   : > { %v2379_v55 = vadd.f32 %v2378_v25, %v2290_v45 }
 0x2b1   : > { %v2430_v15 = vadd.f32 %v2379_v55, %v1816_v42  ;;  %v2388_v60 = vpop.f32.mrf.mxu0 }
 0x2b3   : > { %v2461_v40 = vadd.f32 %v2460_v2, %v2430_v15  ;;  %v2499_v24 = vmul.f32 %v2430_v15, %v2430_v15  ;;  %v3284_v1 = vpack.c.bf16 %v2430_v15, %v2429_v32 }
 0x2b4   : > { %v2292_v39 = vpop.f32.mrf.mxu3  ;;  %v1825_v31 = vpop.f32.mrf.mxu1 }
 0x2b5   : > { %v2205_v18 = vpop.f32.mrf.mxu2  ;;  %v2530_v43 = vadd.f32 %v2529_v19, %v2499_v24  ;;  %3339 = vst [vmem:[%s4370_s30 + $0x48] sm:$0xff] %v3284_v1   ;;  %v2293_v63 = vadd.f32 %v2292_v39, %v2203_v34  ;;  %v1826_v51 = vadd.f32 %v1825_v31, %v4290_v57 }
 0x2b7   : > { %v2382_v41 = vadd.f32 %v2381_v26, %v2293_v63 }
 0x2b9   : > { %v2431_v9 = vadd.f32 %v2382_v41, %v1819_v53  ;;  %v2391_v12 = vpop.f32.mrf.mxu0 }
 0x2bb   : > { %v2462_v33 = vadd.f32 %v2461_v40, %v2431_v9  ;;  %v2500_v0 = vmul.f32 %v2431_v9, %v2431_v9 }
 0x2bc   : > { %v2294_v23 = vpop.f32.mrf.mxu3  ;;  %v1828_v21 = vpop.f32.mrf.mxu1 }
 0x2bd   : > { %v2208_v3 = vpop.f32.mrf.mxu2  ;;  %v2531_v6 = vadd.f32 %v2530_v43, %v2500_v0  ;;  %v2295_v8 = vadd.f32 %v2294_v23, %v2205_v18  ;;  %v1829_v7 = vadd.f32 %v1828_v21, %v4299_v35 }
 0x2bf   : > { %v2384_v25 = vadd.f32 %v2383_v50, %v2295_v8 }
 0x2c1   : > { %v2432_v38 = vadd.f32 %v2384_v25, %v1821_v36  ;;  %v2393_v54 = vpop.f32.mrf.mxu0 }
 0x2c3   : > { %v2463_v17 = vadd.f32 %v2462_v33, %v2432_v38  ;;  %v2501_v37 = vmul.f32 %v2432_v38, %v2432_v38  ;;  %v3289_v48 = vpack.c.bf16 %v2432_v38, %v2431_v9 }
 0x2c4   : > { %v2297_v22 = vpop.f32.mrf.mxu3  ;;  %v1830_v5 = vpop.f32.mrf.mxu1 }
 0x2c5   : > { %v2210_v29 = vpop.f32.mrf.mxu2  ;;  %v2532_v58 = vadd.f32 %v2531_v6, %v2501_v37  ;;  %3340 = vst [vmem:[%s4370_s30 + $0x50] sm:$0xff] %v3289_v48   ;;  %v2298_v49 = vadd.f32 %v2297_v22, %v2208_v3  ;;  %v1831_v1 = vadd.f32 %v1830_v5, %v4305_v59 }
 0x2c7   : > { %v2387_v20 = vadd.f32 %v2386_v47, %v2298_v49 }
 0x2c9   : > { %v2433_v46 = vadd.f32 %v2387_v20, %v1824_v56  ;;  %v2396_v57 = vpop.f32.mrf.mxu0 }
 0x2cb   : > { %v2464_v26 = vadd.f32 %v2463_v17, %v2433_v46  ;;  %v2502_v27 = vmul.f32 %v2433_v46, %v2433_v46  ;;  %v4553_v17 = vld [vmem:[#allocation5_spill] sm:$0xff] }
 0x2cc   : > { %v2299_v28 = vpop.f32.mrf.mxu3  ;;  %v1833_v45 = vpop.f32.mrf.mxu1 }
 0x2cd   : > { %v2213_v13 = vpop.f32.mrf.mxu2  ;;  %v2533_v16 = vadd.f32 %v2532_v58, %v2502_v27  ;;  %v2300_v4 = vadd.f32 %v2299_v28, %v2210_v29  ;;  %v1834_v31 = vadd.f32 %v1833_v45, %v4314_v62 }
 0x2cf   : > { %v2389_v52 = vadd.f32 %v2388_v60, %v2300_v4 }
 0x2d1   : > { %v2434_v10 = vadd.f32 %v2389_v52, %v1826_v51  ;;  %v2398_v0 = vpop.f32.mrf.mxu0 }
 0x2d3   : > { %v2465_v44 = vadd.f32 %v2464_v26, %v2434_v10  ;;  %v2503_v61 = vmul.f32 %v2434_v10, %v2434_v10  ;;  %v3294_v32 = vpack.c.bf16 %v2434_v10, %v2433_v46  ;;  %v4554_v46 = vld [vmem:[#allocation20_spill] sm:$0xff] }
 0x2d4   : > { %v2302_v11 = vpop.f32.mrf.mxu3  ;;  %v1835_v53 = vpop.f32.mrf.mxu1 }
 0x2d5   : > { %v2215_v50 = vpop.f32.mrf.mxu2  ;;  %v2534_v2 = vadd.f32 %v2533_v16, %v2503_v61  ;;  %3341 = vst [vmem:[%s4370_s30 + $0x58] sm:$0xff] %v3294_v32   ;;  %v2303_v14 = vadd.f32 %v2302_v11, %v2213_v13  ;;  %v1836_v37 = vadd.f32 %v1835_v53, %v4553_v17  ;;  %v4557_v53 = vld [vmem:[#allocation8_spill] sm:$0xff] }
 0x2d7   : > { %v2392_v34 = vadd.f32 %v2391_v12, %v2303_v14 }
 0x2d9   : > { %v2435_v19 = vadd.f32 %v2392_v34, %v1829_v7  ;;  %v2401_v22 = vpop.f32.mrf.mxu0 }
 0x2db   : > { %v2466_v42 = vadd.f32 %v2465_v44, %v2435_v19  ;;  %v2504_v55 = vmul.f32 %v2435_v19, %v2435_v19 }
 0x2dc   : > { %v2304_v15 = vpop.f32.mrf.mxu3  ;;  %v1838_v38 = vpop.f32.mrf.mxu1 }
 0x2dd   : > { %v2218_v30 = vpop.f32.mrf.mxu2  ;;  %v2535_v40 = vadd.f32 %v2534_v2, %v2504_v55  ;;  %v2305_v24 = vadd.f32 %v2304_v15, %v2215_v50  ;;  %v1839_v26 = vadd.f32 %v1838_v38, %v4554_v46  ;;  %v4556_v55 = vld [vmem:[#allocation9_spill] sm:$0xff] }
 0x2df   : > { %v2394_v47 = vadd.f32 %v2393_v54, %v2305_v24  ;;  %v4555_v54 = vld [vmem:[#allocation22_spill] sm:$0xff] }
 0x2e1   : > { %v2436_v39 = vadd.f32 %v2394_v47, %v1831_v1  ;;  %v2403_v16 = vpop.f32.mrf.mxu0 }
 0x2e3   : > { %v2467_v18 = vadd.f32 %v2466_v42, %v2436_v39  ;;  %v2505_v43 = vmul.f32 %v2436_v39, %v2436_v39  ;;  %v3299_v63 = vpack.c.bf16 %v2436_v39, %v2435_v19 }
 0x2e4   : > { %v2307_v35 = vpop.f32.mrf.mxu3  ;;  %v1840_v28 = vpop.f32.mrf.mxu1 }
 0x2e5   : > { %v2220_v41 = vpop.f32.mrf.mxu2  ;;  %v2536_v9 = vadd.f32 %v2535_v40, %v2505_v43  ;;  %3342 = vst [vmem:[%s4370_s30 + $0x60] sm:$0xff] %v3299_v63   ;;  %v2308_v33 = vadd.f32 %v2307_v35, %v2218_v30  ;;  %v1841_v44 = vadd.f32 %v1840_v28, %v4555_v54 }
 0x2e7   : > { %v2397_v23 = vadd.f32 %v2396_v57, %v2308_v33 }
 0x2e9   : > { %v2437_v3 = vadd.f32 %v2397_v23, %v1834_v31  ;;  %v2406_v34 = vpop.f32.mrf.mxu0 }
 0x2eb   : > { %v2468_v6 = vadd.f32 %v2467_v18, %v2437_v3  ;;  %v2506_v8 = vmul.f32 %v2437_v3, %v2437_v3 }
 0x2ec   : > { %v2309_v59 = vpop.f32.mrf.mxu3  ;;  %v1843_v50 = vpop.f32.mrf.mxu1 }
 0x2ed   : > { %v2223_v60 = vpop.f32.mrf.mxu2  ;;  %v2537_v36 = vadd.f32 %v2536_v9, %v2506_v8  ;;  %v2310_v25 = vadd.f32 %v2309_v59, %v2220_v41  ;;  %v1844_v57 = vadd.f32 %v1843_v50, %v4556_v55 }
 0x2ef   : > { %v2399_v48 = vadd.f32 %v2398_v0, %v2310_v25 }
 0x2f1   : > { %v2438_v29 = vadd.f32 %v2399_v48, %v1836_v37  ;;  %v2408_v63 = vpop.f32.mrf.mxu0 }
 0x2f3   : > { %v2469_v58 = vadd.f32 %v2468_v6, %v2438_v29  ;;  %v2507_v49 = vmul.f32 %v2438_v29, %v2438_v29  ;;  %v3304_v21 = vpack.c.bf16 %v2438_v29, %v2437_v3 }
 0x2f4   : > { %v2312_v56 = vpop.f32.mrf.mxu3  ;;  %v1845_v47 = vpop.f32.mrf.mxu1 }
 0x2f5   : > { %v2538_v62 = vadd.f32 %v2537_v36, %v2507_v49  ;;  %3343 = vst [vmem:[%s4370_s30 + $0x68] sm:$0xff] %v3304_v21   ;;  %v2313_v20 = vadd.f32 %v2312_v56, %v2223_v60  ;;  %v2225_v12 = vpop.f32.mrf.mxu2  ;;  %v1846_v35 = vadd.f32 %v1845_v47, %v4557_v53 }
 0x2f7   : > { %v2402_v27 = vadd.f32 %v2401_v22, %v2313_v20 }
 0x2f9   : > { %v2439_v13 = vadd.f32 %v2402_v27, %v1839_v26 }
 0x2fb   : > { %v2470_v4 = vadd.f32 %v2469_v58, %v2439_v13  ;;  %v2508_v51 = vmul.f32 %v2439_v13, %v2439_v13 }
 0x2fc   : > { %v2314_v52 = vpop.f32.mrf.mxu3 }
 0x2fd   : > { %v2539_v5 = vadd.f32 %v2538_v62, %v2508_v51  ;;  %v2315_v10 = vadd.f32 %v2314_v52, %v2225_v12  ;;  %v2228_v32 = vpop.f32.mrf.mxu2 }
 0x2ff   : > { %v2404_v61 = vadd.f32 %v2403_v16, %v2315_v10 }
 0x301   : > { %v2440_v11 = vadd.f32 %v2404_v61, %v1841_v44 }
 0x303   : > { %v2471_v2 = vadd.f32 %v2470_v4, %v2440_v11  ;;  %v2509_v14 = vmul.f32 %v2440_v11, %v2440_v11  ;;  %v3309_v7 = vpack.c.bf16 %v2440_v11, %v2439_v13 }
 0x304   : > { %v2317_v19 = vpop.f32.mrf.mxu3 }
 0x305   : > { %v2540_v45 = vadd.f32 %v2539_v5, %v2509_v14  ;;  %3344 = vst [vmem:[%s4370_s30 + $0x70] sm:$0xff] %v3309_v7   ;;  %v2318_v42 = vadd.f32 %v2317_v19, %v2228_v32  ;;  %v2230_v40 = vpop.f32.mrf.mxu2 }
 0x307   : > { %v2407_v15 = vadd.f32 %v2406_v34, %v2318_v42 }
 0x309   : > { %v2441_v30 = vadd.f32 %v2407_v15, %v1844_v57 }
 0x30b   : > { %v2472_v24 = vadd.f32 %v2471_v2, %v2441_v30  ;;  %v2510_v1 = vmul.f32 %v2441_v30, %v2441_v30 }
 0x30c   : > { %v2319_v39 = vpop.f32.mrf.mxu3 }
 0x30d   : > { %v2541_v18 = vadd.f32 %v2540_v45, %v2510_v1  ;;  %v2320_v43 = vadd.f32 %v2319_v39, %v2230_v40 }
 0x30f   : > { %v2409_v41 = vadd.f32 %v2408_v63, %v2320_v43 }
 0x311   : > { %v2442_v9 = vadd.f32 %v2409_v41, %v1846_v35 }
 0x313   : > { %v2473_v33 = vadd.f32 %v2472_v24, %v2442_v9  ;;  %v2511_v0 = vmul.f32 %v2442_v9, %v2442_v9  ;;  %v3314_v31 = vpack.c.bf16 %v2442_v9, %v2441_v30 }
 0x315   : > { %v2474_v23 = vrot.slane %v2473_v33, 4  ;;  %v2542_v3 = vadd.f32 %v2541_v18, %v2511_v0  ;;  %3345 = vst [vmem:[%s4370_s30 + $0x78] sm:$0xff] %v3314_v31  }
 0x317   : > { %v2475_v6 = vadd.f32 %v2474_v23, %v2473_v33  ;;  %v2543_v8 = vrot.slane %v2542_v3, 4 }
 0x319   : > { %v2476_v59 = vrot.slane %v2475_v6, 2  ;;  %v2544_v60 = vadd.f32 %v2543_v8, %v2542_v3 }
 0x31b   : > { %v2477_v36 = vadd.f32 %v2476_v59, %v2475_v6  ;;  %v2545_v25 = vrot.slane %v2544_v60, 2 }
 0x31d   : > { %v2478_v38 = vrot.slane %v2477_v36, 1  ;;  %v2546_v17 = vadd.f32 %v2545_v25, %v2544_v60 }
 0x31f   : > { %v2547_v37 = vrot.slane %v2546_v17, 1  ;;  %v2479_v48 = vadd.f32 %v2478_v38, %v2477_v36 }
 0x321   : > { %v2548_v22 = vadd.f32 %v2547_v37, %v2546_v17 }
 0x323   : > { %v2550_v29 = vsel %vm670_vm0, %v2479_v48, %v2548_v22 }
 0x324   : > { %2551 = vst [vmem:[%s235_s8] sm:$0x3] %v2550_v29 }
 0x325 PF: > { %s16_s18 = sadd.s32 1, %s3389_s18  }
 0x326   : > { %p13_p4 = scmp.ge.s32.totalorder %s16_s18, 4  }
 0x328   :  { %15 = sbr.rel (!%p13_p4) target bundleno = 1 (0x1), region = 80 }

</bundles_post_ra>
